<compile_context>
chip_gen: v7x
topology: tpu7x:2x2x1
jax: 0.10.0
libtpu: 0.0.40
codegen_flags: <defaults>
</compile_context>

<pallas_src>
import jax
import jax.numpy as jnp
import numpy as np
from jax.experimental import pallas as pl
from jax.experimental.pallas import tpu as pltpu

MAX_LENGTH = 20   # self.max_length (L)
HIDDEN = 32       # hidden_size    (H)
VOCAB = 64        # output_size    (V)

H, V, L = HIDDEN, VOCAB, MAX_LENGTH

# Row offsets inside the packed parameter slab (all multiples of 8).
_RA = 0          # [wa_e | wc_e]                 (H, 128), mult. by embedded
_RB = H          # [wa_h | whh_r | whh_z | whh_n](H, 128), mult. by h
_RX = 2 * H      # [wih_r | wih_z | wih_n]       (H, 128), mult. by x
_RCA = 3 * H     # wc_a                          (H, 128), folded into enc_ca
_RO = 4 * H      # wo                            (H, 128), mult. by h_new
_RB0 = 5 * H     # bias row 0: [ba | bc | b_r | b_z]
_RB1 = _RB0 + 8  # bias row 1: [bih_n | bhh_n | bo]
PARAM_ROWS = _RB1 + 8  # 176

_PACK_PAD = 128 - (V + H + L)  # 12 zero lanes per packed output row


def _attn_decoder_kernel(toks_ref,   # SMEM (T,) int32  : token id per step (prefetched)
                         h0_ref,     # VMEM (1, H)      : initial hidden state
                         enc_ref,    # VMEM (L, H)      : encoder_outputs
                         emb_ref,    # VMEM (V, H)      : embedding table (resident)
                         slab_ref,   # VMEM (176, 128)  : packed weights/biases (resident)
                         out_ref,    # VMEM (T, 128)    : packed per-step outputs
                         e_scr,      # VMEM (T, H)      : gathered embeddings
                         h_scr,      # VMEM (T, H)      : per-step hidden states
                         aw_scr):    # VMEM (T, L)      : per-step attention weights
    T = e_scr.shape[0]

    # ---------------- prologue: everything off the recurrence --------------
    # Gather all T embedding rows (tokens in SMEM); dropout = identity (eval).
    for t in range(T):
        e_scr[pl.ds(t, 1), :] = emb_ref[pl.ds(toks_ref[t], 1), :]

    # One batched MXU pass for everything multiplied by `embedded`.
    res_a_all = jnp.dot(e_scr[...], slab_ref[_RA:_RA + H, :],
                        preferred_element_type=jnp.float32)            # (T, 128)

    # Pre-fold encoder projection: enc_ca = encoder_outputs @ wc_a, so
    # attn_applied @ wc_a == attn_w @ enc_ca (one matmul on the critical path).
    enc_ca = jnp.dot(enc_ref[...], slab_ref[_RCA:_RCA + H, :],
                     preferred_element_type=jnp.float32)                # (L, 128)

    # Hoisted weight / bias tiles (stay in vregs across the unrolled loop).
    w_b = slab_ref[_RB:_RB + H, :]                                      # (H, 128)
    w_x = slab_ref[_RX:_RX + H, :]                                      # (H, 128)
    bias0 = slab_ref[_RB0:_RB0 + 1, :]                                  # (1, 128)
    bias1 = slab_ref[_RB1:_RB1 + 1, :]                                  # (1, 128)

    # ---------------- serial recurrence (fully unrolled) -------------------
    h = h0_ref[...]                                                     # (1, H)
    for t in range(T):
        res_a = res_a_all[t:t + 1, :]                                   # (1, 128)
        res_b = jnp.dot(h, w_b, preferred_element_type=jnp.float32)     # (1, 128)

        # attn_weights = softmax(attn(cat(embedded, hidden)))
        logits_a = res_a[:, 0:L] + res_b[:, 0:L] + bias0[:, 0:L]
        logits_a = logits_a - jnp.max(logits_a, axis=1, keepdims=True)
        ex = jnp.exp(logits_a)
        attn_w = ex / jnp.sum(ex, axis=1, keepdims=True)                # exact divide

        # attn_combine(cat(embedded, attn_applied)) + ReLU
        res_ca = jnp.dot(attn_w, enc_ca, preferred_element_type=jnp.float32)
        x = jnp.maximum(res_a[:, L:L + H] + res_ca[:, 0:H]
                        + bias0[:, L:L + H], 0.0)

        # Single-step GRU, PyTorch gate order (r, z, n); r/z biases pre-summed.
        res_x = jnp.dot(x, w_x, preferred_element_type=jnp.float32)     # (1, 128)
        r = jax.nn.sigmoid(res_x[:, 0:H] + res_b[:, L:L + H]
                           + bias0[:, L + H:L + 2 * H])
        z = jax.nn.sigmoid(res_x[:, H:2 * H] + res_b[:, L + H:L + 2 * H]
                           + bias0[:, L + 2 * H:L + 3 * H])
        n = jnp.tanh(res_x[:, 2 * H:3 * H] + bias1[:, 0:H]
                     + r * (res_b[:, L + 2 * H:L + 3 * H] + bias1[:, H:2 * H]))
        h = (1.0 - z) * n + z * h                                       # (1, H)

        h_scr[pl.ds(t, 1), :] = h
        aw_scr[pl.ds(t, 1), :] = attn_w

    # ---------------- batched output head (off the recurrence) -------------
    h_all = h_scr[...]                                                  # (T, H)
    aw_all = aw_scr[...]                                                # (T, L)
    res_o = jnp.dot(h_all, slab_ref[_RO:_RO + H, :],
                    preferred_element_type=jnp.float32)                 # (T, 128)
    logits = res_o[:, 0:V] + bias1[:, 2 * H:2 * H + V]
    m = jnp.max(logits, axis=1, keepdims=True)
    shifted = logits - m
    lse = jnp.log(jnp.sum(jnp.exp(shifted), axis=1, keepdims=True))
    logp = shifted - lse                                                # (T, V)

    # Packed lane-dense output: [logp | h_new | attn_w | pad].
    out_ref[:, 0:V] = logp
    out_ref[:, V:V + H] = h_all
    out_ref[:, V + H:V + H + L] = aw_all
    out_ref[:, V + H + L:128] = jnp.zeros((T, _PACK_PAD), jnp.float32)


@jax.jit
def attn_decoder_steps(toks, hidden, encoder_outputs, emb, slab):
    """Run T teacher-forced decode steps fused in one kernel invocation.

    toks: (T,) int32; hidden: (1,1,H); encoder_outputs: (L,H);
    emb: (V,H); slab: (PARAM_ROWS,128).
    Returns per-step (logp (T,V), hidden states (T,H), attn weights (T,L)).
    """
    T = toks.shape[0]
    toks = jnp.clip(toks.astype(jnp.int32), 0, VOCAB - 1)   # OOB-safe embedding index
    h0 = hidden.reshape(1, HIDDEN).astype(jnp.float32)

    packed = pl.pallas_call(
        _attn_decoder_kernel,
        out_shape=jax.ShapeDtypeStruct((T, 128), jnp.float32),
        grid_spec=pltpu.PrefetchScalarGridSpec(
            num_scalar_prefetch=1,
            grid=(1,),
            in_specs=[
                pl.BlockSpec((1, HIDDEN), lambda i, toks: (0, 0)),           # h0
                pl.BlockSpec((MAX_LENGTH, HIDDEN), lambda i, toks: (0, 0)),  # encoder_outputs
                pl.BlockSpec((VOCAB, HIDDEN), lambda i, toks: (0, 0)),       # embedding table
                pl.BlockSpec((PARAM_ROWS, 128), lambda i, toks: (0, 0)),     # packed params
            ],
            out_specs=pl.BlockSpec((T, 128), lambda i, toks: (0, 0)),
            scratch_shapes=[
                pltpu.VMEM((T, HIDDEN), jnp.float32),       # gathered embeddings
                pltpu.VMEM((T, HIDDEN), jnp.float32),       # per-step hidden states
                pltpu.VMEM((T, MAX_LENGTH), jnp.float32),   # per-step attn weights
            ],
        ),
        compiler_params=pltpu.CompilerParams(
            dimension_semantics=("arbitrary",)),
    )(toks, h0, encoder_outputs.astype(jnp.float32), emb, slab)

    logp = packed[:, 0:VOCAB]
    hiddens = packed[:, VOCAB:VOCAB + HIDDEN]
    attnw = packed[:, VOCAB + HIDDEN:VOCAB + HIDDEN + MAX_LENGTH]
    return logp, hiddens, attnw


def attn_decoder_forward(tok, hidden, encoder_outputs, emb, slab):
    """Single decode step with the same returns as AttnDecoderRNN.forward."""
    logp, hiddens, attnw = attn_decoder_steps(
        tok.reshape(1), hidden, encoder_outputs, emb, slab)
    return logp, hiddens.reshape(1, 1, HIDDEN), attnw


def init_params(key):
    """Deterministic synthetic parameters, stored in (in, out) layout."""
    ks = jax.random.split(key, 12)
    s = 0.1
    return {
        "emb": jax.random.normal(ks[0], (V, H), jnp.float32) * s,
        "wa_e": jax.random.normal(ks[1], (H, L), jnp.float32) * s,
        "wa_h": jax.random.normal(ks[2], (H, L), jnp.float32) * s,
        "ba": jax.random.normal(ks[3], (1, L), jnp.float32) * s,
        "wc_e": jax.random.normal(ks[4], (H, H), jnp.float32) * s,
        "wc_a": jax.random.normal(ks[5], (H, H), jnp.float32) * s,
        "bc": jax.random.normal(ks[6], (1, H), jnp.float32) * s,
        "wih": jax.random.normal(ks[7], (3, H, H), jnp.float32) * s,   # [r, z, n]
        "bih": jax.random.normal(ks[8], (3, 1, H), jnp.float32) * s,
        "whh": jax.random.normal(ks[9], (3, H, H), jnp.float32) * s,
        "bhh": jax.random.normal(ks[10], (3, 1, H), jnp.float32) * s,
        "wo": jax.random.normal(ks[11], (H, V), jnp.float32) * s,
        "bo": jnp.zeros((1, V), jnp.float32),
    }


def pack_params(p):
    """Pack all weights/biases into one lane-dense (PARAM_ROWS, 128) f32 slab."""
    slab = jnp.zeros((PARAM_ROWS, 128), jnp.float32)
    # multiplied by embedded: [wa_e | wc_e]
    slab = slab.at[_RA:_RA + H, 0:L].set(p["wa_e"])
    slab = slab.at[_RA:_RA + H, L:L + H].set(p["wc_e"])
    # multiplied by h: [wa_h | whh_r | whh_z | whh_n]
    slab = slab.at[_RB:_RB + H, 0:L].set(p["wa_h"])
    slab = slab.at[_RB:_RB + H, L:L + H].set(p["whh"][0])
    slab = slab.at[_RB:_RB + H, L + H:L + 2 * H].set(p["whh"][1])
    slab = slab.at[_RB:_RB + H, L + 2 * H:L + 3 * H].set(p["whh"][2])
    # multiplied by x: [wih_r | wih_z | wih_n]
    slab = slab.at[_RX:_RX + H, 0:H].set(p["wih"][0])
    slab = slab.at[_RX:_RX + H, H:2 * H].set(p["wih"][1])
    slab = slab.at[_RX:_RX + H, 2 * H:3 * H].set(p["wih"][2])
    # attn_combine (attn_applied part, folded as enc @ wc_a in-kernel) and output projection
    slab = slab.at[_RCA:_RCA + H, 0:H].set(p["wc_a"])
    slab = slab.at[_RO:_RO + H, 0:V].set(p["wo"])
    # bias row 0: [ba | bc | b_r | b_z]  (r/z GRU biases pre-summed)
    slab = slab.at[_RB0, 0:L].set(p["ba"][0])
    slab = slab.at[_RB0, L:L + H].set(p["bc"][0])
    slab = slab.at[_RB0, L + H:L + 2 * H].set(p["bih"][0, 0] + p["bhh"][0, 0])
    slab = slab.at[_RB0, L + 2 * H:L + 3 * H].set(p["bih"][1, 0] + p["bhh"][1, 0])
    # bias row 1: [bih_n | bhh_n | bo]
    slab = slab.at[_RB1, 0:H].set(p["bih"][2, 0])
    slab = slab.at[_RB1, H:2 * H].set(p["bhh"][2, 0])
    slab = slab.at[_RB1, 2 * H:2 * H + V].set(p["bo"][0])
    return slab


def reference_steps(toks, hidden, enc, p):
    """Pure-JAX teacher-forced decode loop mirroring the PyTorch forward (eval mode)."""
    h = hidden.reshape(1, HIDDEN)
    logps, hs, ats = [], [], []
    for t in range(int(toks.shape[0])):
        e = p["emb"][toks[t]][None, :]
        attn_logits = e @ p["wa_e"] + h @ p["wa_h"] + p["ba"]
        attn_w = jax.nn.softmax(attn_logits, axis=1)
        attn_applied = attn_w @ enc
        x = jax.nn.relu(e @ p["wc_e"] + attn_applied @ p["wc_a"] + p["bc"])
        i_r = x @ p["wih"][0] + p["bih"][0]
        i_z = x @ p["wih"][1] + p["bih"][1]
        i_n = x @ p["wih"][2] + p["bih"][2]
        h_r = h @ p["whh"][0] + p["bhh"][0]
        h_z = h @ p["whh"][1] + p["bhh"][1]
        h_n = h @ p["whh"][2] + p["bhh"][2]
        r = jax.nn.sigmoid(i_r + h_r)
        z = jax.nn.sigmoid(i_z + h_z)
        n = jnp.tanh(i_n + r * h_n)
        h = (1.0 - z) * n + z * h
        logits = h @ p["wo"] + p["bo"]
        logps.append(jax.nn.log_softmax(logits, axis=1))
        hs.append(h)
        ats.append(attn_w)
    return (jnp.concatenate(logps, 0), jnp.concatenate(hs, 0), jnp.concatenate(ats, 0))


if __name__ == "__main__":
    key = jax.random.PRNGKey(0)
    k_par, k_tok, k_hid, k_enc = jax.random.split(key, 4)

    params = init_params(k_par)
    emb = params["emb"]
    slab = pack_params(params)

    T = MAX_LENGTH  # fuse a full teacher-forced decode of MAX_LENGTH steps
    toks = jax.random.randint(k_tok, (T,), 0, VOCAB, dtype=jnp.int32)
    hidden0 = jax.random.normal(k_hid, (1, 1, HIDDEN), jnp.float32)
    encoder_outputs = jax.random.normal(k_enc, (MAX_LENGTH, HIDDEN), jnp.float32)

    logp, hiddens, attnw = attn_decoder_steps(toks, hidden0, encoder_outputs, emb, slab)
    jax.block_until_ready((logp, hiddens, attnw))

    # Correctness vs. pure-JAX reference. Tolerance absorbs default-precision
    # (bf16-pass) MXU matmuls, the enc@wc_a pre-fold reassociation, and 20
    # steps of accumulated hidden-state drift; real slice/layout bugs would
    # show errors orders of magnitude larger.
    r_logp, r_hid, r_attn = reference_steps(toks, hidden0, encoder_outputs, params)
    np.testing.assert_allclose(np.asarray(logp), np.asarray(r_logp), rtol=5e-3, atol=5e-3)
    np.testing.assert_allclose(np.asarray(hiddens), np.asarray(r_hid), rtol=5e-3, atol=5e-3)
    np.testing.assert_allclose(np.asarray(attnw), np.asarray(r_attn), rtol=5e-3, atol=5e-3)

    # Single-step API, same returns as AttnDecoderRNN.forward.
    logp1, newh1, attnw1 = attn_decoder_forward(toks[:1], hidden0, encoder_outputs, emb, slab)
    jax.block_until_ready((logp1, newh1, attnw1))
    np.testing.assert_allclose(np.asarray(logp1), np.asarray(r_logp[:1]), rtol=5e-3, atol=5e-3)

    # TODO(synk): training-mode dropout (p=0.1) is not implemented; eval-mode identity.
    # TODO(synk): on v7x, batch independent sequences across the 2 TensorCores
    # (leading "parallel" grid axis); single-sequence decode uses one core.
    print("KERNEL_OK")
</pallas_src>

<mosaic_0001>
module attributes {stable_mosaic.version = 11 : i64} {
  func.func @_attn_decoder_kernel(%arg0: i32, %arg1: memref<20xi32, #tpu.memory_space<smem>>, %arg2: memref<1x32xf32, #tpu.memory_space<vmem>>, %arg3: memref<20x32xf32, #tpu.memory_space<vmem>>, %arg4: memref<64x32xf32, #tpu.memory_space<vmem>>, %arg5: memref<176x128xf32, #tpu.memory_space<vmem>>, %arg6: memref<20x128xf32, #tpu.memory_space<vmem>>, %arg7: memref<20x32xf32, #tpu.memory_space<vmem>>, %arg8: memref<20x32xf32, #tpu.memory_space<vmem>>, %arg9: memref<20x20xf32, #tpu.memory_space<vmem>>) attributes {dimension_semantics = [#tpu.dimension_semantics<arbitrary>], iteration_bounds = array<i64: 1>, scalar_prefetch = 1 : i64, scratch_operands = 3 : i64, tpu.core_type = #tpu.core_type<tc>, window_params = [{pipeline_mode = #tpu.pipeline_mode<synchronous>, transform_indices = @transform_0, window_bounds = array<i64: 1, 32>}, {pipeline_mode = #tpu.pipeline_mode<synchronous>, transform_indices = @transform_1, window_bounds = array<i64: 20, 32>}, {pipeline_mode = #tpu.pipeline_mode<synchronous>, transform_indices = @transform_2, window_bounds = array<i64: 64, 32>}, {pipeline_mode = #tpu.pipeline_mode<synchronous>, transform_indices = @transform_3, window_bounds = array<i64: 176, 128>}, {pipeline_mode = #tpu.pipeline_mode<synchronous>, transform_indices = @transform_4, window_bounds = array<i64: 20, 128>}]} {
    %c0 = arith.constant 0 : index
    %0 = memref.load %arg1[%c0] : memref<20xi32, #tpu.memory_space<smem>>
    %1 = arith.index_cast %0 : i32 to index
    %c0_0 = arith.constant 0 : index
    %2 = vector.load %arg4[%1, %c0_0] : memref<64x32xf32, #tpu.memory_space<vmem>>, vector<1x32xf32>
    %c0_1 = arith.constant 0 : index
    %c0_2 = arith.constant 0 : index
    %3 = vector.load %arg7[%c0_1, %c0_2] : memref<20x32xf32, #tpu.memory_space<vmem>>, vector<1x32xf32>
    tpu.vector_store %arg7[%c0_1, %c0_2], %2 {strides = array<i32>} : memref<20x32xf32, #tpu.memory_space<vmem>>, vector<1x32xf32>,
    %c1 = arith.constant 1 : index
    %4 = memref.load %arg1[%c1] : memref<20xi32, #tpu.memory_space<smem>>
    %5 = arith.index_cast %4 : i32 to index
    %c0_3 = arith.constant 0 : index
    %6 = vector.load %arg4[%5, %c0_3] : memref<64x32xf32, #tpu.memory_space<vmem>>, vector<1x32xf32>
    %c1_4 = arith.constant 1 : index
    %c0_5 = arith.constant 0 : index
    %7 = vector.load %arg7[%c1_4, %c0_5] : memref<20x32xf32, #tpu.memory_space<vmem>>, vector<1x32xf32>
    tpu.vector_store %arg7[%c1_4, %c0_5], %6 {strides = array<i32>} : memref<20x32xf32, #tpu.memory_space<vmem>>, vector<1x32xf32>,
    %c2 = arith.constant 2 : index
    %8 = memref.load %arg1[%c2] : memref<20xi32, #tpu.memory_space<smem>>
    %9 = arith.index_cast %8 : i32 to index
    %c0_6 = arith.constant 0 : index
    %10 = vector.load %arg4[%9, %c0_6] : memref<64x32xf32, #tpu.memory_space<vmem>>, vector<1x32xf32>
    %c2_7 = arith.constant 2 : index
    %c0_8 = arith.constant 0 : index
    %11 = vector.load %arg7[%c2_7, %c0_8] : memref<20x32xf32, #tpu.memory_space<vmem>>, vector<1x32xf32>
    tpu.vector_store %arg7[%c2_7, %c0_8], %10 {strides = array<i32>} : memref<20x32xf32, #tpu.memory_space<vmem>>, vector<1x32xf32>,
    %c3 = arith.constant 3 : index
    %12 = memref.load %arg1[%c3] : memref<20xi32, #tpu.memory_space<smem>>
    %13 = arith.index_cast %12 : i32 to index
    %c0_9 = arith.constant 0 : index
    %14 = vector.load %arg4[%13, %c0_9] : memref<64x32xf32, #tpu.memory_space<vmem>>, vector<1x32xf32>
    %c3_10 = arith.constant 3 : index
    %c0_11 = arith.constant 0 : index
    %15 = vector.load %arg7[%c3_10, %c0_11] : memref<20x32xf32, #tpu.memory_space<vmem>>, vector<1x32xf32>
    tpu.vector_store %arg7[%c3_10, %c0_11], %14 {strides = array<i32>} : memref<20x32xf32, #tpu.memory_space<vmem>>, vector<1x32xf32>,
    %c4 = arith.constant 4 : index
    %16 = memref.load %arg1[%c4] : memref<20xi32, #tpu.memory_space<smem>>
    %17 = arith.index_cast %16 : i32 to index
    %c0_12 = arith.constant 0 : index
    %18 = vector.load %arg4[%17, %c0_12] : memref<64x32xf32, #tpu.memory_space<vmem>>, vector<1x32xf32>
    %c4_13 = arith.constant 4 : index
    %c0_14 = arith.constant 0 : index
    %19 = vector.load %arg7[%c4_13, %c0_14] : memref<20x32xf32, #tpu.memory_space<vmem>>, vector<1x32xf32>
    tpu.vector_store %arg7[%c4_13, %c0_14], %18 {strides = array<i32>} : memref<20x32xf32, #tpu.memory_space<vmem>>, vector<1x32xf32>,
    %c5 = arith.constant 5 : index
    %20 = memref.load %arg1[%c5] : memref<20xi32, #tpu.memory_space<smem>>
    %21 = arith.index_cast %20 : i32 to index
    %c0_15 = arith.constant 0 : index
    %22 = vector.load %arg4[%21, %c0_15] : memref<64x32xf32, #tpu.memory_space<vmem>>, vector<1x32xf32>
    %c5_16 = arith.constant 5 : index
    %c0_17 = arith.constant 0 : index
    %23 = vector.load %arg7[%c5_16, %c0_17] : memref<20x32xf32, #tpu.memory_space<vmem>>, vector<1x32xf32>
    tpu.vector_store %arg7[%c5_16, %c0_17], %22 {strides = array<i32>} : memref<20x32xf32, #tpu.memory_space<vmem>>, vector<1x32xf32>,
    %c6 = arith.constant 6 : index
    %24 = memref.load %arg1[%c6] : memref<20xi32, #tpu.memory_space<smem>>
    %25 = arith.index_cast %24 : i32 to index
    %c0_18 = arith.constant 0 : index
    %26 = vector.load %arg4[%25, %c0_18] : memref<64x32xf32, #tpu.memory_space<vmem>>, vector<1x32xf32>
    %c6_19 = arith.constant 6 : index
    %c0_20 = arith.constant 0 : index
    %27 = vector.load %arg7[%c6_19, %c0_20] : memref<20x32xf32, #tpu.memory_space<vmem>>, vector<1x32xf32>
    tpu.vector_store %arg7[%c6_19, %c0_20], %26 {strides = array<i32>} : memref<20x32xf32, #tpu.memory_space<vmem>>, vector<1x32xf32>,
    %c7 = arith.constant 7 : index
    %28 = memref.load %arg1[%c7] : memref<20xi32, #tpu.memory_space<smem>>
    %29 = arith.index_cast %28 : i32 to index
    %c0_21 = arith.constant 0 : index
    %30 = vector.load %arg4[%29, %c0_21] : memref<64x32xf32, #tpu.memory_space<vmem>>, vector<1x32xf32>
    %c7_22 = arith.constant 7 : index
    %c0_23 = arith.constant 0 : index
    %31 = vector.load %arg7[%c7_22, %c0_23] : memref<20x32xf32, #tpu.memory_space<vmem>>, vector<1x32xf32>
    tpu.vector_store %arg7[%c7_22, %c0_23], %30 {strides = array<i32>} : memref<20x32xf32, #tpu.memory_space<vmem>>, vector<1x32xf32>,
    %c8 = arith.constant 8 : index
    %32 = memref.load %arg1[%c8] : memref<20xi32, #tpu.memory_space<smem>>
    %33 = arith.index_cast %32 : i32 to index
    %c0_24 = arith.constant 0 : index
    %34 = vector.load %arg4[%33, %c0_24] : memref<64x32xf32, #tpu.memory_space<vmem>>, vector<1x32xf32>
    %c8_25 = arith.constant 8 : index
    %c0_26 = arith.constant 0 : index
    %35 = vector.load %arg7[%c8_25, %c0_26] : memref<20x32xf32, #tpu.memory_space<vmem>>, vector<1x32xf32>
    tpu.vector_store %arg7[%c8_25, %c0_26], %34 {strides = array<i32>} : memref<20x32xf32, #tpu.memory_space<vmem>>, vector<1x32xf32>,
    %c9 = arith.constant 9 : index
    %36 = memref.load %arg1[%c9] : memref<20xi32, #tpu.memory_space<smem>>
    %37 = arith.index_cast %36 : i32 to index
    %c0_27 = arith.constant 0 : index
    %38 = vector.load %arg4[%37, %c0_27] : memref<64x32xf32, #tpu.memory_space<vmem>>, vector<1x32xf32>
    %c9_28 = arith.constant 9 : index
    %c0_29 = arith.constant 0 : index
    %39 = vector.load %arg7[%c9_28, %c0_29] : memref<20x32xf32, #tpu.memory_space<vmem>>, vector<1x32xf32>
    tpu.vector_store %arg7[%c9_28, %c0_29], %38 {strides = array<i32>} : memref<20x32xf32, #tpu.memory_space<vmem>>, vector<1x32xf32>,
    %c10 = arith.constant 10 : index
    %40 = memref.load %arg1[%c10] : memref<20xi32, #tpu.memory_space<smem>>
    %41 = arith.index_cast %40 : i32 to index
    %c0_30 = arith.constant 0 : index
    %42 = vector.load %arg4[%41, %c0_30] : memref<64x32xf32, #tpu.memory_space<vmem>>, vector<1x32xf32>
    %c10_31 = arith.constant 10 : index
    %c0_32 = arith.constant 0 : index
    %43 = vector.load %arg7[%c10_31, %c0_32] : memref<20x32xf32, #tpu.memory_space<vmem>>, vector<1x32xf32>
    tpu.vector_store %arg7[%c10_31, %c0_32], %42 {strides = array<i32>} : memref<20x32xf32, #tpu.memory_space<vmem>>, vector<1x32xf32>,
    %c11 = arith.constant 11 : index
    %44 = memref.load %arg1[%c11] : memref<20xi32, #tpu.memory_space<smem>>
    %45 = arith.index_cast %44 : i32 to index
    %c0_33 = arith.constant 0 : index
    %46 = vector.load %arg4[%45, %c0_33] : memref<64x32xf32, #tpu.memory_space<vmem>>, vector<1x32xf32>
    %c11_34 = arith.constant 11 : index
    %c0_35 = arith.constant 0 : index
    %47 = vector.load %arg7[%c11_34, %c0_35] : memref<20x32xf32, #tpu.memory_space<vmem>>, vector<1x32xf32>
    tpu.vector_store %arg7[%c11_34, %c0_35], %46 {strides = array<i32>} : memref<20x32xf32, #tpu.memory_space<vmem>>, vector<1x32xf32>,
    %c12 = arith.constant 12 : index
    %48 = memref.load %arg1[%c12] : memref<20xi32, #tpu.memory_space<smem>>
    %49 = arith.index_cast %48 : i32 to index
    %c0_36 = arith.constant 0 : index
    %50 = vector.load %arg4[%49, %c0_36] : memref<64x32xf32, #tpu.memory_space<vmem>>, vector<1x32xf32>
    %c12_37 = arith.constant 12 : index
    %c0_38 = arith.constant 0 : index
    %51 = vector.load %arg7[%c12_37, %c0_38] : memref<20x32xf32, #tpu.memory_space<vmem>>, vector<1x32xf32>
    tpu.vector_store %arg7[%c12_37, %c0_38], %50 {strides = array<i32>} : memref<20x32xf32, #tpu.memory_space<vmem>>, vector<1x32xf32>,
    %c13 = arith.constant 13 : index
    %52 = memref.load %arg1[%c13] : memref<20xi32, #tpu.memory_space<smem>>
    %53 = arith.index_cast %52 : i32 to index
    %c0_39 = arith.constant 0 : index
    %54 = vector.load %arg4[%53, %c0_39] : memref<64x32xf32, #tpu.memory_space<vmem>>, vector<1x32xf32>
    %c13_40 = arith.constant 13 : index
    %c0_41 = arith.constant 0 : index
    %55 = vector.load %arg7[%c13_40, %c0_41] : memref<20x32xf32, #tpu.memory_space<vmem>>, vector<1x32xf32>
    tpu.vector_store %arg7[%c13_40, %c0_41], %54 {strides = array<i32>} : memref<20x32xf32, #tpu.memory_space<vmem>>, vector<1x32xf32>,
    %c14 = arith.constant 14 : index
    %56 = memref.load %arg1[%c14] : memref<20xi32, #tpu.memory_space<smem>>
    %57 = arith.index_cast %56 : i32 to index
    %c0_42 = arith.constant 0 : index
    %58 = vector.load %arg4[%57, %c0_42] : memref<64x32xf32, #tpu.memory_space<vmem>>, vector<1x32xf32>
    %c14_43 = arith.constant 14 : index
    %c0_44 = arith.constant 0 : index
    %59 = vector.load %arg7[%c14_43, %c0_44] : memref<20x32xf32, #tpu.memory_space<vmem>>, vector<1x32xf32>
    tpu.vector_store %arg7[%c14_43, %c0_44], %58 {strides = array<i32>} : memref<20x32xf32, #tpu.memory_space<vmem>>, vector<1x32xf32>,
    %c15 = arith.constant 15 : index
    %60 = memref.load %arg1[%c15] : memref<20xi32, #tpu.memory_space<smem>>
    %61 = arith.index_cast %60 : i32 to index
    %c0_45 = arith.constant 0 : index
    %62 = vector.load %arg4[%61, %c0_45] : memref<64x32xf32, #tpu.memory_space<vmem>>, vector<1x32xf32>
    %c15_46 = arith.constant 15 : index
    %c0_47 = arith.constant 0 : index
    %63 = vector.load %arg7[%c15_46, %c0_47] : memref<20x32xf32, #tpu.memory_space<vmem>>, vector<1x32xf32>
    tpu.vector_store %arg7[%c15_46, %c0_47], %62 {strides = array<i32>} : memref<20x32xf32, #tpu.memory_space<vmem>>, vector<1x32xf32>,
    %c16 = arith.constant 16 : index
    %64 = memref.load %arg1[%c16] : memref<20xi32, #tpu.memory_space<smem>>
    %65 = arith.index_cast %64 : i32 to index
    %c0_48 = arith.constant 0 : index
    %66 = vector.load %arg4[%65, %c0_48] : memref<64x32xf32, #tpu.memory_space<vmem>>, vector<1x32xf32>
    %c16_49 = arith.constant 16 : index
    %c0_50 = arith.constant 0 : index
    %67 = vector.load %arg7[%c16_49, %c0_50] : memref<20x32xf32, #tpu.memory_space<vmem>>, vector<1x32xf32>
    tpu.vector_store %arg7[%c16_49, %c0_50], %66 {strides = array<i32>} : memref<20x32xf32, #tpu.memory_space<vmem>>, vector<1x32xf32>,
    %c17 = arith.constant 17 : index
    %68 = memref.load %arg1[%c17] : memref<20xi32, #tpu.memory_space<smem>>
    %69 = arith.index_cast %68 : i32 to index
    %c0_51 = arith.constant 0 : index
    %70 = vector.load %arg4[%69, %c0_51] : memref<64x32xf32, #tpu.memory_space<vmem>>, vector<1x32xf32>
    %c17_52 = arith.constant 17 : index
    %c0_53 = arith.constant 0 : index
    %71 = vector.load %arg7[%c17_52, %c0_53] : memref<20x32xf32, #tpu.memory_space<vmem>>, vector<1x32xf32>
    tpu.vector_store %arg7[%c17_52, %c0_53], %70 {strides = array<i32>} : memref<20x32xf32, #tpu.memory_space<vmem>>, vector<1x32xf32>,
    %c18 = arith.constant 18 : index
    %72 = memref.load %arg1[%c18] : memref<20xi32, #tpu.memory_space<smem>>
    %73 = arith.index_cast %72 : i32 to index
    %c0_54 = arith.constant 0 : index
    %74 = vector.load %arg4[%73, %c0_54] : memref<64x32xf32, #tpu.memory_space<vmem>>, vector<1x32xf32>
    %c18_55 = arith.constant 18 : index
    %c0_56 = arith.constant 0 : index
    %75 = vector.load %arg7[%c18_55, %c0_56] : memref<20x32xf32, #tpu.memory_space<vmem>>, vector<1x32xf32>
    tpu.vector_store %arg7[%c18_55, %c0_56], %74 {strides = array<i32>} : memref<20x32xf32, #tpu.memory_space<vmem>>, vector<1x32xf32>,
    %c19 = arith.constant 19 : index
    %76 = memref.load %arg1[%c19] : memref<20xi32, #tpu.memory_space<smem>>
    %77 = arith.index_cast %76 : i32 to index
    %c0_57 = arith.constant 0 : index
    %78 = vector.load %arg4[%77, %c0_57] : memref<64x32xf32, #tpu.memory_space<vmem>>, vector<1x32xf32>
    %c19_58 = arith.constant 19 : index
    %c0_59 = arith.constant 0 : index
    %79 = vector.load %arg7[%c19_58, %c0_59] : memref<20x32xf32, #tpu.memory_space<vmem>>, vector<1x32xf32>
    tpu.vector_store %arg7[%c19_58, %c0_59], %78 {strides = array<i32>} : memref<20x32xf32, #tpu.memory_space<vmem>>, vector<1x32xf32>,
    %c0_60 = arith.constant 0 : index
    %c0_61 = arith.constant 0 : index
    %80 = vector.load %arg7[%c0_60, %c0_61] : memref<20x32xf32, #tpu.memory_space<vmem>>, vector<20x32xf32>
    %c0_62 = arith.constant 0 : index
    %c0_63 = arith.constant 0 : index
    %81 = vector.load %arg5[%c0_62, %c0_63] : memref<176x128xf32, #tpu.memory_space<vmem>>, vector<32x128xf32>
    %cst = arith.constant dense<0.000000e+00> : vector<20x128xf32>
    %82 = tpu.matmul %80, %81, %cst {dimension_numbers = #tpu.dot_dimension_numbers<[1], [0], [0], [1], [0, 0, 1, 1], [], []>} : vector<20x32xf32>, vector<32x128xf32>, vector<20x128xf32> -> vector<20x128xf32>
    %c0_64 = arith.constant 0 : index
    %c0_65 = arith.constant 0 : index
    %83 = vector.load %arg3[%c0_64, %c0_65] : memref<20x32xf32, #tpu.memory_space<vmem>>, vector<20x32xf32>
    %c96 = arith.constant 96 : index
    %c0_66 = arith.constant 0 : index
    %84 = vector.load %arg5[%c96, %c0_66] : memref<176x128xf32, #tpu.memory_space<vmem>>, vector<32x128xf32>
    %cst_67 = arith.constant dense<0.000000e+00> : vector<20x128xf32>
    %85 = tpu.matmul %83, %84, %cst_67 {dimension_numbers = #tpu.dot_dimension_numbers<[1], [0], [0], [1], [0, 0, 1, 1], [], []>} : vector<20x32xf32>, vector<32x128xf32>, vector<20x128xf32> -> vector<20x128xf32>
    %c32 = arith.constant 32 : index
    %c0_68 = arith.constant 0 : index
    %86 = vector.load %arg5[%c32, %c0_68] : memref<176x128xf32, #tpu.memory_space<vmem>>, vector<32x128xf32>
    %c64 = arith.constant 64 : index
    %c0_69 = arith.constant 0 : index
    %87 = vector.load %arg5[%c64, %c0_69] : memref<176x128xf32, #tpu.memory_space<vmem>>, vector<32x128xf32>
    %c160 = arith.constant 160 : index
    %c0_70 = arith.constant 0 : index
    %88 = vector.load %arg5[%c160, %c0_70] : memref<176x128xf32, #tpu.memory_space<vmem>>, vector<1x128xf32>
    %c168 = arith.constant 168 : index
    %c0_71 = arith.constant 0 : index
    %89 = vector.load %arg5[%c168, %c0_71] : memref<176x128xf32, #tpu.memory_space<vmem>>, vector<1x128xf32>
    %c0_72 = arith.constant 0 : index
    %c0_73 = arith.constant 0 : index
    %90 = vector.load %arg2[%c0_72, %c0_73] : memref<1x32xf32, #tpu.memory_space<vmem>>, vector<1x32xf32>
    %91 = vector.extract_strided_slice %82 {offsets = [0, 0], sizes = [1, 128], strides = [1, 1]} : vector<20x128xf32> to vector<1x128xf32>
    %cst_74 = arith.constant dense<0.000000e+00> : vector<1x128xf32>
    %92 = tpu.matmul %90, %86, %cst_74 {dimension_numbers = #tpu.dot_dimension_numbers<[1], [0], [0], [1], [0, 0, 1, 1], [], []>} : vector<1x32xf32>, vector<32x128xf32>, vector<1x128xf32> -> vector<1x128xf32>
    %93 = vector.extract_strided_slice %91 {offsets = [0, 0], sizes = [1, 20], strides = [1, 1]} : vector<1x128xf32> to vector<1x20xf32>
    %94 = vector.extract_strided_slice %92 {offsets = [0, 0], sizes = [1, 20], strides = [1, 1]} : vector<1x128xf32> to vector<1x20xf32>
    %95 = arith.addf %93, %94 : vector<1x20xf32>
    %96 = vector.extract_strided_slice %88 {offsets = [0, 0], sizes = [1, 20], strides = [1, 1]} : vector<1x128xf32> to vector<1x20xf32>
    %97 = arith.addf %95, %96 : vector<1x20xf32>
    %cst_75 = arith.constant dense<0xFF800000> : vector<1xf32>
    %98 = vector.multi_reduction <maximumf>, %97, %cst_75 [1] : vector<1x20xf32> to vector<1xf32>
    %99 = vector.shape_cast %98 : vector<1xf32> to vector<1x1xf32>
    %100 = vector.broadcast %99 : vector<1x1xf32> to vector<1x20xf32>
    %101 = arith.subf %97, %100 : vector<1x20xf32>
    %102 = math.exp %101 : vector<1x20xf32>
    %cst_76 = arith.constant dense<0.000000e+00> : vector<1xf32>
    %103 = vector.multi_reduction <add>, %102, %cst_76 [1] : vector<1x20xf32> to vector<1xf32>
    %104 = vector.shape_cast %103 : vector<1xf32> to vector<1x1xf32>
    %105 = vector.broadcast %104 : vector<1x1xf32> to vector<1x20xf32>
    %106 = arith.divf %102, %105 : vector<1x20xf32>
    %cst_77 = arith.constant dense<0.000000e+00> : vector<1x128xf32>
    %107 = tpu.matmul %106, %85, %cst_77 {dimension_numbers = #tpu.dot_dimension_numbers<[1], [0], [0], [1], [0, 0, 1, 1], [], []>} : vector<1x20xf32>, vector<20x128xf32>, vector<1x128xf32> -> vector<1x128xf32>
    %108 = vector.extract_strided_slice %91 {offsets = [0, 20], sizes = [1, 32], strides = [1, 1]} : vector<1x128xf32> to vector<1x32xf32>
    %109 = vector.extract_strided_slice %107 {offsets = [0, 0], sizes = [1, 32], strides = [1, 1]} : vector<1x128xf32> to vector<1x32xf32>
    %110 = arith.addf %108, %109 : vector<1x32xf32>
    %111 = vector.extract_strided_slice %88 {offsets = [0, 20], sizes = [1, 32], strides = [1, 1]} : vector<1x128xf32> to vector<1x32xf32>
    %112 = arith.addf %110, %111 : vector<1x32xf32>
    %cst_78 = arith.constant 0.000000e+00 : f32
    %113 = vector.broadcast %cst_78 : f32 to vector<1x32xf32>
    %114 = arith.maximumf %112, %113 : vector<1x32xf32>
    %cst_79 = arith.constant dense<0.000000e+00> : vector<1x128xf32>
    %115 = tpu.matmul %114, %87, %cst_79 {dimension_numbers = #tpu.dot_dimension_numbers<[1], [0], [0], [1], [0, 0, 1, 1], [], []>} : vector<1x32xf32>, vector<32x128xf32>, vector<1x128xf32> -> vector<1x128xf32>
    %116 = vector.extract_strided_slice %115 {offsets = [0, 0], sizes = [1, 32], strides = [1, 1]} : vector<1x128xf32> to vector<1x32xf32>
    %117 = vector.extract_strided_slice %92 {offsets = [0, 20], sizes = [1, 32], strides = [1, 1]} : vector<1x128xf32> to vector<1x32xf32>
    %118 = arith.addf %116, %117 : vector<1x32xf32>
    %119 = vector.extract_strided_slice %88 {offsets = [0, 52], sizes = [1, 32], strides = [1, 1]} : vector<1x128xf32> to vector<1x32xf32>
    %120 = arith.addf %118, %119 : vector<1x32xf32>
    %121 = arith.negf %120 : vector<1x32xf32>
    %122 = math.exp %121 : vector<1x32xf32>
    %cst_80 = arith.constant 1.000000e+00 : f32
    %123 = vector.broadcast %cst_80 : f32 to vector<1x32xf32>
    %124 = arith.addf %123, %122 : vector<1x32xf32>
    %125 = arith.divf %123, %124 : vector<1x32xf32>
    %126 = vector.extract_strided_slice %115 {offsets = [0, 32], sizes = [1, 32], strides = [1, 1]} : vector<1x128xf32> to vector<1x32xf32>
    %127 = vector.extract_strided_slice %92 {offsets = [0, 52], sizes = [1, 32], strides = [1, 1]} : vector<1x128xf32> to vector<1x32xf32>
    %128 = arith.addf %126, %127 : vector<1x32xf32>
    %129 = vector.extract_strided_slice %88 {offsets = [0, 84], sizes = [1, 32], strides = [1, 1]} : vector<1x128xf32> to vector<1x32xf32>
    %130 = arith.addf %128, %129 : vector<1x32xf32>
    %131 = arith.negf %130 : vector<1x32xf32>
    %132 = math.exp %131 : vector<1x32xf32>
    %cst_81 = arith.constant 1.000000e+00 : f32
    %133 = vector.broadcast %cst_81 : f32 to vector<1x32xf32>
    %134 = arith.addf %133, %132 : vector<1x32xf32>
    %135 = arith.divf %133, %134 : vector<1x32xf32>
    %136 = vector.extract_strided_slice %115 {offsets = [0, 64], sizes = [1, 32], strides = [1, 1]} : vector<1x128xf32> to vector<1x32xf32>
    %137 = vector.extract_strided_slice %89 {offsets = [0, 0], sizes = [1, 32], strides = [1, 1]} : vector<1x128xf32> to vector<1x32xf32>
    %138 = arith.addf %136, %137 : vector<1x32xf32>
    %139 = vector.extract_strided_slice %92 {offsets = [0, 84], sizes = [1, 32], strides = [1, 1]} : vector<1x128xf32> to vector<1x32xf32>
    %140 = vector.extract_strided_slice %89 {offsets = [0, 32], sizes = [1, 32], strides = [1, 1]} : vector<1x128xf32> to vector<1x32xf32>
    %141 = arith.addf %139, %140 : vector<1x32xf32>
    %142 = arith.mulf %125, %141 : vector<1x32xf32>
    %143 = arith.addf %138, %142 : vector<1x32xf32>
    %144 = math.tanh %143 : vector<1x32xf32>
    %cst_82 = arith.constant 1.000000e+00 : f32
    %145 = vector.broadcast %cst_82 : f32 to vector<1x32xf32>
    %146 = arith.subf %145, %135 : vector<1x32xf32>
    %147 = arith.mulf %146, %144 : vector<1x32xf32>
    %148 = arith.mulf %135, %90 : vector<1x32xf32>
    %149 = arith.addf %147, %148 : vector<1x32xf32>
    %c0_83 = arith.constant 0 : index
    %c0_84 = arith.constant 0 : index
    %150 = vector.load %arg8[%c0_83, %c0_84] : memref<20x32xf32, #tpu.memory_space<vmem>>, vector<1x32xf32>
    tpu.vector_store %arg8[%c0_83, %c0_84], %149 {strides = array<i32>} : memref<20x32xf32, #tpu.memory_space<vmem>>, vector<1x32xf32>,
    %c0_85 = arith.constant 0 : index
    %c0_86 = arith.constant 0 : index
    %151 = vector.load %arg9[%c0_85, %c0_86] : memref<20x20xf32, #tpu.memory_space<vmem>>, vector<1x20xf32>
    tpu.vector_store %arg9[%c0_85, %c0_86], %106 {strides = array<i32>} : memref<20x20xf32, #tpu.memory_space<vmem>>, vector<1x20xf32>,
    %152 = vector.extract_strided_slice %82 {offsets = [1, 0], sizes = [1, 128], strides = [1, 1]} : vector<20x128xf32> to vector<1x128xf32>
    %cst_87 = arith.constant dense<0.000000e+00> : vector<1x128xf32>
    %153 = tpu.matmul %149, %86, %cst_87 {dimension_numbers = #tpu.dot_dimension_numbers<[1], [0], [0], [1], [0, 0, 1, 1], [], []>} : vector<1x32xf32>, vector<32x128xf32>, vector<1x128xf32> -> vector<1x128xf32>
    %154 = vector.extract_strided_slice %152 {offsets = [0, 0], sizes = [1, 20], strides = [1, 1]} : vector<1x128xf32> to vector<1x20xf32>
    %155 = vector.extract_strided_slice %153 {offsets = [0, 0], sizes = [1, 20], strides = [1, 1]} : vector<1x128xf32> to vector<1x20xf32>
    %156 = arith.addf %154, %155 : vector<1x20xf32>
    %157 = vector.extract_strided_slice %88 {offsets = [0, 0], sizes = [1, 20], strides = [1, 1]} : vector<1x128xf32> to vector<1x20xf32>
    %158 = arith.addf %156, %157 : vector<1x20xf32>
    %cst_88 = arith.constant dense<0xFF800000> : vector<1xf32>
    %159 = vector.multi_reduction <maximumf>, %158, %cst_88 [1] : vector<1x20xf32> to vector<1xf32>
    %160 = vector.shape_cast %159 : vector<1xf32> to vector<1x1xf32>
    %161 = vector.broadcast %160 : vector<1x1xf32> to vector<1x20xf32>
    %162 = arith.subf %158, %161 : vector<1x20xf32>
    %163 = math.exp %162 : vector<1x20xf32>
    %cst_89 = arith.constant dense<0.000000e+00> : vector<1xf32>
    %164 = vector.multi_reduction <add>, %163, %cst_89 [1] : vector<1x20xf32> to vector<1xf32>
    %165 = vector.shape_cast %164 : vector<1xf32> to vector<1x1xf32>
    %166 = vector.broadcast %165 : vector<1x1xf32> to vector<1x20xf32>
    %167 = arith.divf %163, %166 : vector<1x20xf32>
    %cst_90 = arith.constant dense<0.000000e+00> : vector<1x128xf32>
    %168 = tpu.matmul %167, %85, %cst_90 {dimension_numbers = #tpu.dot_dimension_numbers<[1], [0], [0], [1], [0, 0, 1, 1], [], []>} : vector<1x20xf32>, vector<20x128xf32>, vector<1x128xf32> -> vector<1x128xf32>
    %169 = vector.extract_strided_slice %152 {offsets = [0, 20], sizes = [1, 32], strides = [1, 1]} : vector<1x128xf32> to vector<1x32xf32>
    %170 = vector.extract_strided_slice %168 {offsets = [0, 0], sizes = [1, 32], strides = [1, 1]} : vector<1x128xf32> to vector<1x32xf32>
    %171 = arith.addf %169, %170 : vector<1x32xf32>
    %172 = vector.extract_strided_slice %88 {offsets = [0, 20], sizes = [1, 32], strides = [1, 1]} : vector<1x128xf32> to vector<1x32xf32>
    %173 = arith.addf %171, %172 : vector<1x32xf32>
    %cst_91 = arith.constant 0.000000e+00 : f32
    %174 = vector.broadcast %cst_91 : f32 to vector<1x32xf32>
    %175 = arith.maximumf %173, %174 : vector<1x32xf32>
    %cst_92 = arith.constant dense<0.000000e+00> : vector<1x128xf32>
    %176 = tpu.matmul %175, %87, %cst_92 {dimension_numbers = #tpu.dot_dimension_numbers<[1], [0], [0], [1], [0, 0, 1, 1], [], []>} : vector<1x32xf32>, vector<32x128xf32>, vector<1x128xf32> -> vector<1x128xf32>
    %177 = vector.extract_strided_slice %176 {offsets = [0, 0], sizes = [1, 32], strides = [1, 1]} : vector<1x128xf32> to vector<1x32xf32>
    %178 = vector.extract_strided_slice %153 {offsets = [0, 20], sizes = [1, 32], strides = [1, 1]} : vector<1x128xf32> to vector<1x32xf32>
    %179 = arith.addf %177, %178 : vector<1x32xf32>
    %180 = vector.extract_strided_slice %88 {offsets = [0, 52], sizes = [1, 32], strides = [1, 1]} : vector<1x128xf32> to vector<1x32xf32>
    %181 = arith.addf %179, %180 : vector<1x32xf32>
    %182 = arith.negf %181 : vector<1x32xf32>
    %183 = math.exp %182 : vector<1x32xf32>
    %cst_93 = arith.constant 1.000000e+00 : f32
    %184 = vector.broadcast %cst_93 : f32 to vector<1x32xf32>
    %185 = arith.addf %184, %183 : vector<1x32xf32>
    %186 = arith.divf %184, %185 : vector<1x32xf32>
    %187 = vector.extract_strided_slice %176 {offsets = [0, 32], sizes = [1, 32], strides = [1, 1]} : vector<1x128xf32> to vector<1x32xf32>
    %188 = vector.extract_strided_slice %153 {offsets = [0, 52], sizes = [1, 32], strides = [1, 1]} : vector<1x128xf32> to vector<1x32xf32>
    %189 = arith.addf %187, %188 : vector<1x32xf32>
    %190 = vector.extract_strided_slice %88 {offsets = [0, 84], sizes = [1, 32], strides = [1, 1]} : vector<1x128xf32> to vector<1x32xf32>
    %191 = arith.addf %189, %190 : vector<1x32xf32>
    %192 = arith.negf %191 : vector<1x32xf32>
    %193 = math.exp %192 : vector<1x32xf32>
    %cst_94 = arith.constant 1.000000e+00 : f32
    %194 = vector.broadcast %cst_94 : f32 to vector<1x32xf32>
    %195 = arith.addf %194, %193 : vector<1x32xf32>
    %196 = arith.divf %194, %195 : vector<1x32xf32>
    %197 = vector.extract_strided_slice %176 {offsets = [0, 64], sizes = [1, 32], strides = [1, 1]} : vector<1x128xf32> to vector<1x32xf32>
    %198 = vector.extract_strided_slice %89 {offsets = [0, 0], sizes = [1, 32], strides = [1, 1]} : vector<1x128xf32> to vector<1x32xf32>
    %199 = arith.addf %197, %198 : vector<1x32xf32>
    %200 = vector.extract_strided_slice %153 {offsets = [0, 84], sizes = [1, 32], strides = [1, 1]} : vector<1x128xf32> to vector<1x32xf32>
    %201 = vector.extract_strided_slice %89 {offsets = [0, 32], sizes = [1, 32], strides = [1, 1]} : vector<1x128xf32> to vector<1x32xf32>
    %202 = arith.addf %200, %201 : vector<1x32xf32>
    %203 = arith.mulf %186, %202 : vector<1x32xf32>
    %204 = arith.addf %199, %203 : vector<1x32xf32>
    %205 = math.tanh %204 : vector<1x32xf32>
    %cst_95 = arith.constant 1.000000e+00 : f32
    %206 = vector.broadcast %cst_95 : f32 to vector<1x32xf32>
    %207 = arith.subf %206, %196 : vector<1x32xf32>
    %208 = arith.mulf %207, %205 : vector<1x32xf32>
    %209 = arith.mulf %196, %149 : vector<1x32xf32>
    %210 = arith.addf %208, %209 : vector<1x32xf32>
    %c1_96 = arith.constant 1 : index
    %c0_97 = arith.constant 0 : index
    %211 = vector.load %arg8[%c1_96, %c0_97] : memref<20x32xf32, #tpu.memory_space<vmem>>, vector<1x32xf32>
    tpu.vector_store %arg8[%c1_96, %c0_97], %210 {strides = array<i32>} : memref<20x32xf32, #tpu.memory_space<vmem>>, vector<1x32xf32>,
    %c1_98 = arith.constant 1 : index
    %c0_99 = arith.constant 0 : index
    %212 = vector.load %arg9[%c1_98, %c0_99] : memref<20x20xf32, #tpu.memory_space<vmem>>, vector<1x20xf32>
    tpu.vector_store %arg9[%c1_98, %c0_99], %167 {strides = array<i32>} : memref<20x20xf32, #tpu.memory_space<vmem>>, vector<1x20xf32>,
    %213 = vector.extract_strided_slice %82 {offsets = [2, 0], sizes = [1, 128], strides = [1, 1]} : vector<20x128xf32> to vector<1x128xf32>
    %cst_100 = arith.constant dense<0.000000e+00> : vector<1x128xf32>
    %214 = tpu.matmul %210, %86, %cst_100 {dimension_numbers = #tpu.dot_dimension_numbers<[1], [0], [0], [1], [0, 0, 1, 1], [], []>} : vector<1x32xf32>, vector<32x128xf32>, vector<1x128xf32> -> vector<1x128xf32>
    %215 = vector.extract_strided_slice %213 {offsets = [0, 0], sizes = [1, 20], strides = [1, 1]} : vector<1x128xf32> to vector<1x20xf32>
    %216 = vector.extract_strided_slice %214 {offsets = [0, 0], sizes = [1, 20], strides = [1, 1]} : vector<1x128xf32> to vector<1x20xf32>
    %217 = arith.addf %215, %216 : vector<1x20xf32>
    %218 = vector.extract_strided_slice %88 {offsets = [0, 0], sizes = [1, 20], strides = [1, 1]} : vector<1x128xf32> to vector<1x20xf32>
    %219 = arith.addf %217, %218 : vector<1x20xf32>
    %cst_101 = arith.constant dense<0xFF800000> : vector<1xf32>
    %220 = vector.multi_reduction <maximumf>, %219, %cst_101 [1] : vector<1x20xf32> to vector<1xf32>
    %221 = vector.shape_cast %220 : vector<1xf32> to vector<1x1xf32>
    %222 = vector.broadcast %221 : vector<1x1xf32> to vector<1x20xf32>
    %223 = arith.subf %219, %222 : vector<1x20xf32>
    %224 = math.exp %223 : vector<1x20xf32>
    %cst_102 = arith.constant dense<0.000000e+00> : vector<1xf32>
    %225 = vector.multi_reduction <add>, %224, %cst_102 [1] : vector<1x20xf32> to vector<1xf32>
    %226 = vector.shape_cast %225 : vector<1xf32> to vector<1x1xf32>
    %227 = vector.broadcast %226 : vector<1x1xf32> to vector<1x20xf32>
    %228 = arith.divf %224, %227 : vector<1x20xf32>
    %cst_103 = arith.constant dense<0.000000e+00> : vector<1x128xf32>
    %229 = tpu.matmul %228, %85, %cst_103 {dimension_numbers = #tpu.dot_dimension_numbers<[1], [0], [0], [1], [0, 0, 1, 1], [], []>} : vector<1x20xf32>, vector<20x128xf32>, vector<1x128xf32> -> vector<1x128xf32>
    %230 = vector.extract_strided_slice %213 {offsets = [0, 20], sizes = [1, 32], strides = [1, 1]} : vector<1x128xf32> to vector<1x32xf32>
    %231 = vector.extract_strided_slice %229 {offsets = [0, 0], sizes = [1, 32], strides = [1, 1]} : vector<1x128xf32> to vector<1x32xf32>
    %232 = arith.addf %230, %231 : vector<1x32xf32>
    %233 = vector.extract_strided_slice %88 {offsets = [0, 20], sizes = [1, 32], strides = [1, 1]} : vector<1x128xf32> to vector<1x32xf32>
    %234 = arith.addf %232, %233 : vector<1x32xf32>
    %cst_104 = arith.constant 0.000000e+00 : f32
    %235 = vector.broadcast %cst_104 : f32 to vector<1x32xf32>
    %236 = arith.maximumf %234, %235 : vector<1x32xf32>
    %cst_105 = arith.constant dense<0.000000e+00> : vector<1x128xf32>
    %237 = tpu.matmul %236, %87, %cst_105 {dimension_numbers = #tpu.dot_dimension_numbers<[1], [0], [0], [1], [0, 0, 1, 1], [], []>} : vector<1x32xf32>, vector<32x128xf32>, vector<1x128xf32> -> vector<1x128xf32>
    %238 = vector.extract_strided_slice %237 {offsets = [0, 0], sizes = [1, 32], strides = [1, 1]} : vector<1x128xf32> to vector<1x32xf32>
    %239 = vector.extract_strided_slice %214 {offsets = [0, 20], sizes = [1, 32], strides = [1, 1]} : vector<1x128xf32> to vector<1x32xf32>
    %240 = arith.addf %238, %239 : vector<1x32xf32>
    %241 = vector.extract_strided_slice %88 {offsets = [0, 52], sizes = [1, 32], strides = [1, 1]} : vector<1x128xf32> to vector<1x32xf32>
    %242 = arith.addf %240, %241 : vector<1x32xf32>
    %243 = arith.negf %242 : vector<1x32xf32>
    %244 = math.exp %243 : vector<1x32xf32>
    %cst_106 = arith.constant 1.000000e+00 : f32
    %245 = vector.broadcast %cst_106 : f32 to vector<1x32xf32>
    %246 = arith.addf %245, %244 : vector<1x32xf32>
    %247 = arith.divf %245, %246 : vector<1x32xf32>
    %248 = vector.extract_strided_slice %237 {offsets = [0, 32], sizes = [1, 32], strides = [1, 1]} : vector<1x128xf32> to vector<1x32xf32>
    %249 = vector.extract_strided_slice %214 {offsets = [0, 52], sizes = [1, 32], strides = [1, 1]} : vector<1x128xf32> to vector<1x32xf32>
    %250 = arith.addf %248, %249 : vector<1x32xf32>
    %251 = vector.extract_strided_slice %88 {offsets = [0, 84], sizes = [1, 32], strides = [1, 1]} : vector<1x128xf32> to vector<1x32xf32>
    %252 = arith.addf %250, %251 : vector<1x32xf32>
    %253 = arith.negf %252 : vector<1x32xf32>
    %254 = math.exp %253 : vector<1x32xf32>
    %cst_107 = arith.constant 1.000000e+00 : f32
    %255 = vector.broadcast %cst_107 : f32 to vector<1x32xf32>
    %256 = arith.addf %255, %254 : vector<1x32xf32>
    %257 = arith.divf %255, %256 : vector<1x32xf32>
    %258 = vector.extract_strided_slice %237 {offsets = [0, 64], sizes = [1, 32], strides = [1, 1]} : vector<1x128xf32> to vector<1x32xf32>
    %259 = vector.extract_strided_slice %89 {offsets = [0, 0], sizes = [1, 32], strides = [1, 1]} : vector<1x128xf32> to vector<1x32xf32>
    %260 = arith.addf %258, %259 : vector<1x32xf32>
    %261 = vector.extract_strided_slice %214 {offsets = [0, 84], sizes = [1, 32], strides = [1, 1]} : vector<1x128xf32> to vector<1x32xf32>
    %262 = vector.extract_strided_slice %89 {offsets = [0, 32], sizes = [1, 32], strides = [1, 1]} : vector<1x128xf32> to vector<1x32xf32>
    %263 = arith.addf %261, %262 : vector<1x32xf32>
    %264 = arith.mulf %247, %263 : vector<1x32xf32>
    %265 = arith.addf %260, %264 : vector<1x32xf32>
    %266 = math.tanh %265 : vector<1x32xf32>
    %cst_108 = arith.constant 1.000000e+00 : f32
    %267 = vector.broadcast %cst_108 : f32 to vector<1x32xf32>
    %268 = arith.subf %267, %257 : vector<1x32xf32>
    %269 = arith.mulf %268, %266 : vector<1x32xf32>
    %270 = arith.mulf %257, %210 : vector<1x32xf32>
    %271 = arith.addf %269, %270 : vector<1x32xf32>
    %c2_109 = arith.constant 2 : index
    %c0_110 = arith.constant 0 : index
    %272 = vector.load %arg8[%c2_109, %c0_110] : memref<20x32xf32, #tpu.memory_space<vmem>>, vector<1x32xf32>
    tpu.vector_store %arg8[%c2_109, %c0_110], %271 {strides = array<i32>} : memref<20x32xf32, #tpu.memory_space<vmem>>, vector<1x32xf32>,
    %c2_111 = arith.constant 2 : index
    %c0_112 = arith.constant 0 : index
    %273 = vector.load %arg9[%c2_111, %c0_112] : memref<20x20xf32, #tpu.memory_space<vmem>>, vector<1x20xf32>
    tpu.vector_store %arg9[%c2_111, %c0_112], %228 {strides = array<i32>} : memref<20x20xf32, #tpu.memory_space<vmem>>, vector<1x20xf32>,
    %274 = vector.extract_strided_slice %82 {offsets = [3, 0], sizes = [1, 128], strides = [1, 1]} : vector<20x128xf32> to vector<1x128xf32>
    %cst_113 = arith.constant dense<0.000000e+00> : vector<1x128xf32>
    %275 = tpu.matmul %271, %86, %cst_113 {dimension_numbers = #tpu.dot_dimension_numbers<[1], [0], [0], [1], [0, 0, 1, 1], [], []>} : vector<1x32xf32>, vector<32x128xf32>, vector<1x128xf32> -> vector<1x128xf32>
    %276 = vector.extract_strided_slice %274 {offsets = [0, 0], sizes = [1, 20], strides = [1, 1]} : vector<1x128xf32> to vector<1x20xf32>
    %277 = vector.extract_strided_slice %275 {offsets = [0, 0], sizes = [1, 20], strides = [1, 1]} : vector<1x128xf32> to vector<1x20xf32>
    %278 = arith.addf %276, %277 : vector<1x20xf32>
    %279 = vector.extract_strided_slice %88 {offsets = [0, 0], sizes = [1, 20], strides = [1, 1]} : vector<1x128xf32> to vector<1x20xf32>
    %280 = arith.addf %278, %279 : vector<1x20xf32>
    %cst_114 = arith.constant dense<0xFF800000> : vector<1xf32>
    %281 = vector.multi_reduction <maximumf>, %280, %cst_114 [1] : vector<1x20xf32> to vector<1xf32>
    %282 = vector.shape_cast %281 : vector<1xf32> to vector<1x1xf32>
    %283 = vector.broadcast %282 : vector<1x1xf32> to vector<1x20xf32>
    %284 = arith.subf %280, %283 : vector<1x20xf32>
    %285 = math.exp %284 : vector<1x20xf32>
    %cst_115 = arith.constant dense<0.000000e+00> : vector<1xf32>
    %286 = vector.multi_reduction <add>, %285, %cst_115 [1] : vector<1x20xf32> to vector<1xf32>
    %287 = vector.shape_cast %286 : vector<1xf32> to vector<1x1xf32>
    %288 = vector.broadcast %287 : vector<1x1xf32> to vector<1x20xf32>
    %289 = arith.divf %285, %288 : vector<1x20xf32>
    %cst_116 = arith.constant dense<0.000000e+00> : vector<1x128xf32>
    %290 = tpu.matmul %289, %85, %cst_116 {dimension_numbers = #tpu.dot_dimension_numbers<[1], [0], [0], [1], [0, 0, 1, 1], [], []>} : vector<1x20xf32>, vector<20x128xf32>, vector<1x128xf32> -> vector<1x128xf32>
    %291 = vector.extract_strided_slice %274 {offsets = [0, 20], sizes = [1, 32], strides = [1, 1]} : vector<1x128xf32> to vector<1x32xf32>
    %292 = vector.extract_strided_slice %290 {offsets = [0, 0], sizes = [1, 32], strides = [1, 1]} : vector<1x128xf32> to vector<1x32xf32>
    %293 = arith.addf %291, %292 : vector<1x32xf32>
    %294 = vector.extract_strided_slice %88 {offsets = [0, 20], sizes = [1, 32], strides = [1, 1]} : vector<1x128xf32> to vector<1x32xf32>
    %295 = arith.addf %293, %294 : vector<1x32xf32>
    %cst_117 = arith.constant 0.000000e+00 : f32
    %296 = vector.broadcast %cst_117 : f32 to vector<1x32xf32>
    %297 = arith.maximumf %295, %296 : vector<1x32xf32>
    %cst_118 = arith.constant dense<0.000000e+00> : vector<1x128xf32>
    %298 = tpu.matmul %297, %87, %cst_118 {dimension_numbers = #tpu.dot_dimension_numbers<[1], [0], [0], [1], [0, 0, 1, 1], [], []>} : vector<1x32xf32>, vector<32x128xf32>, vector<1x128xf32> -> vector<1x128xf32>
    %299 = vector.extract_strided_slice %298 {offsets = [0, 0], sizes = [1, 32], strides = [1, 1]} : vector<1x128xf32> to vector<1x32xf32>
    %300 = vector.extract_strided_slice %275 {offsets = [0, 20], sizes = [1, 32], strides = [1, 1]} : vector<1x128xf32> to vector<1x32xf32>
    %301 = arith.addf %299, %300 : vector<1x32xf32>
    %302 = vector.extract_strided_slice %88 {offsets = [0, 52], sizes = [1, 32], strides = [1, 1]} : vector<1x128xf32> to vector<1x32xf32>
    %303 = arith.addf %301, %302 : vector<1x32xf32>
    %304 = arith.negf %303 : vector<1x32xf32>
    %305 = math.exp %304 : vector<1x32xf32>
    %cst_119 = arith.constant 1.000000e+00 : f32
    %306 = vector.broadcast %cst_119 : f32 to vector<1x32xf32>
    %307 = arith.addf %306, %305 : vector<1x32xf32>
    %308 = arith.divf %306, %307 : vector<1x32xf32>
    %309 = vector.extract_strided_slice %298 {offsets = [0, 32], sizes = [1, 32], strides = [1, 1]} : vector<1x128xf32> to vector<1x32xf32>
    %310 = vector.extract_strided_slice %275 {offsets = [0, 52], sizes = [1, 32], strides = [1, 1]} : vector<1x128xf32> to vector<1x32xf32>
    %311 = arith.addf %309, %310 : vector<1x32xf32>
    %312 = vector.extract_strided_slice %88 {offsets = [0, 84], sizes = [1, 32], strides = [1, 1]} : vector<1x128xf32> to vector<1x32xf32>
    %313 = arith.addf %311, %312 : vector<1x32xf32>
    %314 = arith.negf %313 : vector<1x32xf32>
    %315 = math.exp %314 : vector<1x32xf32>
    %cst_120 = arith.constant 1.000000e+00 : f32
    %316 = vector.broadcast %cst_120 : f32 to vector<1x32xf32>
    %317 = arith.addf %316, %315 : vector<1x32xf32>
    %318 = arith.divf %316, %317 : vector<1x32xf32>
    %319 = vector.extract_strided_slice %298 {offsets = [0, 64], sizes = [1, 32], strides = [1, 1]} : vector<1x128xf32> to vector<1x32xf32>
    %320 = vector.extract_strided_slice %89 {offsets = [0, 0], sizes = [1, 32], strides = [1, 1]} : vector<1x128xf32> to vector<1x32xf32>
    %321 = arith.addf %319, %320 : vector<1x32xf32>
    %322 = vector.extract_strided_slice %275 {offsets = [0, 84], sizes = [1, 32], strides = [1, 1]} : vector<1x128xf32> to vector<1x32xf32>
    %323 = vector.extract_strided_slice %89 {offsets = [0, 32], sizes = [1, 32], strides = [1, 1]} : vector<1x128xf32> to vector<1x32xf32>
    %324 = arith.addf %322, %323 : vector<1x32xf32>
    %325 = arith.mulf %308, %324 : vector<1x32xf32>
    %326 = arith.addf %321, %325 : vector<1x32xf32>
    %327 = math.tanh %326 : vector<1x32xf32>
    %cst_121 = arith.constant 1.000000e+00 : f32
    %328 = vector.broadcast %cst_121 : f32 to vector<1x32xf32>
    %329 = arith.subf %328, %318 : vector<1x32xf32>
    %330 = arith.mulf %329, %327 : vector<1x32xf32>
    %331 = arith.mulf %318, %271 : vector<1x32xf32>
    %332 = arith.addf %330, %331 : vector<1x32xf32>
    %c3_122 = arith.constant 3 : index
    %c0_123 = arith.constant 0 : index
    %333 = vector.load %arg8[%c3_122, %c0_123] : memref<20x32xf32, #tpu.memory_space<vmem>>, vector<1x32xf32>
    tpu.vector_store %arg8[%c3_122, %c0_123], %332 {strides = array<i32>} : memref<20x32xf32, #tpu.memory_space<vmem>>, vector<1x32xf32>,
    %c3_124 = arith.constant 3 : index
    %c0_125 = arith.constant 0 : index
    %334 = vector.load %arg9[%c3_124, %c0_125] : memref<20x20xf32, #tpu.memory_space<vmem>>, vector<1x20xf32>
    tpu.vector_store %arg9[%c3_124, %c0_125], %289 {strides = array<i32>} : memref<20x20xf32, #tpu.memory_space<vmem>>, vector<1x20xf32>,
    %335 = vector.extract_strided_slice %82 {offsets = [4, 0], sizes = [1, 128], strides = [1, 1]} : vector<20x128xf32> to vector<1x128xf32>
    %cst_126 = arith.constant dense<0.000000e+00> : vector<1x128xf32>
    %336 = tpu.matmul %332, %86, %cst_126 {dimension_numbers = #tpu.dot_dimension_numbers<[1], [0], [0], [1], [0, 0, 1, 1], [], []>} : vector<1x32xf32>, vector<32x128xf32>, vector<1x128xf32> -> vector<1x128xf32>
    %337 = vector.extract_strided_slice %335 {offsets = [0, 0], sizes = [1, 20], strides = [1, 1]} : vector<1x128xf32> to vector<1x20xf32>
    %338 = vector.extract_strided_slice %336 {offsets = [0, 0], sizes = [1, 20], strides = [1, 1]} : vector<1x128xf32> to vector<1x20xf32>
    %339 = arith.addf %337, %338 : vector<1x20xf32>
    %340 = vector.extract_strided_slice %88 {offsets = [0, 0], sizes = [1, 20], strides = [1, 1]} : vector<1x128xf32> to vector<1x20xf32>
    %341 = arith.addf %339, %340 : vector<1x20xf32>
    %cst_127 = arith.constant dense<0xFF800000> : vector<1xf32>
    %342 = vector.multi_reduction <maximumf>, %341, %cst_127 [1] : vector<1x20xf32> to vector<1xf32>
    %343 = vector.shape_cast %342 : vector<1xf32> to vector<1x1xf32>
    %344 = vector.broadcast %343 : vector<1x1xf32> to vector<1x20xf32>
    %345 = arith.subf %341, %344 : vector<1x20xf32>
    %346 = math.exp %345 : vector<1x20xf32>
    %cst_128 = arith.constant dense<0.000000e+00> : vector<1xf32>
    %347 = vector.multi_reduction <add>, %346, %cst_128 [1] : vector<1x20xf32> to vector<1xf32>
    %348 = vector.shape_cast %347 : vector<1xf32> to vector<1x1xf32>
    %349 = vector.broadcast %348 : vector<1x1xf32> to vector<1x20xf32>
    %350 = arith.divf %346, %349 : vector<1x20xf32>
    %cst_129 = arith.constant dense<0.000000e+00> : vector<1x128xf32>
    %351 = tpu.matmul %350, %85, %cst_129 {dimension_numbers = #tpu.dot_dimension_numbers<[1], [0], [0], [1], [0, 0, 1, 1], [], []>} : vector<1x20xf32>, vector<20x128xf32>, vector<1x128xf32> -> vector<1x128xf32>
    %352 = vector.extract_strided_slice %335 {offsets = [0, 20], sizes = [1, 32], strides = [1, 1]} : vector<1x128xf32> to vector<1x32xf32>
    %353 = vector.extract_strided_slice %351 {offsets = [0, 0], sizes = [1, 32], strides = [1, 1]} : vector<1x128xf32> to vector<1x32xf32>
    %354 = arith.addf %352, %353 : vector<1x32xf32>
    %355 = vector.extract_strided_slice %88 {offsets = [0, 20], sizes = [1, 32], strides = [1, 1]} : vector<1x128xf32> to vector<1x32xf32>
    %356 = arith.addf %354, %355 : vector<1x32xf32>
    %cst_130 = arith.constant 0.000000e+00 : f32
    %357 = vector.broadcast %cst_130 : f32 to vector<1x32xf32>
    %358 = arith.maximumf %356, %357 : vector<1x32xf32>
    %cst_131 = arith.constant dense<0.000000e+00> : vector<1x128xf32>
    %359 = tpu.matmul %358, %87, %cst_131 {dimension_numbers = #tpu.dot_dimension_numbers<[1], [0], [0], [1], [0, 0, 1, 1], [], []>} : vector<1x32xf32>, vector<32x128xf32>, vector<1x128xf32> -> vector<1x128xf32>
    %360 = vector.extract_strided_slice %359 {offsets = [0, 0], sizes = [1, 32], strides = [1, 1]} : vector<1x128xf32> to vector<1x32xf32>
    %361 = vector.extract_strided_slice %336 {offsets = [0, 20], sizes = [1, 32], strides = [1, 1]} : vector<1x128xf32> to vector<1x32xf32>
    %362 = arith.addf %360, %361 : vector<1x32xf32>
    %363 = vector.extract_strided_slice %88 {offsets = [0, 52], sizes = [1, 32], strides = [1, 1]} : vector<1x128xf32> to vector<1x32xf32>
    %364 = arith.addf %362, %363 : vector<1x32xf32>
    %365 = arith.negf %364 : vector<1x32xf32>
    %366 = math.exp %365 : vector<1x32xf32>
    %cst_132 = arith.constant 1.000000e+00 : f32
    %367 = vector.broadcast %cst_132 : f32 to vector<1x32xf32>
    %368 = arith.addf %367, %366 : vector<1x32xf32>
    %369 = arith.divf %367, %368 : vector<1x32xf32>
    %370 = vector.extract_strided_slice %359 {offsets = [0, 32], sizes = [1, 32], strides = [1, 1]} : vector<1x128xf32> to vector<1x32xf32>
    %371 = vector.extract_strided_slice %336 {offsets = [0, 52], sizes = [1, 32], strides = [1, 1]} : vector<1x128xf32> to vector<1x32xf32>
    %372 = arith.addf %370, %371 : vector<1x32xf32>
    %373 = vector.extract_strided_slice %88 {offsets = [0, 84], sizes = [1, 32], strides = [1, 1]} : vector<1x128xf32> to vector<1x32xf32>
    %374 = arith.addf %372, %373 : vector<1x32xf32>
    %375 = arith.negf %374 : vector<1x32xf32>
    %376 = math.exp %375 : vector<1x32xf32>
    %cst_133 = arith.constant 1.000000e+00 : f32
    %377 = vector.broadcast %cst_133 : f32 to vector<1x32xf32>
    %378 = arith.addf %377, %376 : vector<1x32xf32>
    %379 = arith.divf %377, %378 : vector<1x32xf32>
    %380 = vector.extract_strided_slice %359 {offsets = [0, 64], sizes = [1, 32], strides = [1, 1]} : vector<1x128xf32> to vector<1x32xf32>
    %381 = vector.extract_strided_slice %89 {offsets = [0, 0], sizes = [1, 32], strides = [1, 1]} : vector<1x128xf32> to vector<1x32xf32>
    %382 = arith.addf %380, %381 : vector<1x32xf32>
    %383 = vector.extract_strided_slice %336 {offsets = [0, 84], sizes = [1, 32], strides = [1, 1]} : vector<1x128xf32> to vector<1x32xf32>
    %384 = vector.extract_strided_slice %89 {offsets = [0, 32], sizes = [1, 32], strides = [1, 1]} : vector<1x128xf32> to vector<1x32xf32>
    %385 = arith.addf %383, %384 : vector<1x32xf32>
    %386 = arith.mulf %369, %385 : vector<1x32xf32>
    %387 = arith.addf %382, %386 : vector<1x32xf32>
    %388 = math.tanh %387 : vector<1x32xf32>
    %cst_134 = arith.constant 1.000000e+00 : f32
    %389 = vector.broadcast %cst_134 : f32 to vector<1x32xf32>
    %390 = arith.subf %389, %379 : vector<1x32xf32>
    %391 = arith.mulf %390, %388 : vector<1x32xf32>
    %392 = arith.mulf %379, %332 : vector<1x32xf32>
    %393 = arith.addf %391, %392 : vector<1x32xf32>
    %c4_135 = arith.constant 4 : index
    %c0_136 = arith.constant 0 : index
    %394 = vector.load %arg8[%c4_135, %c0_136] : memref<20x32xf32, #tpu.memory_space<vmem>>, vector<1x32xf32>
    tpu.vector_store %arg8[%c4_135, %c0_136], %393 {strides = array<i32>} : memref<20x32xf32, #tpu.memory_space<vmem>>, vector<1x32xf32>,
    %c4_137 = arith.constant 4 : index
    %c0_138 = arith.constant 0 : index
    %395 = vector.load %arg9[%c4_137, %c0_138] : memref<20x20xf32, #tpu.memory_space<vmem>>, vector<1x20xf32>
    tpu.vector_store %arg9[%c4_137, %c0_138], %350 {strides = array<i32>} : memref<20x20xf32, #tpu.memory_space<vmem>>, vector<1x20xf32>,
    %396 = vector.extract_strided_slice %82 {offsets = [5, 0], sizes = [1, 128], strides = [1, 1]} : vector<20x128xf32> to vector<1x128xf32>
    %cst_139 = arith.constant dense<0.000000e+00> : vector<1x128xf32>
    %397 = tpu.matmul %393, %86, %cst_139 {dimension_numbers = #tpu.dot_dimension_numbers<[1], [0], [0], [1], [0, 0, 1, 1], [], []>} : vector<1x32xf32>, vector<32x128xf32>, vector<1x128xf32> -> vector<1x128xf32>
    %398 = vector.extract_strided_slice %396 {offsets = [0, 0], sizes = [1, 20], strides = [1, 1]} : vector<1x128xf32> to vector<1x20xf32>
    %399 = vector.extract_strided_slice %397 {offsets = [0, 0], sizes = [1, 20], strides = [1, 1]} : vector<1x128xf32> to vector<1x20xf32>
    %400 = arith.addf %398, %399 : vector<1x20xf32>
    %401 = vector.extract_strided_slice %88 {offsets = [0, 0], sizes = [1, 20], strides = [1, 1]} : vector<1x128xf32> to vector<1x20xf32>
    %402 = arith.addf %400, %401 : vector<1x20xf32>
    %cst_140 = arith.constant dense<0xFF800000> : vector<1xf32>
    %403 = vector.multi_reduction <maximumf>, %402, %cst_140 [1] : vector<1x20xf32> to vector<1xf32>
    %404 = vector.shape_cast %403 : vector<1xf32> to vector<1x1xf32>
    %405 = vector.broadcast %404 : vector<1x1xf32> to vector<1x20xf32>
    %406 = arith.subf %402, %405 : vector<1x20xf32>
    %407 = math.exp %406 : vector<1x20xf32>
    %cst_141 = arith.constant dense<0.000000e+00> : vector<1xf32>
    %408 = vector.multi_reduction <add>, %407, %cst_141 [1] : vector<1x20xf32> to vector<1xf32>
    %409 = vector.shape_cast %408 : vector<1xf32> to vector<1x1xf32>
    %410 = vector.broadcast %409 : vector<1x1xf32> to vector<1x20xf32>
    %411 = arith.divf %407, %410 : vector<1x20xf32>
    %cst_142 = arith.constant dense<0.000000e+00> : vector<1x128xf32>
    %412 = tpu.matmul %411, %85, %cst_142 {dimension_numbers = #tpu.dot_dimension_numbers<[1], [0], [0], [1], [0, 0, 1, 1], [], []>} : vector<1x20xf32>, vector<20x128xf32>, vector<1x128xf32> -> vector<1x128xf32>
    %413 = vector.extract_strided_slice %396 {offsets = [0, 20], sizes = [1, 32], strides = [1, 1]} : vector<1x128xf32> to vector<1x32xf32>
    %414 = vector.extract_strided_slice %412 {offsets = [0, 0], sizes = [1, 32], strides = [1, 1]} : vector<1x128xf32> to vector<1x32xf32>
    %415 = arith.addf %413, %414 : vector<1x32xf32>
    %416 = vector.extract_strided_slice %88 {offsets = [0, 20], sizes = [1, 32], strides = [1, 1]} : vector<1x128xf32> to vector<1x32xf32>
    %417 = arith.addf %415, %416 : vector<1x32xf32>
    %cst_143 = arith.constant 0.000000e+00 : f32
    %418 = vector.broadcast %cst_143 : f32 to vector<1x32xf32>
    %419 = arith.maximumf %417, %418 : vector<1x32xf32>
    %cst_144 = arith.constant dense<0.000000e+00> : vector<1x128xf32>
    %420 = tpu.matmul %419, %87, %cst_144 {dimension_numbers = #tpu.dot_dimension_numbers<[1], [0], [0], [1], [0, 0, 1, 1], [], []>} : vector<1x32xf32>, vector<32x128xf32>, vector<1x128xf32> -> vector<1x128xf32>
    %421 = vector.extract_strided_slice %420 {offsets = [0, 0], sizes = [1, 32], strides = [1, 1]} : vector<1x128xf32> to vector<1x32xf32>
    %422 = vector.extract_strided_slice %397 {offsets = [0, 20], sizes = [1, 32], strides = [1, 1]} : vector<1x128xf32> to vector<1x32xf32>
    %423 = arith.addf %421, %422 : vector<1x32xf32>
    %424 = vector.extract_strided_slice %88 {offsets = [0, 52], sizes = [1, 32], strides = [1, 1]} : vector<1x128xf32> to vector<1x32xf32>
    %425 = arith.addf %423, %424 : vector<1x32xf32>
    %426 = arith.negf %425 : vector<1x32xf32>
    %427 = math.exp %426 : vector<1x32xf32>
    %cst_145 = arith.constant 1.000000e+00 : f32
    %428 = vector.broadcast %cst_145 : f32 to vector<1x32xf32>
    %429 = arith.addf %428, %427 : vector<1x32xf32>
    %430 = arith.divf %428, %429 : vector<1x32xf32>
    %431 = vector.extract_strided_slice %420 {offsets = [0, 32], sizes = [1, 32], strides = [1, 1]} : vector<1x128xf32> to vector<1x32xf32>
    %432 = vector.extract_strided_slice %397 {offsets = [0, 52], sizes = [1, 32], strides = [1, 1]} : vector<1x128xf32> to vector<1x32xf32>
    %433 = arith.addf %431, %432 : vector<1x32xf32>
    %434 = vector.extract_strided_slice %88 {offsets = [0, 84], sizes = [1, 32], strides = [1, 1]} : vector<1x128xf32> to vector<1x32xf32>
    %435 = arith.addf %433, %434 : vector<1x32xf32>
    %436 = arith.negf %435 : vector<1x32xf32>
    %437 = math.exp %436 : vector<1x32xf32>
    %cst_146 = arith.constant 1.000000e+00 : f32
    %438 = vector.broadcast %cst_146 : f32 to vector<1x32xf32>
    %439 = arith.addf %438, %437 : vector<1x32xf32>
    %440 = arith.divf %438, %439 : vector<1x32xf32>
    %441 = vector.extract_strided_slice %420 {offsets = [0, 64], sizes = [1, 32], strides = [1, 1]} : vector<1x128xf32> to vector<1x32xf32>
    %442 = vector.extract_strided_slice %89 {offsets = [0, 0], sizes = [1, 32], strides = [1, 1]} : vector<1x128xf32> to vector<1x32xf32>
    %443 = arith.addf %441, %442 : vector<1x32xf32>
    %444 = vector.extract_strided_slice %397 {offsets = [0, 84], sizes = [1, 32], strides = [1, 1]} : vector<1x128xf32> to vector<1x32xf32>
    %445 = vector.extract_strided_slice %89 {offsets = [0, 32], sizes = [1, 32], strides = [1, 1]} : vector<1x128xf32> to vector<1x32xf32>
    %446 = arith.addf %444, %445 : vector<1x32xf32>
    %447 = arith.mulf %430, %446 : vector<1x32xf32>
    %448 = arith.addf %443, %447 : vector<1x32xf32>
    %449 = math.tanh %448 : vector<1x32xf32>
    %cst_147 = arith.constant 1.000000e+00 : f32
    %450 = vector.broadcast %cst_147 : f32 to vector<1x32xf32>
    %451 = arith.subf %450, %440 : vector<1x32xf32>
    %452 = arith.mulf %451, %449 : vector<1x32xf32>
    %453 = arith.mulf %440, %393 : vector<1x32xf32>
    %454 = arith.addf %452, %453 : vector<1x32xf32>
    %c5_148 = arith.constant 5 : index
    %c0_149 = arith.constant 0 : index
    %455 = vector.load %arg8[%c5_148, %c0_149] : memref<20x32xf32, #tpu.memory_space<vmem>>, vector<1x32xf32>
    tpu.vector_store %arg8[%c5_148, %c0_149], %454 {strides = array<i32>} : memref<20x32xf32, #tpu.memory_space<vmem>>, vector<1x32xf32>,
    %c5_150 = arith.constant 5 : index
    %c0_151 = arith.constant 0 : index
    %456 = vector.load %arg9[%c5_150, %c0_151] : memref<20x20xf32, #tpu.memory_space<vmem>>, vector<1x20xf32>
    tpu.vector_store %arg9[%c5_150, %c0_151], %411 {strides = array<i32>} : memref<20x20xf32, #tpu.memory_space<vmem>>, vector<1x20xf32>,
    %457 = vector.extract_strided_slice %82 {offsets = [6, 0], sizes = [1, 128], strides = [1, 1]} : vector<20x128xf32> to vector<1x128xf32>
    %cst_152 = arith.constant dense<0.000000e+00> : vector<1x128xf32>
    %458 = tpu.matmul %454, %86, %cst_152 {dimension_numbers = #tpu.dot_dimension_numbers<[1], [0], [0], [1], [0, 0, 1, 1], [], []>} : vector<1x32xf32>, vector<32x128xf32>, vector<1x128xf32> -> vector<1x128xf32>
    %459 = vector.extract_strided_slice %457 {offsets = [0, 0], sizes = [1, 20], strides = [1, 1]} : vector<1x128xf32> to vector<1x20xf32>
    %460 = vector.extract_strided_slice %458 {offsets = [0, 0], sizes = [1, 20], strides = [1, 1]} : vector<1x128xf32> to vector<1x20xf32>
    %461 = arith.addf %459, %460 : vector<1x20xf32>
    %462 = vector.extract_strided_slice %88 {offsets = [0, 0], sizes = [1, 20], strides = [1, 1]} : vector<1x128xf32> to vector<1x20xf32>
    %463 = arith.addf %461, %462 : vector<1x20xf32>
    %cst_153 = arith.constant dense<0xFF800000> : vector<1xf32>
    %464 = vector.multi_reduction <maximumf>, %463, %cst_153 [1] : vector<1x20xf32> to vector<1xf32>
    %465 = vector.shape_cast %464 : vector<1xf32> to vector<1x1xf32>
    %466 = vector.broadcast %465 : vector<1x1xf32> to vector<1x20xf32>
    %467 = arith.subf %463, %466 : vector<1x20xf32>
    %468 = math.exp %467 : vector<1x20xf32>
    %cst_154 = arith.constant dense<0.000000e+00> : vector<1xf32>
    %469 = vector.multi_reduction <add>, %468, %cst_154 [1] : vector<1x20xf32> to vector<1xf32>
    %470 = vector.shape_cast %469 : vector<1xf32> to vector<1x1xf32>
    %471 = vector.broadcast %470 : vector<1x1xf32> to vector<1x20xf32>
    %472 = arith.divf %468, %471 : vector<1x20xf32>
    %cst_155 = arith.constant dense<0.000000e+00> : vector<1x128xf32>
    %473 = tpu.matmul %472, %85, %cst_155 {dimension_numbers = #tpu.dot_dimension_numbers<[1], [0], [0], [1], [0, 0, 1, 1], [], []>} : vector<1x20xf32>, vector<20x128xf32>, vector<1x128xf32> -> vector<1x128xf32>
    %474 = vector.extract_strided_slice %457 {offsets = [0, 20], sizes = [1, 32], strides = [1, 1]} : vector<1x128xf32> to vector<1x32xf32>
    %475 = vector.extract_strided_slice %473 {offsets = [0, 0], sizes = [1, 32], strides = [1, 1]} : vector<1x128xf32> to vector<1x32xf32>
    %476 = arith.addf %474, %475 : vector<1x32xf32>
    %477 = vector.extract_strided_slice %88 {offsets = [0, 20], sizes = [1, 32], strides = [1, 1]} : vector<1x128xf32> to vector<1x32xf32>
    %478 = arith.addf %476, %477 : vector<1x32xf32>
    %cst_156 = arith.constant 0.000000e+00 : f32
    %479 = vector.broadcast %cst_156 : f32 to vector<1x32xf32>
    %480 = arith.maximumf %478, %479 : vector<1x32xf32>
    %cst_157 = arith.constant dense<0.000000e+00> : vector<1x128xf32>
    %481 = tpu.matmul %480, %87, %cst_157 {dimension_numbers = #tpu.dot_dimension_numbers<[1], [0], [0], [1], [0, 0, 1, 1], [], []>} : vector<1x32xf32>, vector<32x128xf32>, vector<1x128xf32> -> vector<1x128xf32>
    %482 = vector.extract_strided_slice %481 {offsets = [0, 0], sizes = [1, 32], strides = [1, 1]} : vector<1x128xf32> to vector<1x32xf32>
    %483 = vector.extract_strided_slice %458 {offsets = [0, 20], sizes = [1, 32], strides = [1, 1]} : vector<1x128xf32> to vector<1x32xf32>
    %484 = arith.addf %482, %483 : vector<1x32xf32>
    %485 = vector.extract_strided_slice %88 {offsets = [0, 52], sizes = [1, 32], strides = [1, 1]} : vector<1x128xf32> to vector<1x32xf32>
    %486 = arith.addf %484, %485 : vector<1x32xf32>
    %487 = arith.negf %486 : vector<1x32xf32>
    %488 = math.exp %487 : vector<1x32xf32>
    %cst_158 = arith.constant 1.000000e+00 : f32
    %489 = vector.broadcast %cst_158 : f32 to vector<1x32xf32>
    %490 = arith.addf %489, %488 : vector<1x32xf32>
    %491 = arith.divf %489, %490 : vector<1x32xf32>
    %492 = vector.extract_strided_slice %481 {offsets = [0, 32], sizes = [1, 32], strides = [1, 1]} : vector<1x128xf32> to vector<1x32xf32>
    %493 = vector.extract_strided_slice %458 {offsets = [0, 52], sizes = [1, 32], strides = [1, 1]} : vector<1x128xf32> to vector<1x32xf32>
    %494 = arith.addf %492, %493 : vector<1x32xf32>
    %495 = vector.extract_strided_slice %88 {offsets = [0, 84], sizes = [1, 32], strides = [1, 1]} : vector<1x128xf32> to vector<1x32xf32>
    %496 = arith.addf %494, %495 : vector<1x32xf32>
    %497 = arith.negf %496 : vector<1x32xf32>
    %498 = math.exp %497 : vector<1x32xf32>
    %cst_159 = arith.constant 1.000000e+00 : f32
    %499 = vector.broadcast %cst_159 : f32 to vector<1x32xf32>
    %500 = arith.addf %499, %498 : vector<1x32xf32>
    %501 = arith.divf %499, %500 : vector<1x32xf32>
    %502 = vector.extract_strided_slice %481 {offsets = [0, 64], sizes = [1, 32], strides = [1, 1]} : vector<1x128xf32> to vector<1x32xf32>
    %503 = vector.extract_strided_slice %89 {offsets = [0, 0], sizes = [1, 32], strides = [1, 1]} : vector<1x128xf32> to vector<1x32xf32>
    %504 = arith.addf %502, %503 : vector<1x32xf32>
    %505 = vector.extract_strided_slice %458 {offsets = [0, 84], sizes = [1, 32], strides = [1, 1]} : vector<1x128xf32> to vector<1x32xf32>
    %506 = vector.extract_strided_slice %89 {offsets = [0, 32], sizes = [1, 32], strides = [1, 1]} : vector<1x128xf32> to vector<1x32xf32>
    %507 = arith.addf %505, %506 : vector<1x32xf32>
    %508 = arith.mulf %491, %507 : vector<1x32xf32>
    %509 = arith.addf %504, %508 : vector<1x32xf32>
    %510 = math.tanh %509 : vector<1x32xf32>
    %cst_160 = arith.constant 1.000000e+00 : f32
    %511 = vector.broadcast %cst_160 : f32 to vector<1x32xf32>
    %512 = arith.subf %511, %501 : vector<1x32xf32>
    %513 = arith.mulf %512, %510 : vector<1x32xf32>
    %514 = arith.mulf %501, %454 : vector<1x32xf32>
    %515 = arith.addf %513, %514 : vector<1x32xf32>
    %c6_161 = arith.constant 6 : index
    %c0_162 = arith.constant 0 : index
    %516 = vector.load %arg8[%c6_161, %c0_162] : memref<20x32xf32, #tpu.memory_space<vmem>>, vector<1x32xf32>
    tpu.vector_store %arg8[%c6_161, %c0_162], %515 {strides = array<i32>} : memref<20x32xf32, #tpu.memory_space<vmem>>, vector<1x32xf32>,
    %c6_163 = arith.constant 6 : index
    %c0_164 = arith.constant 0 : index
    %517 = vector.load %arg9[%c6_163, %c0_164] : memref<20x20xf32, #tpu.memory_space<vmem>>, vector<1x20xf32>
    tpu.vector_store %arg9[%c6_163, %c0_164], %472 {strides = array<i32>} : memref<20x20xf32, #tpu.memory_space<vmem>>, vector<1x20xf32>,
    %518 = vector.extract_strided_slice %82 {offsets = [7, 0], sizes = [1, 128], strides = [1, 1]} : vector<20x128xf32> to vector<1x128xf32>
    %cst_165 = arith.constant dense<0.000000e+00> : vector<1x128xf32>
    %519 = tpu.matmul %515, %86, %cst_165 {dimension_numbers = #tpu.dot_dimension_numbers<[1], [0], [0], [1], [0, 0, 1, 1], [], []>} : vector<1x32xf32>, vector<32x128xf32>, vector<1x128xf32> -> vector<1x128xf32>
    %520 = vector.extract_strided_slice %518 {offsets = [0, 0], sizes = [1, 20], strides = [1, 1]} : vector<1x128xf32> to vector<1x20xf32>
    %521 = vector.extract_strided_slice %519 {offsets = [0, 0], sizes = [1, 20], strides = [1, 1]} : vector<1x128xf32> to vector<1x20xf32>
    %522 = arith.addf %520, %521 : vector<1x20xf32>
    %523 = vector.extract_strided_slice %88 {offsets = [0, 0], sizes = [1, 20], strides = [1, 1]} : vector<1x128xf32> to vector<1x20xf32>
    %524 = arith.addf %522, %523 : vector<1x20xf32>
    %cst_166 = arith.constant dense<0xFF800000> : vector<1xf32>
    %525 = vector.multi_reduction <maximumf>, %524, %cst_166 [1] : vector<1x20xf32> to vector<1xf32>
    %526 = vector.shape_cast %525 : vector<1xf32> to vector<1x1xf32>
    %527 = vector.broadcast %526 : vector<1x1xf32> to vector<1x20xf32>
    %528 = arith.subf %524, %527 : vector<1x20xf32>
    %529 = math.exp %528 : vector<1x20xf32>
    %cst_167 = arith.constant dense<0.000000e+00> : vector<1xf32>
    %530 = vector.multi_reduction <add>, %529, %cst_167 [1] : vector<1x20xf32> to vector<1xf32>
    %531 = vector.shape_cast %530 : vector<1xf32> to vector<1x1xf32>
    %532 = vector.broadcast %531 : vector<1x1xf32> to vector<1x20xf32>
    %533 = arith.divf %529, %532 : vector<1x20xf32>
    %cst_168 = arith.constant dense<0.000000e+00> : vector<1x128xf32>
    %534 = tpu.matmul %533, %85, %cst_168 {dimension_numbers = #tpu.dot_dimension_numbers<[1], [0], [0], [1], [0, 0, 1, 1], [], []>} : vector<1x20xf32>, vector<20x128xf32>, vector<1x128xf32> -> vector<1x128xf32>
    %535 = vector.extract_strided_slice %518 {offsets = [0, 20], sizes = [1, 32], strides = [1, 1]} : vector<1x128xf32> to vector<1x32xf32>
    %536 = vector.extract_strided_slice %534 {offsets = [0, 0], sizes = [1, 32], strides = [1, 1]} : vector<1x128xf32> to vector<1x32xf32>
    %537 = arith.addf %535, %536 : vector<1x32xf32>
    %538 = vector.extract_strided_slice %88 {offsets = [0, 20], sizes = [1, 32], strides = [1, 1]} : vector<1x128xf32> to vector<1x32xf32>
    %539 = arith.addf %537, %538 : vector<1x32xf32>
    %cst_169 = arith.constant 0.000000e+00 : f32
    %540 = vector.broadcast %cst_169 : f32 to vector<1x32xf32>
    %541 = arith.maximumf %539, %540 : vector<1x32xf32>
    %cst_170 = arith.constant dense<0.000000e+00> : vector<1x128xf32>
    %542 = tpu.matmul %541, %87, %cst_170 {dimension_numbers = #tpu.dot_dimension_numbers<[1], [0], [0], [1], [0, 0, 1, 1], [], []>} : vector<1x32xf32>, vector<32x128xf32>, vector<1x128xf32> -> vector<1x128xf32>
    %543 = vector.extract_strided_slice %542 {offsets = [0, 0], sizes = [1, 32], strides = [1, 1]} : vector<1x128xf32> to vector<1x32xf32>
    %544 = vector.extract_strided_slice %519 {offsets = [0, 20], sizes = [1, 32], strides = [1, 1]} : vector<1x128xf32> to vector<1x32xf32>
    %545 = arith.addf %543, %544 : vector<1x32xf32>
    %546 = vector.extract_strided_slice %88 {offsets = [0, 52], sizes = [1, 32], strides = [1, 1]} : vector<1x128xf32> to vector<1x32xf32>
    %547 = arith.addf %545, %546 : vector<1x32xf32>
    %548 = arith.negf %547 : vector<1x32xf32>
    %549 = math.exp %548 : vector<1x32xf32>
    %cst_171 = arith.constant 1.000000e+00 : f32
    %550 = vector.broadcast %cst_171 : f32 to vector<1x32xf32>
    %551 = arith.addf %550, %549 : vector<1x32xf32>
    %552 = arith.divf %550, %551 : vector<1x32xf32>
    %553 = vector.extract_strided_slice %542 {offsets = [0, 32], sizes = [1, 32], strides = [1, 1]} : vector<1x128xf32> to vector<1x32xf32>
    %554 = vector.extract_strided_slice %519 {offsets = [0, 52], sizes = [1, 32], strides = [1, 1]} : vector<1x128xf32> to vector<1x32xf32>
    %555 = arith.addf %553, %554 : vector<1x32xf32>
    %556 = vector.extract_strided_slice %88 {offsets = [0, 84], sizes = [1, 32], strides = [1, 1]} : vector<1x128xf32> to vector<1x32xf32>
    %557 = arith.addf %555, %556 : vector<1x32xf32>
    %558 = arith.negf %557 : vector<1x32xf32>
    %559 = math.exp %558 : vector<1x32xf32>
    %cst_172 = arith.constant 1.000000e+00 : f32
    %560 = vector.broadcast %cst_172 : f32 to vector<1x32xf32>
    %561 = arith.addf %560, %559 : vector<1x32xf32>
    %562 = arith.divf %560, %561 : vector<1x32xf32>
    %563 = vector.extract_strided_slice %542 {offsets = [0, 64], sizes = [1, 32], strides = [1, 1]} : vector<1x128xf32> to vector<1x32xf32>
    %564 = vector.extract_strided_slice %89 {offsets = [0, 0], sizes = [1, 32], strides = [1, 1]} : vector<1x128xf32> to vector<1x32xf32>
    %565 = arith.addf %563, %564 : vector<1x32xf32>
    %566 = vector.extract_strided_slice %519 {offsets = [0, 84], sizes = [1, 32], strides = [1, 1]} : vector<1x128xf32> to vector<1x32xf32>
    %567 = vector.extract_strided_slice %89 {offsets = [0, 32], sizes = [1, 32], strides = [1, 1]} : vector<1x128xf32> to vector<1x32xf32>
    %568 = arith.addf %566, %567 : vector<1x32xf32>
    %569 = arith.mulf %552, %568 : vector<1x32xf32>
    %570 = arith.addf %565, %569 : vector<1x32xf32>
    %571 = math.tanh %570 : vector<1x32xf32>
    %cst_173 = arith.constant 1.000000e+00 : f32
    %572 = vector.broadcast %cst_173 : f32 to vector<1x32xf32>
    %573 = arith.subf %572, %562 : vector<1x32xf32>
    %574 = arith.mulf %573, %571 : vector<1x32xf32>
    %575 = arith.mulf %562, %515 : vector<1x32xf32>
    %576 = arith.addf %574, %575 : vector<1x32xf32>
    %c7_174 = arith.constant 7 : index
    %c0_175 = arith.constant 0 : index
    %577 = vector.load %arg8[%c7_174, %c0_175] : memref<20x32xf32, #tpu.memory_space<vmem>>, vector<1x32xf32>
    tpu.vector_store %arg8[%c7_174, %c0_175], %576 {strides = array<i32>} : memref<20x32xf32, #tpu.memory_space<vmem>>, vector<1x32xf32>,
    %c7_176 = arith.constant 7 : index
    %c0_177 = arith.constant 0 : index
    %578 = vector.load %arg9[%c7_176, %c0_177] : memref<20x20xf32, #tpu.memory_space<vmem>>, vector<1x20xf32>
    tpu.vector_store %arg9[%c7_176, %c0_177], %533 {strides = array<i32>} : memref<20x20xf32, #tpu.memory_space<vmem>>, vector<1x20xf32>,
    %579 = vector.extract_strided_slice %82 {offsets = [8, 0], sizes = [1, 128], strides = [1, 1]} : vector<20x128xf32> to vector<1x128xf32>
    %cst_178 = arith.constant dense<0.000000e+00> : vector<1x128xf32>
    %580 = tpu.matmul %576, %86, %cst_178 {dimension_numbers = #tpu.dot_dimension_numbers<[1], [0], [0], [1], [0, 0, 1, 1], [], []>} : vector<1x32xf32>, vector<32x128xf32>, vector<1x128xf32> -> vector<1x128xf32>
    %581 = vector.extract_strided_slice %579 {offsets = [0, 0], sizes = [1, 20], strides = [1, 1]} : vector<1x128xf32> to vector<1x20xf32>
    %582 = vector.extract_strided_slice %580 {offsets = [0, 0], sizes = [1, 20], strides = [1, 1]} : vector<1x128xf32> to vector<1x20xf32>
    %583 = arith.addf %581, %582 : vector<1x20xf32>
    %584 = vector.extract_strided_slice %88 {offsets = [0, 0], sizes = [1, 20], strides = [1, 1]} : vector<1x128xf32> to vector<1x20xf32>
    %585 = arith.addf %583, %584 : vector<1x20xf32>
    %cst_179 = arith.constant dense<0xFF800000> : vector<1xf32>
    %586 = vector.multi_reduction <maximumf>, %585, %cst_179 [1] : vector<1x20xf32> to vector<1xf32>
    %587 = vector.shape_cast %586 : vector<1xf32> to vector<1x1xf32>
    %588 = vector.broadcast %587 : vector<1x1xf32> to vector<1x20xf32>
    %589 = arith.subf %585, %588 : vector<1x20xf32>
    %590 = math.exp %589 : vector<1x20xf32>
    %cst_180 = arith.constant dense<0.000000e+00> : vector<1xf32>
    %591 = vector.multi_reduction <add>, %590, %cst_180 [1] : vector<1x20xf32> to vector<1xf32>
    %592 = vector.shape_cast %591 : vector<1xf32> to vector<1x1xf32>
    %593 = vector.broadcast %592 : vector<1x1xf32> to vector<1x20xf32>
    %594 = arith.divf %590, %593 : vector<1x20xf32>
    %cst_181 = arith.constant dense<0.000000e+00> : vector<1x128xf32>
    %595 = tpu.matmul %594, %85, %cst_181 {dimension_numbers = #tpu.dot_dimension_numbers<[1], [0], [0], [1], [0, 0, 1, 1], [], []>} : vector<1x20xf32>, vector<20x128xf32>, vector<1x128xf32> -> vector<1x128xf32>
    %596 = vector.extract_strided_slice %579 {offsets = [0, 20], sizes = [1, 32], strides = [1, 1]} : vector<1x128xf32> to vector<1x32xf32>
    %597 = vector.extract_strided_slice %595 {offsets = [0, 0], sizes = [1, 32], strides = [1, 1]} : vector<1x128xf32> to vector<1x32xf32>
    %598 = arith.addf %596, %597 : vector<1x32xf32>
    %599 = vector.extract_strided_slice %88 {offsets = [0, 20], sizes = [1, 32], strides = [1, 1]} : vector<1x128xf32> to vector<1x32xf32>
    %600 = arith.addf %598, %599 : vector<1x32xf32>
    %cst_182 = arith.constant 0.000000e+00 : f32
    %601 = vector.broadcast %cst_182 : f32 to vector<1x32xf32>
    %602 = arith.maximumf %600, %601 : vector<1x32xf32>
    %cst_183 = arith.constant dense<0.000000e+00> : vector<1x128xf32>
    %603 = tpu.matmul %602, %87, %cst_183 {dimension_numbers = #tpu.dot_dimension_numbers<[1], [0], [0], [1], [0, 0, 1, 1], [], []>} : vector<1x32xf32>, vector<32x128xf32>, vector<1x128xf32> -> vector<1x128xf32>
    %604 = vector.extract_strided_slice %603 {offsets = [0, 0], sizes = [1, 32], strides = [1, 1]} : vector<1x128xf32> to vector<1x32xf32>
    %605 = vector.extract_strided_slice %580 {offsets = [0, 20], sizes = [1, 32], strides = [1, 1]} : vector<1x128xf32> to vector<1x32xf32>
    %606 = arith.addf %604, %605 : vector<1x32xf32>
    %607 = vector.extract_strided_slice %88 {offsets = [0, 52], sizes = [1, 32], strides = [1, 1]} : vector<1x128xf32> to vector<1x32xf32>
    %608 = arith.addf %606, %607 : vector<1x32xf32>
    %609 = arith.negf %608 : vector<1x32xf32>
    %610 = math.exp %609 : vector<1x32xf32>
    %cst_184 = arith.constant 1.000000e+00 : f32
    %611 = vector.broadcast %cst_184 : f32 to vector<1x32xf32>
    %612 = arith.addf %611, %610 : vector<1x32xf32>
    %613 = arith.divf %611, %612 : vector<1x32xf32>
    %614 = vector.extract_strided_slice %603 {offsets = [0, 32], sizes = [1, 32], strides = [1, 1]} : vector<1x128xf32> to vector<1x32xf32>
    %615 = vector.extract_strided_slice %580 {offsets = [0, 52], sizes = [1, 32], strides = [1, 1]} : vector<1x128xf32> to vector<1x32xf32>
    %616 = arith.addf %614, %615 : vector<1x32xf32>
    %617 = vector.extract_strided_slice %88 {offsets = [0, 84], sizes = [1, 32], strides = [1, 1]} : vector<1x128xf32> to vector<1x32xf32>
    %618 = arith.addf %616, %617 : vector<1x32xf32>
    %619 = arith.negf %618 : vector<1x32xf32>
    %620 = math.exp %619 : vector<1x32xf32>
    %cst_185 = arith.constant 1.000000e+00 : f32
    %621 = vector.broadcast %cst_185 : f32 to vector<1x32xf32>
    %622 = arith.addf %621, %620 : vector<1x32xf32>
    %623 = arith.divf %621, %622 : vector<1x32xf32>
    %624 = vector.extract_strided_slice %603 {offsets = [0, 64], sizes = [1, 32], strides = [1, 1]} : vector<1x128xf32> to vector<1x32xf32>
    %625 = vector.extract_strided_slice %89 {offsets = [0, 0], sizes = [1, 32], strides = [1, 1]} : vector<1x128xf32> to vector<1x32xf32>
    %626 = arith.addf %624, %625 : vector<1x32xf32>
    %627 = vector.extract_strided_slice %580 {offsets = [0, 84], sizes = [1, 32], strides = [1, 1]} : vector<1x128xf32> to vector<1x32xf32>
    %628 = vector.extract_strided_slice %89 {offsets = [0, 32], sizes = [1, 32], strides = [1, 1]} : vector<1x128xf32> to vector<1x32xf32>
    %629 = arith.addf %627, %628 : vector<1x32xf32>
    %630 = arith.mulf %613, %629 : vector<1x32xf32>
    %631 = arith.addf %626, %630 : vector<1x32xf32>
    %632 = math.tanh %631 : vector<1x32xf32>
    %cst_186 = arith.constant 1.000000e+00 : f32
    %633 = vector.broadcast %cst_186 : f32 to vector<1x32xf32>
    %634 = arith.subf %633, %623 : vector<1x32xf32>
    %635 = arith.mulf %634, %632 : vector<1x32xf32>
    %636 = arith.mulf %623, %576 : vector<1x32xf32>
    %637 = arith.addf %635, %636 : vector<1x32xf32>
    %c8_187 = arith.constant 8 : index
    %c0_188 = arith.constant 0 : index
    %638 = vector.load %arg8[%c8_187, %c0_188] : memref<20x32xf32, #tpu.memory_space<vmem>>, vector<1x32xf32>
    tpu.vector_store %arg8[%c8_187, %c0_188], %637 {strides = array<i32>} : memref<20x32xf32, #tpu.memory_space<vmem>>, vector<1x32xf32>,
    %c8_189 = arith.constant 8 : index
    %c0_190 = arith.constant 0 : index
    %639 = vector.load %arg9[%c8_189, %c0_190] : memref<20x20xf32, #tpu.memory_space<vmem>>, vector<1x20xf32>
    tpu.vector_store %arg9[%c8_189, %c0_190], %594 {strides = array<i32>} : memref<20x20xf32, #tpu.memory_space<vmem>>, vector<1x20xf32>,
    %640 = vector.extract_strided_slice %82 {offsets = [9, 0], sizes = [1, 128], strides = [1, 1]} : vector<20x128xf32> to vector<1x128xf32>
    %cst_191 = arith.constant dense<0.000000e+00> : vector<1x128xf32>
    %641 = tpu.matmul %637, %86, %cst_191 {dimension_numbers = #tpu.dot_dimension_numbers<[1], [0], [0], [1], [0, 0, 1, 1], [], []>} : vector<1x32xf32>, vector<32x128xf32>, vector<1x128xf32> -> vector<1x128xf32>
    %642 = vector.extract_strided_slice %640 {offsets = [0, 0], sizes = [1, 20], strides = [1, 1]} : vector<1x128xf32> to vector<1x20xf32>
    %643 = vector.extract_strided_slice %641 {offsets = [0, 0], sizes = [1, 20], strides = [1, 1]} : vector<1x128xf32> to vector<1x20xf32>
    %644 = arith.addf %642, %643 : vector<1x20xf32>
    %645 = vector.extract_strided_slice %88 {offsets = [0, 0], sizes = [1, 20], strides = [1, 1]} : vector<1x128xf32> to vector<1x20xf32>
    %646 = arith.addf %644, %645 : vector<1x20xf32>
    %cst_192 = arith.constant dense<0xFF800000> : vector<1xf32>
    %647 = vector.multi_reduction <maximumf>, %646, %cst_192 [1] : vector<1x20xf32> to vector<1xf32>
    %648 = vector.shape_cast %647 : vector<1xf32> to vector<1x1xf32>
    %649 = vector.broadcast %648 : vector<1x1xf32> to vector<1x20xf32>
    %650 = arith.subf %646, %649 : vector<1x20xf32>
    %651 = math.exp %650 : vector<1x20xf32>
    %cst_193 = arith.constant dense<0.000000e+00> : vector<1xf32>
    %652 = vector.multi_reduction <add>, %651, %cst_193 [1] : vector<1x20xf32> to vector<1xf32>
    %653 = vector.shape_cast %652 : vector<1xf32> to vector<1x1xf32>
    %654 = vector.broadcast %653 : vector<1x1xf32> to vector<1x20xf32>
    %655 = arith.divf %651, %654 : vector<1x20xf32>
    %cst_194 = arith.constant dense<0.000000e+00> : vector<1x128xf32>
    %656 = tpu.matmul %655, %85, %cst_194 {dimension_numbers = #tpu.dot_dimension_numbers<[1], [0], [0], [1], [0, 0, 1, 1], [], []>} : vector<1x20xf32>, vector<20x128xf32>, vector<1x128xf32> -> vector<1x128xf32>
    %657 = vector.extract_strided_slice %640 {offsets = [0, 20], sizes = [1, 32], strides = [1, 1]} : vector<1x128xf32> to vector<1x32xf32>
    %658 = vector.extract_strided_slice %656 {offsets = [0, 0], sizes = [1, 32], strides = [1, 1]} : vector<1x128xf32> to vector<1x32xf32>
    %659 = arith.addf %657, %658 : vector<1x32xf32>
    %660 = vector.extract_strided_slice %88 {offsets = [0, 20], sizes = [1, 32], strides = [1, 1]} : vector<1x128xf32> to vector<1x32xf32>
    %661 = arith.addf %659, %660 : vector<1x32xf32>
    %cst_195 = arith.constant 0.000000e+00 : f32
    %662 = vector.broadcast %cst_195 : f32 to vector<1x32xf32>
    %663 = arith.maximumf %661, %662 : vector<1x32xf32>
    %cst_196 = arith.constant dense<0.000000e+00> : vector<1x128xf32>
    %664 = tpu.matmul %663, %87, %cst_196 {dimension_numbers = #tpu.dot_dimension_numbers<[1], [0], [0], [1], [0, 0, 1, 1], [], []>} : vector<1x32xf32>, vector<32x128xf32>, vector<1x128xf32> -> vector<1x128xf32>
    %665 = vector.extract_strided_slice %664 {offsets = [0, 0], sizes = [1, 32], strides = [1, 1]} : vector<1x128xf32> to vector<1x32xf32>
    %666 = vector.extract_strided_slice %641 {offsets = [0, 20], sizes = [1, 32], strides = [1, 1]} : vector<1x128xf32> to vector<1x32xf32>
    %667 = arith.addf %665, %666 : vector<1x32xf32>
    %668 = vector.extract_strided_slice %88 {offsets = [0, 52], sizes = [1, 32], strides = [1, 1]} : vector<1x128xf32> to vector<1x32xf32>
    %669 = arith.addf %667, %668 : vector<1x32xf32>
    %670 = arith.negf %669 : vector<1x32xf32>
    %671 = math.exp %670 : vector<1x32xf32>
    %cst_197 = arith.constant 1.000000e+00 : f32
    %672 = vector.broadcast %cst_197 : f32 to vector<1x32xf32>
    %673 = arith.addf %672, %671 : vector<1x32xf32>
    %674 = arith.divf %672, %673 : vector<1x32xf32>
    %675 = vector.extract_strided_slice %664 {offsets = [0, 32], sizes = [1, 32], strides = [1, 1]} : vector<1x128xf32> to vector<1x32xf32>
    %676 = vector.extract_strided_slice %641 {offsets = [0, 52], sizes = [1, 32], strides = [1, 1]} : vector<1x128xf32> to vector<1x32xf32>
    %677 = arith.addf %675, %676 : vector<1x32xf32>
    %678 = vector.extract_strided_slice %88 {offsets = [0, 84], sizes = [1, 32], strides = [1, 1]} : vector<1x128xf32> to vector<1x32xf32>
    %679 = arith.addf %677, %678 : vector<1x32xf32>
    %680 = arith.negf %679 : vector<1x32xf32>
    %681 = math.exp %680 : vector<1x32xf32>
    %cst_198 = arith.constant 1.000000e+00 : f32
    %682 = vector.broadcast %cst_198 : f32 to vector<1x32xf32>
    %683 = arith.addf %682, %681 : vector<1x32xf32>
    %684 = arith.divf %682, %683 : vector<1x32xf32>
    %685 = vector.extract_strided_slice %664 {offsets = [0, 64], sizes = [1, 32], strides = [1, 1]} : vector<1x128xf32> to vector<1x32xf32>
    %686 = vector.extract_strided_slice %89 {offsets = [0, 0], sizes = [1, 32], strides = [1, 1]} : vector<1x128xf32> to vector<1x32xf32>
    %687 = arith.addf %685, %686 : vector<1x32xf32>
    %688 = vector.extract_strided_slice %641 {offsets = [0, 84], sizes = [1, 32], strides = [1, 1]} : vector<1x128xf32> to vector<1x32xf32>
    %689 = vector.extract_strided_slice %89 {offsets = [0, 32], sizes = [1, 32], strides = [1, 1]} : vector<1x128xf32> to vector<1x32xf32>
    %690 = arith.addf %688, %689 : vector<1x32xf32>
    %691 = arith.mulf %674, %690 : vector<1x32xf32>
    %692 = arith.addf %687, %691 : vector<1x32xf32>
    %693 = math.tanh %692 : vector<1x32xf32>
    %cst_199 = arith.constant 1.000000e+00 : f32
    %694 = vector.broadcast %cst_199 : f32 to vector<1x32xf32>
    %695 = arith.subf %694, %684 : vector<1x32xf32>
    %696 = arith.mulf %695, %693 : vector<1x32xf32>
    %697 = arith.mulf %684, %637 : vector<1x32xf32>
    %698 = arith.addf %696, %697 : vector<1x32xf32>
    %c9_200 = arith.constant 9 : index
    %c0_201 = arith.constant 0 : index
    %699 = vector.load %arg8[%c9_200, %c0_201] : memref<20x32xf32, #tpu.memory_space<vmem>>, vector<1x32xf32>
    tpu.vector_store %arg8[%c9_200, %c0_201], %698 {strides = array<i32>} : memref<20x32xf32, #tpu.memory_space<vmem>>, vector<1x32xf32>,
    %c9_202 = arith.constant 9 : index
    %c0_203 = arith.constant 0 : index
    %700 = vector.load %arg9[%c9_202, %c0_203] : memref<20x20xf32, #tpu.memory_space<vmem>>, vector<1x20xf32>
    tpu.vector_store %arg9[%c9_202, %c0_203], %655 {strides = array<i32>} : memref<20x20xf32, #tpu.memory_space<vmem>>, vector<1x20xf32>,
    %701 = vector.extract_strided_slice %82 {offsets = [10, 0], sizes = [1, 128], strides = [1, 1]} : vector<20x128xf32> to vector<1x128xf32>
    %cst_204 = arith.constant dense<0.000000e+00> : vector<1x128xf32>
    %702 = tpu.matmul %698, %86, %cst_204 {dimension_numbers = #tpu.dot_dimension_numbers<[1], [0], [0], [1], [0, 0, 1, 1], [], []>} : vector<1x32xf32>, vector<32x128xf32>, vector<1x128xf32> -> vector<1x128xf32>
    %703 = vector.extract_strided_slice %701 {offsets = [0, 0], sizes = [1, 20], strides = [1, 1]} : vector<1x128xf32> to vector<1x20xf32>
    %704 = vector.extract_strided_slice %702 {offsets = [0, 0], sizes = [1, 20], strides = [1, 1]} : vector<1x128xf32> to vector<1x20xf32>
    %705 = arith.addf %703, %704 : vector<1x20xf32>
    %706 = vector.extract_strided_slice %88 {offsets = [0, 0], sizes = [1, 20], strides = [1, 1]} : vector<1x128xf32> to vector<1x20xf32>
    %707 = arith.addf %705, %706 : vector<1x20xf32>
    %cst_205 = arith.constant dense<0xFF800000> : vector<1xf32>
    %708 = vector.multi_reduction <maximumf>, %707, %cst_205 [1] : vector<1x20xf32> to vector<1xf32>
    %709 = vector.shape_cast %708 : vector<1xf32> to vector<1x1xf32>
    %710 = vector.broadcast %709 : vector<1x1xf32> to vector<1x20xf32>
    %711 = arith.subf %707, %710 : vector<1x20xf32>
    %712 = math.exp %711 : vector<1x20xf32>
    %cst_206 = arith.constant dense<0.000000e+00> : vector<1xf32>
    %713 = vector.multi_reduction <add>, %712, %cst_206 [1] : vector<1x20xf32> to vector<1xf32>
    %714 = vector.shape_cast %713 : vector<1xf32> to vector<1x1xf32>
    %715 = vector.broadcast %714 : vector<1x1xf32> to vector<1x20xf32>
    %716 = arith.divf %712, %715 : vector<1x20xf32>
    %cst_207 = arith.constant dense<0.000000e+00> : vector<1x128xf32>
    %717 = tpu.matmul %716, %85, %cst_207 {dimension_numbers = #tpu.dot_dimension_numbers<[1], [0], [0], [1], [0, 0, 1, 1], [], []>} : vector<1x20xf32>, vector<20x128xf32>, vector<1x128xf32> -> vector<1x128xf32>
    %718 = vector.extract_strided_slice %701 {offsets = [0, 20], sizes = [1, 32], strides = [1, 1]} : vector<1x128xf32> to vector<1x32xf32>
    %719 = vector.extract_strided_slice %717 {offsets = [0, 0], sizes = [1, 32], strides = [1, 1]} : vector<1x128xf32> to vector<1x32xf32>
    %720 = arith.addf %718, %719 : vector<1x32xf32>
    %721 = vector.extract_strided_slice %88 {offsets = [0, 20], sizes = [1, 32], strides = [1, 1]} : vector<1x128xf32> to vector<1x32xf32>
    %722 = arith.addf %720, %721 : vector<1x32xf32>
    %cst_208 = arith.constant 0.000000e+00 : f32
    %723 = vector.broadcast %cst_208 : f32 to vector<1x32xf32>
    %724 = arith.maximumf %722, %723 : vector<1x32xf32>
    %cst_209 = arith.constant dense<0.000000e+00> : vector<1x128xf32>
    %725 = tpu.matmul %724, %87, %cst_209 {dimension_numbers = #tpu.dot_dimension_numbers<[1], [0], [0], [1], [0, 0, 1, 1], [], []>} : vector<1x32xf32>, vector<32x128xf32>, vector<1x128xf32> -> vector<1x128xf32>
    %726 = vector.extract_strided_slice %725 {offsets = [0, 0], sizes = [1, 32], strides = [1, 1]} : vector<1x128xf32> to vector<1x32xf32>
    %727 = vector.extract_strided_slice %702 {offsets = [0, 20], sizes = [1, 32], strides = [1, 1]} : vector<1x128xf32> to vector<1x32xf32>
    %728 = arith.addf %726, %727 : vector<1x32xf32>
    %729 = vector.extract_strided_slice %88 {offsets = [0, 52], sizes = [1, 32], strides = [1, 1]} : vector<1x128xf32> to vector<1x32xf32>
    %730 = arith.addf %728, %729 : vector<1x32xf32>
    %731 = arith.negf %730 : vector<1x32xf32>
    %732 = math.exp %731 : vector<1x32xf32>
    %cst_210 = arith.constant 1.000000e+00 : f32
    %733 = vector.broadcast %cst_210 : f32 to vector<1x32xf32>
    %734 = arith.addf %733, %732 : vector<1x32xf32>
    %735 = arith.divf %733, %734 : vector<1x32xf32>
    %736 = vector.extract_strided_slice %725 {offsets = [0, 32], sizes = [1, 32], strides = [1, 1]} : vector<1x128xf32> to vector<1x32xf32>
    %737 = vector.extract_strided_slice %702 {offsets = [0, 52], sizes = [1, 32], strides = [1, 1]} : vector<1x128xf32> to vector<1x32xf32>
    %738 = arith.addf %736, %737 : vector<1x32xf32>
    %739 = vector.extract_strided_slice %88 {offsets = [0, 84], sizes = [1, 32], strides = [1, 1]} : vector<1x128xf32> to vector<1x32xf32>
    %740 = arith.addf %738, %739 : vector<1x32xf32>
    %741 = arith.negf %740 : vector<1x32xf32>
    %742 = math.exp %741 : vector<1x32xf32>
    %cst_211 = arith.constant 1.000000e+00 : f32
    %743 = vector.broadcast %cst_211 : f32 to vector<1x32xf32>
    %744 = arith.addf %743, %742 : vector<1x32xf32>
    %745 = arith.divf %743, %744 : vector<1x32xf32>
    %746 = vector.extract_strided_slice %725 {offsets = [0, 64], sizes = [1, 32], strides = [1, 1]} : vector<1x128xf32> to vector<1x32xf32>
    %747 = vector.extract_strided_slice %89 {offsets = [0, 0], sizes = [1, 32], strides = [1, 1]} : vector<1x128xf32> to vector<1x32xf32>
    %748 = arith.addf %746, %747 : vector<1x32xf32>
    %749 = vector.extract_strided_slice %702 {offsets = [0, 84], sizes = [1, 32], strides = [1, 1]} : vector<1x128xf32> to vector<1x32xf32>
    %750 = vector.extract_strided_slice %89 {offsets = [0, 32], sizes = [1, 32], strides = [1, 1]} : vector<1x128xf32> to vector<1x32xf32>
    %751 = arith.addf %749, %750 : vector<1x32xf32>
    %752 = arith.mulf %735, %751 : vector<1x32xf32>
    %753 = arith.addf %748, %752 : vector<1x32xf32>
    %754 = math.tanh %753 : vector<1x32xf32>
    %cst_212 = arith.constant 1.000000e+00 : f32
    %755 = vector.broadcast %cst_212 : f32 to vector<1x32xf32>
    %756 = arith.subf %755, %745 : vector<1x32xf32>
    %757 = arith.mulf %756, %754 : vector<1x32xf32>
    %758 = arith.mulf %745, %698 : vector<1x32xf32>
    %759 = arith.addf %757, %758 : vector<1x32xf32>
    %c10_213 = arith.constant 10 : index
    %c0_214 = arith.constant 0 : index
    %760 = vector.load %arg8[%c10_213, %c0_214] : memref<20x32xf32, #tpu.memory_space<vmem>>, vector<1x32xf32>
    tpu.vector_store %arg8[%c10_213, %c0_214], %759 {strides = array<i32>} : memref<20x32xf32, #tpu.memory_space<vmem>>, vector<1x32xf32>,
    %c10_215 = arith.constant 10 : index
    %c0_216 = arith.constant 0 : index
    %761 = vector.load %arg9[%c10_215, %c0_216] : memref<20x20xf32, #tpu.memory_space<vmem>>, vector<1x20xf32>
    tpu.vector_store %arg9[%c10_215, %c0_216], %716 {strides = array<i32>} : memref<20x20xf32, #tpu.memory_space<vmem>>, vector<1x20xf32>,
    %762 = vector.extract_strided_slice %82 {offsets = [11, 0], sizes = [1, 128], strides = [1, 1]} : vector<20x128xf32> to vector<1x128xf32>
    %cst_217 = arith.constant dense<0.000000e+00> : vector<1x128xf32>
    %763 = tpu.matmul %759, %86, %cst_217 {dimension_numbers = #tpu.dot_dimension_numbers<[1], [0], [0], [1], [0, 0, 1, 1], [], []>} : vector<1x32xf32>, vector<32x128xf32>, vector<1x128xf32> -> vector<1x128xf32>
    %764 = vector.extract_strided_slice %762 {offsets = [0, 0], sizes = [1, 20], strides = [1, 1]} : vector<1x128xf32> to vector<1x20xf32>
    %765 = vector.extract_strided_slice %763 {offsets = [0, 0], sizes = [1, 20], strides = [1, 1]} : vector<1x128xf32> to vector<1x20xf32>
    %766 = arith.addf %764, %765 : vector<1x20xf32>
    %767 = vector.extract_strided_slice %88 {offsets = [0, 0], sizes = [1, 20], strides = [1, 1]} : vector<1x128xf32> to vector<1x20xf32>
    %768 = arith.addf %766, %767 : vector<1x20xf32>
    %cst_218 = arith.constant dense<0xFF800000> : vector<1xf32>
    %769 = vector.multi_reduction <maximumf>, %768, %cst_218 [1] : vector<1x20xf32> to vector<1xf32>
    %770 = vector.shape_cast %769 : vector<1xf32> to vector<1x1xf32>
    %771 = vector.broadcast %770 : vector<1x1xf32> to vector<1x20xf32>
    %772 = arith.subf %768, %771 : vector<1x20xf32>
    %773 = math.exp %772 : vector<1x20xf32>
    %cst_219 = arith.constant dense<0.000000e+00> : vector<1xf32>
    %774 = vector.multi_reduction <add>, %773, %cst_219 [1] : vector<1x20xf32> to vector<1xf32>
    %775 = vector.shape_cast %774 : vector<1xf32> to vector<1x1xf32>
    %776 = vector.broadcast %775 : vector<1x1xf32> to vector<1x20xf32>
    %777 = arith.divf %773, %776 : vector<1x20xf32>
    %cst_220 = arith.constant dense<0.000000e+00> : vector<1x128xf32>
    %778 = tpu.matmul %777, %85, %cst_220 {dimension_numbers = #tpu.dot_dimension_numbers<[1], [0], [0], [1], [0, 0, 1, 1], [], []>} : vector<1x20xf32>, vector<20x128xf32>, vector<1x128xf32> -> vector<1x128xf32>
    %779 = vector.extract_strided_slice %762 {offsets = [0, 20], sizes = [1, 32], strides = [1, 1]} : vector<1x128xf32> to vector<1x32xf32>
    %780 = vector.extract_strided_slice %778 {offsets = [0, 0], sizes = [1, 32], strides = [1, 1]} : vector<1x128xf32> to vector<1x32xf32>
    %781 = arith.addf %779, %780 : vector<1x32xf32>
    %782 = vector.extract_strided_slice %88 {offsets = [0, 20], sizes = [1, 32], strides = [1, 1]} : vector<1x128xf32> to vector<1x32xf32>
    %783 = arith.addf %781, %782 : vector<1x32xf32>
    %cst_221 = arith.constant 0.000000e+00 : f32
    %784 = vector.broadcast %cst_221 : f32 to vector<1x32xf32>
    %785 = arith.maximumf %783, %784 : vector<1x32xf32>
    %cst_222 = arith.constant dense<0.000000e+00> : vector<1x128xf32>
    %786 = tpu.matmul %785, %87, %cst_222 {dimension_numbers = #tpu.dot_dimension_numbers<[1], [0], [0], [1], [0, 0, 1, 1], [], []>} : vector<1x32xf32>, vector<32x128xf32>, vector<1x128xf32> -> vector<1x128xf32>
    %787 = vector.extract_strided_slice %786 {offsets = [0, 0], sizes = [1, 32], strides = [1, 1]} : vector<1x128xf32> to vector<1x32xf32>
    %788 = vector.extract_strided_slice %763 {offsets = [0, 20], sizes = [1, 32], strides = [1, 1]} : vector<1x128xf32> to vector<1x32xf32>
    %789 = arith.addf %787, %788 : vector<1x32xf32>
    %790 = vector.extract_strided_slice %88 {offsets = [0, 52], sizes = [1, 32], strides = [1, 1]} : vector<1x128xf32> to vector<1x32xf32>
    %791 = arith.addf %789, %790 : vector<1x32xf32>
    %792 = arith.negf %791 : vector<1x32xf32>
    %793 = math.exp %792 : vector<1x32xf32>
    %cst_223 = arith.constant 1.000000e+00 : f32
    %794 = vector.broadcast %cst_223 : f32 to vector<1x32xf32>
    %795 = arith.addf %794, %793 : vector<1x32xf32>
    %796 = arith.divf %794, %795 : vector<1x32xf32>
    %797 = vector.extract_strided_slice %786 {offsets = [0, 32], sizes = [1, 32], strides = [1, 1]} : vector<1x128xf32> to vector<1x32xf32>
    %798 = vector.extract_strided_slice %763 {offsets = [0, 52], sizes = [1, 32], strides = [1, 1]} : vector<1x128xf32> to vector<1x32xf32>
    %799 = arith.addf %797, %798 : vector<1x32xf32>
    %800 = vector.extract_strided_slice %88 {offsets = [0, 84], sizes = [1, 32], strides = [1, 1]} : vector<1x128xf32> to vector<1x32xf32>
    %801 = arith.addf %799, %800 : vector<1x32xf32>
    %802 = arith.negf %801 : vector<1x32xf32>
    %803 = math.exp %802 : vector<1x32xf32>
    %cst_224 = arith.constant 1.000000e+00 : f32
    %804 = vector.broadcast %cst_224 : f32 to vector<1x32xf32>
    %805 = arith.addf %804, %803 : vector<1x32xf32>
    %806 = arith.divf %804, %805 : vector<1x32xf32>
    %807 = vector.extract_strided_slice %786 {offsets = [0, 64], sizes = [1, 32], strides = [1, 1]} : vector<1x128xf32> to vector<1x32xf32>
    %808 = vector.extract_strided_slice %89 {offsets = [0, 0], sizes = [1, 32], strides = [1, 1]} : vector<1x128xf32> to vector<1x32xf32>
    %809 = arith.addf %807, %808 : vector<1x32xf32>
    %810 = vector.extract_strided_slice %763 {offsets = [0, 84], sizes = [1, 32], strides = [1, 1]} : vector<1x128xf32> to vector<1x32xf32>
    %811 = vector.extract_strided_slice %89 {offsets = [0, 32], sizes = [1, 32], strides = [1, 1]} : vector<1x128xf32> to vector<1x32xf32>
    %812 = arith.addf %810, %811 : vector<1x32xf32>
    %813 = arith.mulf %796, %812 : vector<1x32xf32>
    %814 = arith.addf %809, %813 : vector<1x32xf32>
    %815 = math.tanh %814 : vector<1x32xf32>
    %cst_225 = arith.constant 1.000000e+00 : f32
    %816 = vector.broadcast %cst_225 : f32 to vector<1x32xf32>
    %817 = arith.subf %816, %806 : vector<1x32xf32>
    %818 = arith.mulf %817, %815 : vector<1x32xf32>
    %819 = arith.mulf %806, %759 : vector<1x32xf32>
    %820 = arith.addf %818, %819 : vector<1x32xf32>
    %c11_226 = arith.constant 11 : index
    %c0_227 = arith.constant 0 : index
    %821 = vector.load %arg8[%c11_226, %c0_227] : memref<20x32xf32, #tpu.memory_space<vmem>>, vector<1x32xf32>
    tpu.vector_store %arg8[%c11_226, %c0_227], %820 {strides = array<i32>} : memref<20x32xf32, #tpu.memory_space<vmem>>, vector<1x32xf32>,
    %c11_228 = arith.constant 11 : index
    %c0_229 = arith.constant 0 : index
    %822 = vector.load %arg9[%c11_228, %c0_229] : memref<20x20xf32, #tpu.memory_space<vmem>>, vector<1x20xf32>
    tpu.vector_store %arg9[%c11_228, %c0_229], %777 {strides = array<i32>} : memref<20x20xf32, #tpu.memory_space<vmem>>, vector<1x20xf32>,
    %823 = vector.extract_strided_slice %82 {offsets = [12, 0], sizes = [1, 128], strides = [1, 1]} : vector<20x128xf32> to vector<1x128xf32>
    %cst_230 = arith.constant dense<0.000000e+00> : vector<1x128xf32>
    %824 = tpu.matmul %820, %86, %cst_230 {dimension_numbers = #tpu.dot_dimension_numbers<[1], [0], [0], [1], [0, 0, 1, 1], [], []>} : vector<1x32xf32>, vector<32x128xf32>, vector<1x128xf32> -> vector<1x128xf32>
    %825 = vector.extract_strided_slice %823 {offsets = [0, 0], sizes = [1, 20], strides = [1, 1]} : vector<1x128xf32> to vector<1x20xf32>
    %826 = vector.extract_strided_slice %824 {offsets = [0, 0], sizes = [1, 20], strides = [1, 1]} : vector<1x128xf32> to vector<1x20xf32>
    %827 = arith.addf %825, %826 : vector<1x20xf32>
    %828 = vector.extract_strided_slice %88 {offsets = [0, 0], sizes = [1, 20], strides = [1, 1]} : vector<1x128xf32> to vector<1x20xf32>
    %829 = arith.addf %827, %828 : vector<1x20xf32>
    %cst_231 = arith.constant dense<0xFF800000> : vector<1xf32>
    %830 = vector.multi_reduction <maximumf>, %829, %cst_231 [1] : vector<1x20xf32> to vector<1xf32>
    %831 = vector.shape_cast %830 : vector<1xf32> to vector<1x1xf32>
    %832 = vector.broadcast %831 : vector<1x1xf32> to vector<1x20xf32>
    %833 = arith.subf %829, %832 : vector<1x20xf32>
    %834 = math.exp %833 : vector<1x20xf32>
    %cst_232 = arith.constant dense<0.000000e+00> : vector<1xf32>
    %835 = vector.multi_reduction <add>, %834, %cst_232 [1] : vector<1x20xf32> to vector<1xf32>
    %836 = vector.shape_cast %835 : vector<1xf32> to vector<1x1xf32>
    %837 = vector.broadcast %836 : vector<1x1xf32> to vector<1x20xf32>
    %838 = arith.divf %834, %837 : vector<1x20xf32>
    %cst_233 = arith.constant dense<0.000000e+00> : vector<1x128xf32>
    %839 = tpu.matmul %838, %85, %cst_233 {dimension_numbers = #tpu.dot_dimension_numbers<[1], [0], [0], [1], [0, 0, 1, 1], [], []>} : vector<1x20xf32>, vector<20x128xf32>, vector<1x128xf32> -> vector<1x128xf32>
    %840 = vector.extract_strided_slice %823 {offsets = [0, 20], sizes = [1, 32], strides = [1, 1]} : vector<1x128xf32> to vector<1x32xf32>
    %841 = vector.extract_strided_slice %839 {offsets = [0, 0], sizes = [1, 32], strides = [1, 1]} : vector<1x128xf32> to vector<1x32xf32>
    %842 = arith.addf %840, %841 : vector<1x32xf32>
    %843 = vector.extract_strided_slice %88 {offsets = [0, 20], sizes = [1, 32], strides = [1, 1]} : vector<1x128xf32> to vector<1x32xf32>
    %844 = arith.addf %842, %843 : vector<1x32xf32>
    %cst_234 = arith.constant 0.000000e+00 : f32
    %845 = vector.broadcast %cst_234 : f32 to vector<1x32xf32>
    %846 = arith.maximumf %844, %845 : vector<1x32xf32>
    %cst_235 = arith.constant dense<0.000000e+00> : vector<1x128xf32>
    %847 = tpu.matmul %846, %87, %cst_235 {dimension_numbers = #tpu.dot_dimension_numbers<[1], [0], [0], [1], [0, 0, 1, 1], [], []>} : vector<1x32xf32>, vector<32x128xf32>, vector<1x128xf32> -> vector<1x128xf32>
    %848 = vector.extract_strided_slice %847 {offsets = [0, 0], sizes = [1, 32], strides = [1, 1]} : vector<1x128xf32> to vector<1x32xf32>
    %849 = vector.extract_strided_slice %824 {offsets = [0, 20], sizes = [1, 32], strides = [1, 1]} : vector<1x128xf32> to vector<1x32xf32>
    %850 = arith.addf %848, %849 : vector<1x32xf32>
    %851 = vector.extract_strided_slice %88 {offsets = [0, 52], sizes = [1, 32], strides = [1, 1]} : vector<1x128xf32> to vector<1x32xf32>
    %852 = arith.addf %850, %851 : vector<1x32xf32>
    %853 = arith.negf %852 : vector<1x32xf32>
    %854 = math.exp %853 : vector<1x32xf32>
    %cst_236 = arith.constant 1.000000e+00 : f32
    %855 = vector.broadcast %cst_236 : f32 to vector<1x32xf32>
    %856 = arith.addf %855, %854 : vector<1x32xf32>
    %857 = arith.divf %855, %856 : vector<1x32xf32>
    %858 = vector.extract_strided_slice %847 {offsets = [0, 32], sizes = [1, 32], strides = [1, 1]} : vector<1x128xf32> to vector<1x32xf32>
    %859 = vector.extract_strided_slice %824 {offsets = [0, 52], sizes = [1, 32], strides = [1, 1]} : vector<1x128xf32> to vector<1x32xf32>
    %860 = arith.addf %858, %859 : vector<1x32xf32>
    %861 = vector.extract_strided_slice %88 {offsets = [0, 84], sizes = [1, 32], strides = [1, 1]} : vector<1x128xf32> to vector<1x32xf32>
    %862 = arith.addf %860, %861 : vector<1x32xf32>
    %863 = arith.negf %862 : vector<1x32xf32>
    %864 = math.exp %863 : vector<1x32xf32>
    %cst_237 = arith.constant 1.000000e+00 : f32
    %865 = vector.broadcast %cst_237 : f32 to vector<1x32xf32>
    %866 = arith.addf %865, %864 : vector<1x32xf32>
    %867 = arith.divf %865, %866 : vector<1x32xf32>
    %868 = vector.extract_strided_slice %847 {offsets = [0, 64], sizes = [1, 32], strides = [1, 1]} : vector<1x128xf32> to vector<1x32xf32>
    %869 = vector.extract_strided_slice %89 {offsets = [0, 0], sizes = [1, 32], strides = [1, 1]} : vector<1x128xf32> to vector<1x32xf32>
    %870 = arith.addf %868, %869 : vector<1x32xf32>
    %871 = vector.extract_strided_slice %824 {offsets = [0, 84], sizes = [1, 32], strides = [1, 1]} : vector<1x128xf32> to vector<1x32xf32>
    %872 = vector.extract_strided_slice %89 {offsets = [0, 32], sizes = [1, 32], strides = [1, 1]} : vector<1x128xf32> to vector<1x32xf32>
    %873 = arith.addf %871, %872 : vector<1x32xf32>
    %874 = arith.mulf %857, %873 : vector<1x32xf32>
    %875 = arith.addf %870, %874 : vector<1x32xf32>
    %876 = math.tanh %875 : vector<1x32xf32>
    %cst_238 = arith.constant 1.000000e+00 : f32
    %877 = vector.broadcast %cst_238 : f32 to vector<1x32xf32>
    %878 = arith.subf %877, %867 : vector<1x32xf32>
    %879 = arith.mulf %878, %876 : vector<1x32xf32>
    %880 = arith.mulf %867, %820 : vector<1x32xf32>
    %881 = arith.addf %879, %880 : vector<1x32xf32>
    %c12_239 = arith.constant 12 : index
    %c0_240 = arith.constant 0 : index
    %882 = vector.load %arg8[%c12_239, %c0_240] : memref<20x32xf32, #tpu.memory_space<vmem>>, vector<1x32xf32>
    tpu.vector_store %arg8[%c12_239, %c0_240], %881 {strides = array<i32>} : memref<20x32xf32, #tpu.memory_space<vmem>>, vector<1x32xf32>,
    %c12_241 = arith.constant 12 : index
    %c0_242 = arith.constant 0 : index
    %883 = vector.load %arg9[%c12_241, %c0_242] : memref<20x20xf32, #tpu.memory_space<vmem>>, vector<1x20xf32>
    tpu.vector_store %arg9[%c12_241, %c0_242], %838 {strides = array<i32>} : memref<20x20xf32, #tpu.memory_space<vmem>>, vector<1x20xf32>,
    %884 = vector.extract_strided_slice %82 {offsets = [13, 0], sizes = [1, 128], strides = [1, 1]} : vector<20x128xf32> to vector<1x128xf32>
    %cst_243 = arith.constant dense<0.000000e+00> : vector<1x128xf32>
    %885 = tpu.matmul %881, %86, %cst_243 {dimension_numbers = #tpu.dot_dimension_numbers<[1], [0], [0], [1], [0, 0, 1, 1], [], []>} : vector<1x32xf32>, vector<32x128xf32>, vector<1x128xf32> -> vector<1x128xf32>
    %886 = vector.extract_strided_slice %884 {offsets = [0, 0], sizes = [1, 20], strides = [1, 1]} : vector<1x128xf32> to vector<1x20xf32>
    %887 = vector.extract_strided_slice %885 {offsets = [0, 0], sizes = [1, 20], strides = [1, 1]} : vector<1x128xf32> to vector<1x20xf32>
    %888 = arith.addf %886, %887 : vector<1x20xf32>
    %889 = vector.extract_strided_slice %88 {offsets = [0, 0], sizes = [1, 20], strides = [1, 1]} : vector<1x128xf32> to vector<1x20xf32>
    %890 = arith.addf %888, %889 : vector<1x20xf32>
    %cst_244 = arith.constant dense<0xFF800000> : vector<1xf32>
    %891 = vector.multi_reduction <maximumf>, %890, %cst_244 [1] : vector<1x20xf32> to vector<1xf32>
    %892 = vector.shape_cast %891 : vector<1xf32> to vector<1x1xf32>
    %893 = vector.broadcast %892 : vector<1x1xf32> to vector<1x20xf32>
    %894 = arith.subf %890, %893 : vector<1x20xf32>
    %895 = math.exp %894 : vector<1x20xf32>
    %cst_245 = arith.constant dense<0.000000e+00> : vector<1xf32>
    %896 = vector.multi_reduction <add>, %895, %cst_245 [1] : vector<1x20xf32> to vector<1xf32>
    %897 = vector.shape_cast %896 : vector<1xf32> to vector<1x1xf32>
    %898 = vector.broadcast %897 : vector<1x1xf32> to vector<1x20xf32>
    %899 = arith.divf %895, %898 : vector<1x20xf32>
    %cst_246 = arith.constant dense<0.000000e+00> : vector<1x128xf32>
    %900 = tpu.matmul %899, %85, %cst_246 {dimension_numbers = #tpu.dot_dimension_numbers<[1], [0], [0], [1], [0, 0, 1, 1], [], []>} : vector<1x20xf32>, vector<20x128xf32>, vector<1x128xf32> -> vector<1x128xf32>
    %901 = vector.extract_strided_slice %884 {offsets = [0, 20], sizes = [1, 32], strides = [1, 1]} : vector<1x128xf32> to vector<1x32xf32>
    %902 = vector.extract_strided_slice %900 {offsets = [0, 0], sizes = [1, 32], strides = [1, 1]} : vector<1x128xf32> to vector<1x32xf32>
    %903 = arith.addf %901, %902 : vector<1x32xf32>
    %904 = vector.extract_strided_slice %88 {offsets = [0, 20], sizes = [1, 32], strides = [1, 1]} : vector<1x128xf32> to vector<1x32xf32>
    %905 = arith.addf %903, %904 : vector<1x32xf32>
    %cst_247 = arith.constant 0.000000e+00 : f32
    %906 = vector.broadcast %cst_247 : f32 to vector<1x32xf32>
    %907 = arith.maximumf %905, %906 : vector<1x32xf32>
    %cst_248 = arith.constant dense<0.000000e+00> : vector<1x128xf32>
    %908 = tpu.matmul %907, %87, %cst_248 {dimension_numbers = #tpu.dot_dimension_numbers<[1], [0], [0], [1], [0, 0, 1, 1], [], []>} : vector<1x32xf32>, vector<32x128xf32>, vector<1x128xf32> -> vector<1x128xf32>
    %909 = vector.extract_strided_slice %908 {offsets = [0, 0], sizes = [1, 32], strides = [1, 1]} : vector<1x128xf32> to vector<1x32xf32>
    %910 = vector.extract_strided_slice %885 {offsets = [0, 20], sizes = [1, 32], strides = [1, 1]} : vector<1x128xf32> to vector<1x32xf32>
    %911 = arith.addf %909, %910 : vector<1x32xf32>
    %912 = vector.extract_strided_slice %88 {offsets = [0, 52], sizes = [1, 32], strides = [1, 1]} : vector<1x128xf32> to vector<1x32xf32>
    %913 = arith.addf %911, %912 : vector<1x32xf32>
    %914 = arith.negf %913 : vector<1x32xf32>
    %915 = math.exp %914 : vector<1x32xf32>
    %cst_249 = arith.constant 1.000000e+00 : f32
    %916 = vector.broadcast %cst_249 : f32 to vector<1x32xf32>
    %917 = arith.addf %916, %915 : vector<1x32xf32>
    %918 = arith.divf %916, %917 : vector<1x32xf32>
    %919 = vector.extract_strided_slice %908 {offsets = [0, 32], sizes = [1, 32], strides = [1, 1]} : vector<1x128xf32> to vector<1x32xf32>
    %920 = vector.extract_strided_slice %885 {offsets = [0, 52], sizes = [1, 32], strides = [1, 1]} : vector<1x128xf32> to vector<1x32xf32>
    %921 = arith.addf %919, %920 : vector<1x32xf32>
    %922 = vector.extract_strided_slice %88 {offsets = [0, 84], sizes = [1, 32], strides = [1, 1]} : vector<1x128xf32> to vector<1x32xf32>
    %923 = arith.addf %921, %922 : vector<1x32xf32>
    %924 = arith.negf %923 : vector<1x32xf32>
    %925 = math.exp %924 : vector<1x32xf32>
    %cst_250 = arith.constant 1.000000e+00 : f32
    %926 = vector.broadcast %cst_250 : f32 to vector<1x32xf32>
    %927 = arith.addf %926, %925 : vector<1x32xf32>
    %928 = arith.divf %926, %927 : vector<1x32xf32>
    %929 = vector.extract_strided_slice %908 {offsets = [0, 64], sizes = [1, 32], strides = [1, 1]} : vector<1x128xf32> to vector<1x32xf32>
    %930 = vector.extract_strided_slice %89 {offsets = [0, 0], sizes = [1, 32], strides = [1, 1]} : vector<1x128xf32> to vector<1x32xf32>
    %931 = arith.addf %929, %930 : vector<1x32xf32>
    %932 = vector.extract_strided_slice %885 {offsets = [0, 84], sizes = [1, 32], strides = [1, 1]} : vector<1x128xf32> to vector<1x32xf32>
    %933 = vector.extract_strided_slice %89 {offsets = [0, 32], sizes = [1, 32], strides = [1, 1]} : vector<1x128xf32> to vector<1x32xf32>
    %934 = arith.addf %932, %933 : vector<1x32xf32>
    %935 = arith.mulf %918, %934 : vector<1x32xf32>
    %936 = arith.addf %931, %935 : vector<1x32xf32>
    %937 = math.tanh %936 : vector<1x32xf32>
    %cst_251 = arith.constant 1.000000e+00 : f32
    %938 = vector.broadcast %cst_251 : f32 to vector<1x32xf32>
    %939 = arith.subf %938, %928 : vector<1x32xf32>
    %940 = arith.mulf %939, %937 : vector<1x32xf32>
    %941 = arith.mulf %928, %881 : vector<1x32xf32>
    %942 = arith.addf %940, %941 : vector<1x32xf32>
    %c13_252 = arith.constant 13 : index
    %c0_253 = arith.constant 0 : index
    %943 = vector.load %arg8[%c13_252, %c0_253] : memref<20x32xf32, #tpu.memory_space<vmem>>, vector<1x32xf32>
    tpu.vector_store %arg8[%c13_252, %c0_253], %942 {strides = array<i32>} : memref<20x32xf32, #tpu.memory_space<vmem>>, vector<1x32xf32>,
    %c13_254 = arith.constant 13 : index
    %c0_255 = arith.constant 0 : index
    %944 = vector.load %arg9[%c13_254, %c0_255] : memref<20x20xf32, #tpu.memory_space<vmem>>, vector<1x20xf32>
    tpu.vector_store %arg9[%c13_254, %c0_255], %899 {strides = array<i32>} : memref<20x20xf32, #tpu.memory_space<vmem>>, vector<1x20xf32>,
    %945 = vector.extract_strided_slice %82 {offsets = [14, 0], sizes = [1, 128], strides = [1, 1]} : vector<20x128xf32> to vector<1x128xf32>
    %cst_256 = arith.constant dense<0.000000e+00> : vector<1x128xf32>
    %946 = tpu.matmul %942, %86, %cst_256 {dimension_numbers = #tpu.dot_dimension_numbers<[1], [0], [0], [1], [0, 0, 1, 1], [], []>} : vector<1x32xf32>, vector<32x128xf32>, vector<1x128xf32> -> vector<1x128xf32>
    %947 = vector.extract_strided_slice %945 {offsets = [0, 0], sizes = [1, 20], strides = [1, 1]} : vector<1x128xf32> to vector<1x20xf32>
    %948 = vector.extract_strided_slice %946 {offsets = [0, 0], sizes = [1, 20], strides = [1, 1]} : vector<1x128xf32> to vector<1x20xf32>
    %949 = arith.addf %947, %948 : vector<1x20xf32>
    %950 = vector.extract_strided_slice %88 {offsets = [0, 0], sizes = [1, 20], strides = [1, 1]} : vector<1x128xf32> to vector<1x20xf32>
    %951 = arith.addf %949, %950 : vector<1x20xf32>
    %cst_257 = arith.constant dense<0xFF800000> : vector<1xf32>
    %952 = vector.multi_reduction <maximumf>, %951, %cst_257 [1] : vector<1x20xf32> to vector<1xf32>
    %953 = vector.shape_cast %952 : vector<1xf32> to vector<1x1xf32>
    %954 = vector.broadcast %953 : vector<1x1xf32> to vector<1x20xf32>
    %955 = arith.subf %951, %954 : vector<1x20xf32>
    %956 = math.exp %955 : vector<1x20xf32>
    %cst_258 = arith.constant dense<0.000000e+00> : vector<1xf32>
    %957 = vector.multi_reduction <add>, %956, %cst_258 [1] : vector<1x20xf32> to vector<1xf32>
    %958 = vector.shape_cast %957 : vector<1xf32> to vector<1x1xf32>
    %959 = vector.broadcast %958 : vector<1x1xf32> to vector<1x20xf32>
    %960 = arith.divf %956, %959 : vector<1x20xf32>
    %cst_259 = arith.constant dense<0.000000e+00> : vector<1x128xf32>
    %961 = tpu.matmul %960, %85, %cst_259 {dimension_numbers = #tpu.dot_dimension_numbers<[1], [0], [0], [1], [0, 0, 1, 1], [], []>} : vector<1x20xf32>, vector<20x128xf32>, vector<1x128xf32> -> vector<1x128xf32>
    %962 = vector.extract_strided_slice %945 {offsets = [0, 20], sizes = [1, 32], strides = [1, 1]} : vector<1x128xf32> to vector<1x32xf32>
    %963 = vector.extract_strided_slice %961 {offsets = [0, 0], sizes = [1, 32], strides = [1, 1]} : vector<1x128xf32> to vector<1x32xf32>
    %964 = arith.addf %962, %963 : vector<1x32xf32>
    %965 = vector.extract_strided_slice %88 {offsets = [0, 20], sizes = [1, 32], strides = [1, 1]} : vector<1x128xf32> to vector<1x32xf32>
    %966 = arith.addf %964, %965 : vector<1x32xf32>
    %cst_260 = arith.constant 0.000000e+00 : f32
    %967 = vector.broadcast %cst_260 : f32 to vector<1x32xf32>
    %968 = arith.maximumf %966, %967 : vector<1x32xf32>
    %cst_261 = arith.constant dense<0.000000e+00> : vector<1x128xf32>
    %969 = tpu.matmul %968, %87, %cst_261 {dimension_numbers = #tpu.dot_dimension_numbers<[1], [0], [0], [1], [0, 0, 1, 1], [], []>} : vector<1x32xf32>, vector<32x128xf32>, vector<1x128xf32> -> vector<1x128xf32>
    %970 = vector.extract_strided_slice %969 {offsets = [0, 0], sizes = [1, 32], strides = [1, 1]} : vector<1x128xf32> to vector<1x32xf32>
    %971 = vector.extract_strided_slice %946 {offsets = [0, 20], sizes = [1, 32], strides = [1, 1]} : vector<1x128xf32> to vector<1x32xf32>
    %972 = arith.addf %970, %971 : vector<1x32xf32>
    %973 = vector.extract_strided_slice %88 {offsets = [0, 52], sizes = [1, 32], strides = [1, 1]} : vector<1x128xf32> to vector<1x32xf32>
    %974 = arith.addf %972, %973 : vector<1x32xf32>
    %975 = arith.negf %974 : vector<1x32xf32>
    %976 = math.exp %975 : vector<1x32xf32>
    %cst_262 = arith.constant 1.000000e+00 : f32
    %977 = vector.broadcast %cst_262 : f32 to vector<1x32xf32>
    %978 = arith.addf %977, %976 : vector<1x32xf32>
    %979 = arith.divf %977, %978 : vector<1x32xf32>
    %980 = vector.extract_strided_slice %969 {offsets = [0, 32], sizes = [1, 32], strides = [1, 1]} : vector<1x128xf32> to vector<1x32xf32>
    %981 = vector.extract_strided_slice %946 {offsets = [0, 52], sizes = [1, 32], strides = [1, 1]} : vector<1x128xf32> to vector<1x32xf32>
    %982 = arith.addf %980, %981 : vector<1x32xf32>
    %983 = vector.extract_strided_slice %88 {offsets = [0, 84], sizes = [1, 32], strides = [1, 1]} : vector<1x128xf32> to vector<1x32xf32>
    %984 = arith.addf %982, %983 : vector<1x32xf32>
    %985 = arith.negf %984 : vector<1x32xf32>
    %986 = math.exp %985 : vector<1x32xf32>
    %cst_263 = arith.constant 1.000000e+00 : f32
    %987 = vector.broadcast %cst_263 : f32 to vector<1x32xf32>
    %988 = arith.addf %987, %986 : vector<1x32xf32>
    %989 = arith.divf %987, %988 : vector<1x32xf32>
    %990 = vector.extract_strided_slice %969 {offsets = [0, 64], sizes = [1, 32], strides = [1, 1]} : vector<1x128xf32> to vector<1x32xf32>
    %991 = vector.extract_strided_slice %89 {offsets = [0, 0], sizes = [1, 32], strides = [1, 1]} : vector<1x128xf32> to vector<1x32xf32>
    %992 = arith.addf %990, %991 : vector<1x32xf32>
    %993 = vector.extract_strided_slice %946 {offsets = [0, 84], sizes = [1, 32], strides = [1, 1]} : vector<1x128xf32> to vector<1x32xf32>
    %994 = vector.extract_strided_slice %89 {offsets = [0, 32], sizes = [1, 32], strides = [1, 1]} : vector<1x128xf32> to vector<1x32xf32>
    %995 = arith.addf %993, %994 : vector<1x32xf32>
    %996 = arith.mulf %979, %995 : vector<1x32xf32>
    %997 = arith.addf %992, %996 : vector<1x32xf32>
    %998 = math.tanh %997 : vector<1x32xf32>
    %cst_264 = arith.constant 1.000000e+00 : f32
    %999 = vector.broadcast %cst_264 : f32 to vector<1x32xf32>
    %1000 = arith.subf %999, %989 : vector<1x32xf32>
    %1001 = arith.mulf %1000, %998 : vector<1x32xf32>
    %1002 = arith.mulf %989, %942 : vector<1x32xf32>
    %1003 = arith.addf %1001, %1002 : vector<1x32xf32>
    %c14_265 = arith.constant 14 : index
    %c0_266 = arith.constant 0 : index
    %1004 = vector.load %arg8[%c14_265, %c0_266] : memref<20x32xf32, #tpu.memory_space<vmem>>, vector<1x32xf32>
    tpu.vector_store %arg8[%c14_265, %c0_266], %1003 {strides = array<i32>} : memref<20x32xf32, #tpu.memory_space<vmem>>, vector<1x32xf32>,
    %c14_267 = arith.constant 14 : index
    %c0_268 = arith.constant 0 : index
    %1005 = vector.load %arg9[%c14_267, %c0_268] : memref<20x20xf32, #tpu.memory_space<vmem>>, vector<1x20xf32>
    tpu.vector_store %arg9[%c14_267, %c0_268], %960 {strides = array<i32>} : memref<20x20xf32, #tpu.memory_space<vmem>>, vector<1x20xf32>,
    %1006 = vector.extract_strided_slice %82 {offsets = [15, 0], sizes = [1, 128], strides = [1, 1]} : vector<20x128xf32> to vector<1x128xf32>
    %cst_269 = arith.constant dense<0.000000e+00> : vector<1x128xf32>
    %1007 = tpu.matmul %1003, %86, %cst_269 {dimension_numbers = #tpu.dot_dimension_numbers<[1], [0], [0], [1], [0, 0, 1, 1], [], []>} : vector<1x32xf32>, vector<32x128xf32>, vector<1x128xf32> -> vector<1x128xf32>
    %1008 = vector.extract_strided_slice %1006 {offsets = [0, 0], sizes = [1, 20], strides = [1, 1]} : vector<1x128xf32> to vector<1x20xf32>
    %1009 = vector.extract_strided_slice %1007 {offsets = [0, 0], sizes = [1, 20], strides = [1, 1]} : vector<1x128xf32> to vector<1x20xf32>
    %1010 = arith.addf %1008, %1009 : vector<1x20xf32>
    %1011 = vector.extract_strided_slice %88 {offsets = [0, 0], sizes = [1, 20], strides = [1, 1]} : vector<1x128xf32> to vector<1x20xf32>
    %1012 = arith.addf %1010, %1011 : vector<1x20xf32>
    %cst_270 = arith.constant dense<0xFF800000> : vector<1xf32>
    %1013 = vector.multi_reduction <maximumf>, %1012, %cst_270 [1] : vector<1x20xf32> to vector<1xf32>
    %1014 = vector.shape_cast %1013 : vector<1xf32> to vector<1x1xf32>
    %1015 = vector.broadcast %1014 : vector<1x1xf32> to vector<1x20xf32>
    %1016 = arith.subf %1012, %1015 : vector<1x20xf32>
    %1017 = math.exp %1016 : vector<1x20xf32>
    %cst_271 = arith.constant dense<0.000000e+00> : vector<1xf32>
    %1018 = vector.multi_reduction <add>, %1017, %cst_271 [1] : vector<1x20xf32> to vector<1xf32>
    %1019 = vector.shape_cast %1018 : vector<1xf32> to vector<1x1xf32>
    %1020 = vector.broadcast %1019 : vector<1x1xf32> to vector<1x20xf32>
    %1021 = arith.divf %1017, %1020 : vector<1x20xf32>
    %cst_272 = arith.constant dense<0.000000e+00> : vector<1x128xf32>
    %1022 = tpu.matmul %1021, %85, %cst_272 {dimension_numbers = #tpu.dot_dimension_numbers<[1], [0], [0], [1], [0, 0, 1, 1], [], []>} : vector<1x20xf32>, vector<20x128xf32>, vector<1x128xf32> -> vector<1x128xf32>
    %1023 = vector.extract_strided_slice %1006 {offsets = [0, 20], sizes = [1, 32], strides = [1, 1]} : vector<1x128xf32> to vector<1x32xf32>
    %1024 = vector.extract_strided_slice %1022 {offsets = [0, 0], sizes = [1, 32], strides = [1, 1]} : vector<1x128xf32> to vector<1x32xf32>
    %1025 = arith.addf %1023, %1024 : vector<1x32xf32>
    %1026 = vector.extract_strided_slice %88 {offsets = [0, 20], sizes = [1, 32], strides = [1, 1]} : vector<1x128xf32> to vector<1x32xf32>
    %1027 = arith.addf %1025, %1026 : vector<1x32xf32>
    %cst_273 = arith.constant 0.000000e+00 : f32
    %1028 = vector.broadcast %cst_273 : f32 to vector<1x32xf32>
    %1029 = arith.maximumf %1027, %1028 : vector<1x32xf32>
    %cst_274 = arith.constant dense<0.000000e+00> : vector<1x128xf32>
    %1030 = tpu.matmul %1029, %87, %cst_274 {dimension_numbers = #tpu.dot_dimension_numbers<[1], [0], [0], [1], [0, 0, 1, 1], [], []>} : vector<1x32xf32>, vector<32x128xf32>, vector<1x128xf32> -> vector<1x128xf32>
    %1031 = vector.extract_strided_slice %1030 {offsets = [0, 0], sizes = [1, 32], strides = [1, 1]} : vector<1x128xf32> to vector<1x32xf32>
    %1032 = vector.extract_strided_slice %1007 {offsets = [0, 20], sizes = [1, 32], strides = [1, 1]} : vector<1x128xf32> to vector<1x32xf32>
    %1033 = arith.addf %1031, %1032 : vector<1x32xf32>
    %1034 = vector.extract_strided_slice %88 {offsets = [0, 52], sizes = [1, 32], strides = [1, 1]} : vector<1x128xf32> to vector<1x32xf32>
    %1035 = arith.addf %1033, %1034 : vector<1x32xf32>
    %1036 = arith.negf %1035 : vector<1x32xf32>
    %1037 = math.exp %1036 : vector<1x32xf32>
    %cst_275 = arith.constant 1.000000e+00 : f32
    %1038 = vector.broadcast %cst_275 : f32 to vector<1x32xf32>
    %1039 = arith.addf %1038, %1037 : vector<1x32xf32>
    %1040 = arith.divf %1038, %1039 : vector<1x32xf32>
    %1041 = vector.extract_strided_slice %1030 {offsets = [0, 32], sizes = [1, 32], strides = [1, 1]} : vector<1x128xf32> to vector<1x32xf32>
    %1042 = vector.extract_strided_slice %1007 {offsets = [0, 52], sizes = [1, 32], strides = [1, 1]} : vector<1x128xf32> to vector<1x32xf32>
    %1043 = arith.addf %1041, %1042 : vector<1x32xf32>
    %1044 = vector.extract_strided_slice %88 {offsets = [0, 84], sizes = [1, 32], strides = [1, 1]} : vector<1x128xf32> to vector<1x32xf32>
    %1045 = arith.addf %1043, %1044 : vector<1x32xf32>
    %1046 = arith.negf %1045 : vector<1x32xf32>
    %1047 = math.exp %1046 : vector<1x32xf32>
    %cst_276 = arith.constant 1.000000e+00 : f32
    %1048 = vector.broadcast %cst_276 : f32 to vector<1x32xf32>
    %1049 = arith.addf %1048, %1047 : vector<1x32xf32>
    %1050 = arith.divf %1048, %1049 : vector<1x32xf32>
    %1051 = vector.extract_strided_slice %1030 {offsets = [0, 64], sizes = [1, 32], strides = [1, 1]} : vector<1x128xf32> to vector<1x32xf32>
    %1052 = vector.extract_strided_slice %89 {offsets = [0, 0], sizes = [1, 32], strides = [1, 1]} : vector<1x128xf32> to vector<1x32xf32>
    %1053 = arith.addf %1051, %1052 : vector<1x32xf32>
    %1054 = vector.extract_strided_slice %1007 {offsets = [0, 84], sizes = [1, 32], strides = [1, 1]} : vector<1x128xf32> to vector<1x32xf32>
    %1055 = vector.extract_strided_slice %89 {offsets = [0, 32], sizes = [1, 32], strides = [1, 1]} : vector<1x128xf32> to vector<1x32xf32>
    %1056 = arith.addf %1054, %1055 : vector<1x32xf32>
    %1057 = arith.mulf %1040, %1056 : vector<1x32xf32>
    %1058 = arith.addf %1053, %1057 : vector<1x32xf32>
    %1059 = math.tanh %1058 : vector<1x32xf32>
    %cst_277 = arith.constant 1.000000e+00 : f32
    %1060 = vector.broadcast %cst_277 : f32 to vector<1x32xf32>
    %1061 = arith.subf %1060, %1050 : vector<1x32xf32>
    %1062 = arith.mulf %1061, %1059 : vector<1x32xf32>
    %1063 = arith.mulf %1050, %1003 : vector<1x32xf32>
    %1064 = arith.addf %1062, %1063 : vector<1x32xf32>
    %c15_278 = arith.constant 15 : index
    %c0_279 = arith.constant 0 : index
    %1065 = vector.load %arg8[%c15_278, %c0_279] : memref<20x32xf32, #tpu.memory_space<vmem>>, vector<1x32xf32>
    tpu.vector_store %arg8[%c15_278, %c0_279], %1064 {strides = array<i32>} : memref<20x32xf32, #tpu.memory_space<vmem>>, vector<1x32xf32>,
    %c15_280 = arith.constant 15 : index
    %c0_281 = arith.constant 0 : index
    %1066 = vector.load %arg9[%c15_280, %c0_281] : memref<20x20xf32, #tpu.memory_space<vmem>>, vector<1x20xf32>
    tpu.vector_store %arg9[%c15_280, %c0_281], %1021 {strides = array<i32>} : memref<20x20xf32, #tpu.memory_space<vmem>>, vector<1x20xf32>,
    %1067 = vector.extract_strided_slice %82 {offsets = [16, 0], sizes = [1, 128], strides = [1, 1]} : vector<20x128xf32> to vector<1x128xf32>
    %cst_282 = arith.constant dense<0.000000e+00> : vector<1x128xf32>
    %1068 = tpu.matmul %1064, %86, %cst_282 {dimension_numbers = #tpu.dot_dimension_numbers<[1], [0], [0], [1], [0, 0, 1, 1], [], []>} : vector<1x32xf32>, vector<32x128xf32>, vector<1x128xf32> -> vector<1x128xf32>
    %1069 = vector.extract_strided_slice %1067 {offsets = [0, 0], sizes = [1, 20], strides = [1, 1]} : vector<1x128xf32> to vector<1x20xf32>
    %1070 = vector.extract_strided_slice %1068 {offsets = [0, 0], sizes = [1, 20], strides = [1, 1]} : vector<1x128xf32> to vector<1x20xf32>
    %1071 = arith.addf %1069, %1070 : vector<1x20xf32>
    %1072 = vector.extract_strided_slice %88 {offsets = [0, 0], sizes = [1, 20], strides = [1, 1]} : vector<1x128xf32> to vector<1x20xf32>
    %1073 = arith.addf %1071, %1072 : vector<1x20xf32>
    %cst_283 = arith.constant dense<0xFF800000> : vector<1xf32>
    %1074 = vector.multi_reduction <maximumf>, %1073, %cst_283 [1] : vector<1x20xf32> to vector<1xf32>
    %1075 = vector.shape_cast %1074 : vector<1xf32> to vector<1x1xf32>
    %1076 = vector.broadcast %1075 : vector<1x1xf32> to vector<1x20xf32>
    %1077 = arith.subf %1073, %1076 : vector<1x20xf32>
    %1078 = math.exp %1077 : vector<1x20xf32>
    %cst_284 = arith.constant dense<0.000000e+00> : vector<1xf32>
    %1079 = vector.multi_reduction <add>, %1078, %cst_284 [1] : vector<1x20xf32> to vector<1xf32>
    %1080 = vector.shape_cast %1079 : vector<1xf32> to vector<1x1xf32>
    %1081 = vector.broadcast %1080 : vector<1x1xf32> to vector<1x20xf32>
    %1082 = arith.divf %1078, %1081 : vector<1x20xf32>
    %cst_285 = arith.constant dense<0.000000e+00> : vector<1x128xf32>
    %1083 = tpu.matmul %1082, %85, %cst_285 {dimension_numbers = #tpu.dot_dimension_numbers<[1], [0], [0], [1], [0, 0, 1, 1], [], []>} : vector<1x20xf32>, vector<20x128xf32>, vector<1x128xf32> -> vector<1x128xf32>
    %1084 = vector.extract_strided_slice %1067 {offsets = [0, 20], sizes = [1, 32], strides = [1, 1]} : vector<1x128xf32> to vector<1x32xf32>
    %1085 = vector.extract_strided_slice %1083 {offsets = [0, 0], sizes = [1, 32], strides = [1, 1]} : vector<1x128xf32> to vector<1x32xf32>
    %1086 = arith.addf %1084, %1085 : vector<1x32xf32>
    %1087 = vector.extract_strided_slice %88 {offsets = [0, 20], sizes = [1, 32], strides = [1, 1]} : vector<1x128xf32> to vector<1x32xf32>
    %1088 = arith.addf %1086, %1087 : vector<1x32xf32>
    %cst_286 = arith.constant 0.000000e+00 : f32
    %1089 = vector.broadcast %cst_286 : f32 to vector<1x32xf32>
    %1090 = arith.maximumf %1088, %1089 : vector<1x32xf32>
    %cst_287 = arith.constant dense<0.000000e+00> : vector<1x128xf32>
    %1091 = tpu.matmul %1090, %87, %cst_287 {dimension_numbers = #tpu.dot_dimension_numbers<[1], [0], [0], [1], [0, 0, 1, 1], [], []>} : vector<1x32xf32>, vector<32x128xf32>, vector<1x128xf32> -> vector<1x128xf32>
    %1092 = vector.extract_strided_slice %1091 {offsets = [0, 0], sizes = [1, 32], strides = [1, 1]} : vector<1x128xf32> to vector<1x32xf32>
    %1093 = vector.extract_strided_slice %1068 {offsets = [0, 20], sizes = [1, 32], strides = [1, 1]} : vector<1x128xf32> to vector<1x32xf32>
    %1094 = arith.addf %1092, %1093 : vector<1x32xf32>
    %1095 = vector.extract_strided_slice %88 {offsets = [0, 52], sizes = [1, 32], strides = [1, 1]} : vector<1x128xf32> to vector<1x32xf32>
    %1096 = arith.addf %1094, %1095 : vector<1x32xf32>
    %1097 = arith.negf %1096 : vector<1x32xf32>
    %1098 = math.exp %1097 : vector<1x32xf32>
    %cst_288 = arith.constant 1.000000e+00 : f32
    %1099 = vector.broadcast %cst_288 : f32 to vector<1x32xf32>
    %1100 = arith.addf %1099, %1098 : vector<1x32xf32>
    %1101 = arith.divf %1099, %1100 : vector<1x32xf32>
    %1102 = vector.extract_strided_slice %1091 {offsets = [0, 32], sizes = [1, 32], strides = [1, 1]} : vector<1x128xf32> to vector<1x32xf32>
    %1103 = vector.extract_strided_slice %1068 {offsets = [0, 52], sizes = [1, 32], strides = [1, 1]} : vector<1x128xf32> to vector<1x32xf32>
    %1104 = arith.addf %1102, %1103 : vector<1x32xf32>
    %1105 = vector.extract_strided_slice %88 {offsets = [0, 84], sizes = [1, 32], strides = [1, 1]} : vector<1x128xf32> to vector<1x32xf32>
    %1106 = arith.addf %1104, %1105 : vector<1x32xf32>
    %1107 = arith.negf %1106 : vector<1x32xf32>
    %1108 = math.exp %1107 : vector<1x32xf32>
    %cst_289 = arith.constant 1.000000e+00 : f32
    %1109 = vector.broadcast %cst_289 : f32 to vector<1x32xf32>
    %1110 = arith.addf %1109, %1108 : vector<1x32xf32>
    %1111 = arith.divf %1109, %1110 : vector<1x32xf32>
    %1112 = vector.extract_strided_slice %1091 {offsets = [0, 64], sizes = [1, 32], strides = [1, 1]} : vector<1x128xf32> to vector<1x32xf32>
    %1113 = vector.extract_strided_slice %89 {offsets = [0, 0], sizes = [1, 32], strides = [1, 1]} : vector<1x128xf32> to vector<1x32xf32>
    %1114 = arith.addf %1112, %1113 : vector<1x32xf32>
    %1115 = vector.extract_strided_slice %1068 {offsets = [0, 84], sizes = [1, 32], strides = [1, 1]} : vector<1x128xf32> to vector<1x32xf32>
    %1116 = vector.extract_strided_slice %89 {offsets = [0, 32], sizes = [1, 32], strides = [1, 1]} : vector<1x128xf32> to vector<1x32xf32>
    %1117 = arith.addf %1115, %1116 : vector<1x32xf32>
    %1118 = arith.mulf %1101, %1117 : vector<1x32xf32>
    %1119 = arith.addf %1114, %1118 : vector<1x32xf32>
    %1120 = math.tanh %1119 : vector<1x32xf32>
    %cst_290 = arith.constant 1.000000e+00 : f32
    %1121 = vector.broadcast %cst_290 : f32 to vector<1x32xf32>
    %1122 = arith.subf %1121, %1111 : vector<1x32xf32>
    %1123 = arith.mulf %1122, %1120 : vector<1x32xf32>
    %1124 = arith.mulf %1111, %1064 : vector<1x32xf32>
    %1125 = arith.addf %1123, %1124 : vector<1x32xf32>
    %c16_291 = arith.constant 16 : index
    %c0_292 = arith.constant 0 : index
    %1126 = vector.load %arg8[%c16_291, %c0_292] : memref<20x32xf32, #tpu.memory_space<vmem>>, vector<1x32xf32>
    tpu.vector_store %arg8[%c16_291, %c0_292], %1125 {strides = array<i32>} : memref<20x32xf32, #tpu.memory_space<vmem>>, vector<1x32xf32>,
    %c16_293 = arith.constant 16 : index
    %c0_294 = arith.constant 0 : index
    %1127 = vector.load %arg9[%c16_293, %c0_294] : memref<20x20xf32, #tpu.memory_space<vmem>>, vector<1x20xf32>
    tpu.vector_store %arg9[%c16_293, %c0_294], %1082 {strides = array<i32>} : memref<20x20xf32, #tpu.memory_space<vmem>>, vector<1x20xf32>,
    %1128 = vector.extract_strided_slice %82 {offsets = [17, 0], sizes = [1, 128], strides = [1, 1]} : vector<20x128xf32> to vector<1x128xf32>
    %cst_295 = arith.constant dense<0.000000e+00> : vector<1x128xf32>
    %1129 = tpu.matmul %1125, %86, %cst_295 {dimension_numbers = #tpu.dot_dimension_numbers<[1], [0], [0], [1], [0, 0, 1, 1], [], []>} : vector<1x32xf32>, vector<32x128xf32>, vector<1x128xf32> -> vector<1x128xf32>
    %1130 = vector.extract_strided_slice %1128 {offsets = [0, 0], sizes = [1, 20], strides = [1, 1]} : vector<1x128xf32> to vector<1x20xf32>
    %1131 = vector.extract_strided_slice %1129 {offsets = [0, 0], sizes = [1, 20], strides = [1, 1]} : vector<1x128xf32> to vector<1x20xf32>
    %1132 = arith.addf %1130, %1131 : vector<1x20xf32>
    %1133 = vector.extract_strided_slice %88 {offsets = [0, 0], sizes = [1, 20], strides = [1, 1]} : vector<1x128xf32> to vector<1x20xf32>
    %1134 = arith.addf %1132, %1133 : vector<1x20xf32>
    %cst_296 = arith.constant dense<0xFF800000> : vector<1xf32>
    %1135 = vector.multi_reduction <maximumf>, %1134, %cst_296 [1] : vector<1x20xf32> to vector<1xf32>
    %1136 = vector.shape_cast %1135 : vector<1xf32> to vector<1x1xf32>
    %1137 = vector.broadcast %1136 : vector<1x1xf32> to vector<1x20xf32>
    %1138 = arith.subf %1134, %1137 : vector<1x20xf32>
    %1139 = math.exp %1138 : vector<1x20xf32>
    %cst_297 = arith.constant dense<0.000000e+00> : vector<1xf32>
    %1140 = vector.multi_reduction <add>, %1139, %cst_297 [1] : vector<1x20xf32> to vector<1xf32>
    %1141 = vector.shape_cast %1140 : vector<1xf32> to vector<1x1xf32>
    %1142 = vector.broadcast %1141 : vector<1x1xf32> to vector<1x20xf32>
    %1143 = arith.divf %1139, %1142 : vector<1x20xf32>
    %cst_298 = arith.constant dense<0.000000e+00> : vector<1x128xf32>
    %1144 = tpu.matmul %1143, %85, %cst_298 {dimension_numbers = #tpu.dot_dimension_numbers<[1], [0], [0], [1], [0, 0, 1, 1], [], []>} : vector<1x20xf32>, vector<20x128xf32>, vector<1x128xf32> -> vector<1x128xf32>
    %1145 = vector.extract_strided_slice %1128 {offsets = [0, 20], sizes = [1, 32], strides = [1, 1]} : vector<1x128xf32> to vector<1x32xf32>
    %1146 = vector.extract_strided_slice %1144 {offsets = [0, 0], sizes = [1, 32], strides = [1, 1]} : vector<1x128xf32> to vector<1x32xf32>
    %1147 = arith.addf %1145, %1146 : vector<1x32xf32>
    %1148 = vector.extract_strided_slice %88 {offsets = [0, 20], sizes = [1, 32], strides = [1, 1]} : vector<1x128xf32> to vector<1x32xf32>
    %1149 = arith.addf %1147, %1148 : vector<1x32xf32>
    %cst_299 = arith.constant 0.000000e+00 : f32
    %1150 = vector.broadcast %cst_299 : f32 to vector<1x32xf32>
    %1151 = arith.maximumf %1149, %1150 : vector<1x32xf32>
    %cst_300 = arith.constant dense<0.000000e+00> : vector<1x128xf32>
    %1152 = tpu.matmul %1151, %87, %cst_300 {dimension_numbers = #tpu.dot_dimension_numbers<[1], [0], [0], [1], [0, 0, 1, 1], [], []>} : vector<1x32xf32>, vector<32x128xf32>, vector<1x128xf32> -> vector<1x128xf32>
    %1153 = vector.extract_strided_slice %1152 {offsets = [0, 0], sizes = [1, 32], strides = [1, 1]} : vector<1x128xf32> to vector<1x32xf32>
    %1154 = vector.extract_strided_slice %1129 {offsets = [0, 20], sizes = [1, 32], strides = [1, 1]} : vector<1x128xf32> to vector<1x32xf32>
    %1155 = arith.addf %1153, %1154 : vector<1x32xf32>
    %1156 = vector.extract_strided_slice %88 {offsets = [0, 52], sizes = [1, 32], strides = [1, 1]} : vector<1x128xf32> to vector<1x32xf32>
    %1157 = arith.addf %1155, %1156 : vector<1x32xf32>
    %1158 = arith.negf %1157 : vector<1x32xf32>
    %1159 = math.exp %1158 : vector<1x32xf32>
    %cst_301 = arith.constant 1.000000e+00 : f32
    %1160 = vector.broadcast %cst_301 : f32 to vector<1x32xf32>
    %1161 = arith.addf %1160, %1159 : vector<1x32xf32>
    %1162 = arith.divf %1160, %1161 : vector<1x32xf32>
    %1163 = vector.extract_strided_slice %1152 {offsets = [0, 32], sizes = [1, 32], strides = [1, 1]} : vector<1x128xf32> to vector<1x32xf32>
    %1164 = vector.extract_strided_slice %1129 {offsets = [0, 52], sizes = [1, 32], strides = [1, 1]} : vector<1x128xf32> to vector<1x32xf32>
    %1165 = arith.addf %1163, %1164 : vector<1x32xf32>
    %1166 = vector.extract_strided_slice %88 {offsets = [0, 84], sizes = [1, 32], strides = [1, 1]} : vector<1x128xf32> to vector<1x32xf32>
    %1167 = arith.addf %1165, %1166 : vector<1x32xf32>
    %1168 = arith.negf %1167 : vector<1x32xf32>
    %1169 = math.exp %1168 : vector<1x32xf32>
    %cst_302 = arith.constant 1.000000e+00 : f32
    %1170 = vector.broadcast %cst_302 : f32 to vector<1x32xf32>
    %1171 = arith.addf %1170, %1169 : vector<1x32xf32>
    %1172 = arith.divf %1170, %1171 : vector<1x32xf32>
    %1173 = vector.extract_strided_slice %1152 {offsets = [0, 64], sizes = [1, 32], strides = [1, 1]} : vector<1x128xf32> to vector<1x32xf32>
    %1174 = vector.extract_strided_slice %89 {offsets = [0, 0], sizes = [1, 32], strides = [1, 1]} : vector<1x128xf32> to vector<1x32xf32>
    %1175 = arith.addf %1173, %1174 : vector<1x32xf32>
    %1176 = vector.extract_strided_slice %1129 {offsets = [0, 84], sizes = [1, 32], strides = [1, 1]} : vector<1x128xf32> to vector<1x32xf32>
    %1177 = vector.extract_strided_slice %89 {offsets = [0, 32], sizes = [1, 32], strides = [1, 1]} : vector<1x128xf32> to vector<1x32xf32>
    %1178 = arith.addf %1176, %1177 : vector<1x32xf32>
    %1179 = arith.mulf %1162, %1178 : vector<1x32xf32>
    %1180 = arith.addf %1175, %1179 : vector<1x32xf32>
    %1181 = math.tanh %1180 : vector<1x32xf32>
    %cst_303 = arith.constant 1.000000e+00 : f32
    %1182 = vector.broadcast %cst_303 : f32 to vector<1x32xf32>
    %1183 = arith.subf %1182, %1172 : vector<1x32xf32>
    %1184 = arith.mulf %1183, %1181 : vector<1x32xf32>
    %1185 = arith.mulf %1172, %1125 : vector<1x32xf32>
    %1186 = arith.addf %1184, %1185 : vector<1x32xf32>
    %c17_304 = arith.constant 17 : index
    %c0_305 = arith.constant 0 : index
    %1187 = vector.load %arg8[%c17_304, %c0_305] : memref<20x32xf32, #tpu.memory_space<vmem>>, vector<1x32xf32>
    tpu.vector_store %arg8[%c17_304, %c0_305], %1186 {strides = array<i32>} : memref<20x32xf32, #tpu.memory_space<vmem>>, vector<1x32xf32>,
    %c17_306 = arith.constant 17 : index
    %c0_307 = arith.constant 0 : index
    %1188 = vector.load %arg9[%c17_306, %c0_307] : memref<20x20xf32, #tpu.memory_space<vmem>>, vector<1x20xf32>
    tpu.vector_store %arg9[%c17_306, %c0_307], %1143 {strides = array<i32>} : memref<20x20xf32, #tpu.memory_space<vmem>>, vector<1x20xf32>,
    %1189 = vector.extract_strided_slice %82 {offsets = [18, 0], sizes = [1, 128], strides = [1, 1]} : vector<20x128xf32> to vector<1x128xf32>
    %cst_308 = arith.constant dense<0.000000e+00> : vector<1x128xf32>
    %1190 = tpu.matmul %1186, %86, %cst_308 {dimension_numbers = #tpu.dot_dimension_numbers<[1], [0], [0], [1], [0, 0, 1, 1], [], []>} : vector<1x32xf32>, vector<32x128xf32>, vector<1x128xf32> -> vector<1x128xf32>
    %1191 = vector.extract_strided_slice %1189 {offsets = [0, 0], sizes = [1, 20], strides = [1, 1]} : vector<1x128xf32> to vector<1x20xf32>
    %1192 = vector.extract_strided_slice %1190 {offsets = [0, 0], sizes = [1, 20], strides = [1, 1]} : vector<1x128xf32> to vector<1x20xf32>
    %1193 = arith.addf %1191, %1192 : vector<1x20xf32>
    %1194 = vector.extract_strided_slice %88 {offsets = [0, 0], sizes = [1, 20], strides = [1, 1]} : vector<1x128xf32> to vector<1x20xf32>
    %1195 = arith.addf %1193, %1194 : vector<1x20xf32>
    %cst_309 = arith.constant dense<0xFF800000> : vector<1xf32>
    %1196 = vector.multi_reduction <maximumf>, %1195, %cst_309 [1] : vector<1x20xf32> to vector<1xf32>
    %1197 = vector.shape_cast %1196 : vector<1xf32> to vector<1x1xf32>
    %1198 = vector.broadcast %1197 : vector<1x1xf32> to vector<1x20xf32>
    %1199 = arith.subf %1195, %1198 : vector<1x20xf32>
    %1200 = math.exp %1199 : vector<1x20xf32>
    %cst_310 = arith.constant dense<0.000000e+00> : vector<1xf32>
    %1201 = vector.multi_reduction <add>, %1200, %cst_310 [1] : vector<1x20xf32> to vector<1xf32>
    %1202 = vector.shape_cast %1201 : vector<1xf32> to vector<1x1xf32>
    %1203 = vector.broadcast %1202 : vector<1x1xf32> to vector<1x20xf32>
    %1204 = arith.divf %1200, %1203 : vector<1x20xf32>
    %cst_311 = arith.constant dense<0.000000e+00> : vector<1x128xf32>
    %1205 = tpu.matmul %1204, %85, %cst_311 {dimension_numbers = #tpu.dot_dimension_numbers<[1], [0], [0], [1], [0, 0, 1, 1], [], []>} : vector<1x20xf32>, vector<20x128xf32>, vector<1x128xf32> -> vector<1x128xf32>
    %1206 = vector.extract_strided_slice %1189 {offsets = [0, 20], sizes = [1, 32], strides = [1, 1]} : vector<1x128xf32> to vector<1x32xf32>
    %1207 = vector.extract_strided_slice %1205 {offsets = [0, 0], sizes = [1, 32], strides = [1, 1]} : vector<1x128xf32> to vector<1x32xf32>
    %1208 = arith.addf %1206, %1207 : vector<1x32xf32>
    %1209 = vector.extract_strided_slice %88 {offsets = [0, 20], sizes = [1, 32], strides = [1, 1]} : vector<1x128xf32> to vector<1x32xf32>
    %1210 = arith.addf %1208, %1209 : vector<1x32xf32>
    %cst_312 = arith.constant 0.000000e+00 : f32
    %1211 = vector.broadcast %cst_312 : f32 to vector<1x32xf32>
    %1212 = arith.maximumf %1210, %1211 : vector<1x32xf32>
    %cst_313 = arith.constant dense<0.000000e+00> : vector<1x128xf32>
    %1213 = tpu.matmul %1212, %87, %cst_313 {dimension_numbers = #tpu.dot_dimension_numbers<[1], [0], [0], [1], [0, 0, 1, 1], [], []>} : vector<1x32xf32>, vector<32x128xf32>, vector<1x128xf32> -> vector<1x128xf32>
    %1214 = vector.extract_strided_slice %1213 {offsets = [0, 0], sizes = [1, 32], strides = [1, 1]} : vector<1x128xf32> to vector<1x32xf32>
    %1215 = vector.extract_strided_slice %1190 {offsets = [0, 20], sizes = [1, 32], strides = [1, 1]} : vector<1x128xf32> to vector<1x32xf32>
    %1216 = arith.addf %1214, %1215 : vector<1x32xf32>
    %1217 = vector.extract_strided_slice %88 {offsets = [0, 52], sizes = [1, 32], strides = [1, 1]} : vector<1x128xf32> to vector<1x32xf32>
    %1218 = arith.addf %1216, %1217 : vector<1x32xf32>
    %1219 = arith.negf %1218 : vector<1x32xf32>
    %1220 = math.exp %1219 : vector<1x32xf32>
    %cst_314 = arith.constant 1.000000e+00 : f32
    %1221 = vector.broadcast %cst_314 : f32 to vector<1x32xf32>
    %1222 = arith.addf %1221, %1220 : vector<1x32xf32>
    %1223 = arith.divf %1221, %1222 : vector<1x32xf32>
    %1224 = vector.extract_strided_slice %1213 {offsets = [0, 32], sizes = [1, 32], strides = [1, 1]} : vector<1x128xf32> to vector<1x32xf32>
    %1225 = vector.extract_strided_slice %1190 {offsets = [0, 52], sizes = [1, 32], strides = [1, 1]} : vector<1x128xf32> to vector<1x32xf32>
    %1226 = arith.addf %1224, %1225 : vector<1x32xf32>
    %1227 = vector.extract_strided_slice %88 {offsets = [0, 84], sizes = [1, 32], strides = [1, 1]} : vector<1x128xf32> to vector<1x32xf32>
    %1228 = arith.addf %1226, %1227 : vector<1x32xf32>
    %1229 = arith.negf %1228 : vector<1x32xf32>
    %1230 = math.exp %1229 : vector<1x32xf32>
    %cst_315 = arith.constant 1.000000e+00 : f32
    %1231 = vector.broadcast %cst_315 : f32 to vector<1x32xf32>
    %1232 = arith.addf %1231, %1230 : vector<1x32xf32>
    %1233 = arith.divf %1231, %1232 : vector<1x32xf32>
    %1234 = vector.extract_strided_slice %1213 {offsets = [0, 64], sizes = [1, 32], strides = [1, 1]} : vector<1x128xf32> to vector<1x32xf32>
    %1235 = vector.extract_strided_slice %89 {offsets = [0, 0], sizes = [1, 32], strides = [1, 1]} : vector<1x128xf32> to vector<1x32xf32>
    %1236 = arith.addf %1234, %1235 : vector<1x32xf32>
    %1237 = vector.extract_strided_slice %1190 {offsets = [0, 84], sizes = [1, 32], strides = [1, 1]} : vector<1x128xf32> to vector<1x32xf32>
    %1238 = vector.extract_strided_slice %89 {offsets = [0, 32], sizes = [1, 32], strides = [1, 1]} : vector<1x128xf32> to vector<1x32xf32>
    %1239 = arith.addf %1237, %1238 : vector<1x32xf32>
    %1240 = arith.mulf %1223, %1239 : vector<1x32xf32>
    %1241 = arith.addf %1236, %1240 : vector<1x32xf32>
    %1242 = math.tanh %1241 : vector<1x32xf32>
    %cst_316 = arith.constant 1.000000e+00 : f32
    %1243 = vector.broadcast %cst_316 : f32 to vector<1x32xf32>
    %1244 = arith.subf %1243, %1233 : vector<1x32xf32>
    %1245 = arith.mulf %1244, %1242 : vector<1x32xf32>
    %1246 = arith.mulf %1233, %1186 : vector<1x32xf32>
    %1247 = arith.addf %1245, %1246 : vector<1x32xf32>
    %c18_317 = arith.constant 18 : index
    %c0_318 = arith.constant 0 : index
    %1248 = vector.load %arg8[%c18_317, %c0_318] : memref<20x32xf32, #tpu.memory_space<vmem>>, vector<1x32xf32>
    tpu.vector_store %arg8[%c18_317, %c0_318], %1247 {strides = array<i32>} : memref<20x32xf32, #tpu.memory_space<vmem>>, vector<1x32xf32>,
    %c18_319 = arith.constant 18 : index
    %c0_320 = arith.constant 0 : index
    %1249 = vector.load %arg9[%c18_319, %c0_320] : memref<20x20xf32, #tpu.memory_space<vmem>>, vector<1x20xf32>
    tpu.vector_store %arg9[%c18_319, %c0_320], %1204 {strides = array<i32>} : memref<20x20xf32, #tpu.memory_space<vmem>>, vector<1x20xf32>,
    %1250 = vector.extract_strided_slice %82 {offsets = [19, 0], sizes = [1, 128], strides = [1, 1]} : vector<20x128xf32> to vector<1x128xf32>
    %cst_321 = arith.constant dense<0.000000e+00> : vector<1x128xf32>
    %1251 = tpu.matmul %1247, %86, %cst_321 {dimension_numbers = #tpu.dot_dimension_numbers<[1], [0], [0], [1], [0, 0, 1, 1], [], []>} : vector<1x32xf32>, vector<32x128xf32>, vector<1x128xf32> -> vector<1x128xf32>
    %1252 = vector.extract_strided_slice %1250 {offsets = [0, 0], sizes = [1, 20], strides = [1, 1]} : vector<1x128xf32> to vector<1x20xf32>
    %1253 = vector.extract_strided_slice %1251 {offsets = [0, 0], sizes = [1, 20], strides = [1, 1]} : vector<1x128xf32> to vector<1x20xf32>
    %1254 = arith.addf %1252, %1253 : vector<1x20xf32>
    %1255 = vector.extract_strided_slice %88 {offsets = [0, 0], sizes = [1, 20], strides = [1, 1]} : vector<1x128xf32> to vector<1x20xf32>
    %1256 = arith.addf %1254, %1255 : vector<1x20xf32>
    %cst_322 = arith.constant dense<0xFF800000> : vector<1xf32>
    %1257 = vector.multi_reduction <maximumf>, %1256, %cst_322 [1] : vector<1x20xf32> to vector<1xf32>
    %1258 = vector.shape_cast %1257 : vector<1xf32> to vector<1x1xf32>
    %1259 = vector.broadcast %1258 : vector<1x1xf32> to vector<1x20xf32>
    %1260 = arith.subf %1256, %1259 : vector<1x20xf32>
    %1261 = math.exp %1260 : vector<1x20xf32>
    %cst_323 = arith.constant dense<0.000000e+00> : vector<1xf32>
    %1262 = vector.multi_reduction <add>, %1261, %cst_323 [1] : vector<1x20xf32> to vector<1xf32>
    %1263 = vector.shape_cast %1262 : vector<1xf32> to vector<1x1xf32>
    %1264 = vector.broadcast %1263 : vector<1x1xf32> to vector<1x20xf32>
    %1265 = arith.divf %1261, %1264 : vector<1x20xf32>
    %cst_324 = arith.constant dense<0.000000e+00> : vector<1x128xf32>
    %1266 = tpu.matmul %1265, %85, %cst_324 {dimension_numbers = #tpu.dot_dimension_numbers<[1], [0], [0], [1], [0, 0, 1, 1], [], []>} : vector<1x20xf32>, vector<20x128xf32>, vector<1x128xf32> -> vector<1x128xf32>
    %1267 = vector.extract_strided_slice %1250 {offsets = [0, 20], sizes = [1, 32], strides = [1, 1]} : vector<1x128xf32> to vector<1x32xf32>
    %1268 = vector.extract_strided_slice %1266 {offsets = [0, 0], sizes = [1, 32], strides = [1, 1]} : vector<1x128xf32> to vector<1x32xf32>
    %1269 = arith.addf %1267, %1268 : vector<1x32xf32>
    %1270 = vector.extract_strided_slice %88 {offsets = [0, 20], sizes = [1, 32], strides = [1, 1]} : vector<1x128xf32> to vector<1x32xf32>
    %1271 = arith.addf %1269, %1270 : vector<1x32xf32>
    %cst_325 = arith.constant 0.000000e+00 : f32
    %1272 = vector.broadcast %cst_325 : f32 to vector<1x32xf32>
    %1273 = arith.maximumf %1271, %1272 : vector<1x32xf32>
    %cst_326 = arith.constant dense<0.000000e+00> : vector<1x128xf32>
    %1274 = tpu.matmul %1273, %87, %cst_326 {dimension_numbers = #tpu.dot_dimension_numbers<[1], [0], [0], [1], [0, 0, 1, 1], [], []>} : vector<1x32xf32>, vector<32x128xf32>, vector<1x128xf32> -> vector<1x128xf32>
    %1275 = vector.extract_strided_slice %1274 {offsets = [0, 0], sizes = [1, 32], strides = [1, 1]} : vector<1x128xf32> to vector<1x32xf32>
    %1276 = vector.extract_strided_slice %1251 {offsets = [0, 20], sizes = [1, 32], strides = [1, 1]} : vector<1x128xf32> to vector<1x32xf32>
    %1277 = arith.addf %1275, %1276 : vector<1x32xf32>
    %1278 = vector.extract_strided_slice %88 {offsets = [0, 52], sizes = [1, 32], strides = [1, 1]} : vector<1x128xf32> to vector<1x32xf32>
    %1279 = arith.addf %1277, %1278 : vector<1x32xf32>
    %1280 = arith.negf %1279 : vector<1x32xf32>
    %1281 = math.exp %1280 : vector<1x32xf32>
    %cst_327 = arith.constant 1.000000e+00 : f32
    %1282 = vector.broadcast %cst_327 : f32 to vector<1x32xf32>
    %1283 = arith.addf %1282, %1281 : vector<1x32xf32>
    %1284 = arith.divf %1282, %1283 : vector<1x32xf32>
    %1285 = vector.extract_strided_slice %1274 {offsets = [0, 32], sizes = [1, 32], strides = [1, 1]} : vector<1x128xf32> to vector<1x32xf32>
    %1286 = vector.extract_strided_slice %1251 {offsets = [0, 52], sizes = [1, 32], strides = [1, 1]} : vector<1x128xf32> to vector<1x32xf32>
    %1287 = arith.addf %1285, %1286 : vector<1x32xf32>
    %1288 = vector.extract_strided_slice %88 {offsets = [0, 84], sizes = [1, 32], strides = [1, 1]} : vector<1x128xf32> to vector<1x32xf32>
    %1289 = arith.addf %1287, %1288 : vector<1x32xf32>
    %1290 = arith.negf %1289 : vector<1x32xf32>
    %1291 = math.exp %1290 : vector<1x32xf32>
    %cst_328 = arith.constant 1.000000e+00 : f32
    %1292 = vector.broadcast %cst_328 : f32 to vector<1x32xf32>
    %1293 = arith.addf %1292, %1291 : vector<1x32xf32>
    %1294 = arith.divf %1292, %1293 : vector<1x32xf32>
    %1295 = vector.extract_strided_slice %1274 {offsets = [0, 64], sizes = [1, 32], strides = [1, 1]} : vector<1x128xf32> to vector<1x32xf32>
    %1296 = vector.extract_strided_slice %89 {offsets = [0, 0], sizes = [1, 32], strides = [1, 1]} : vector<1x128xf32> to vector<1x32xf32>
    %1297 = arith.addf %1295, %1296 : vector<1x32xf32>
    %1298 = vector.extract_strided_slice %1251 {offsets = [0, 84], sizes = [1, 32], strides = [1, 1]} : vector<1x128xf32> to vector<1x32xf32>
    %1299 = vector.extract_strided_slice %89 {offsets = [0, 32], sizes = [1, 32], strides = [1, 1]} : vector<1x128xf32> to vector<1x32xf32>
    %1300 = arith.addf %1298, %1299 : vector<1x32xf32>
    %1301 = arith.mulf %1284, %1300 : vector<1x32xf32>
    %1302 = arith.addf %1297, %1301 : vector<1x32xf32>
    %1303 = math.tanh %1302 : vector<1x32xf32>
    %cst_329 = arith.constant 1.000000e+00 : f32
    %1304 = vector.broadcast %cst_329 : f32 to vector<1x32xf32>
    %1305 = arith.subf %1304, %1294 : vector<1x32xf32>
    %1306 = arith.mulf %1305, %1303 : vector<1x32xf32>
    %1307 = arith.mulf %1294, %1247 : vector<1x32xf32>
    %1308 = arith.addf %1306, %1307 : vector<1x32xf32>
    %c19_330 = arith.constant 19 : index
    %c0_331 = arith.constant 0 : index
    %1309 = vector.load %arg8[%c19_330, %c0_331] : memref<20x32xf32, #tpu.memory_space<vmem>>, vector<1x32xf32>
    tpu.vector_store %arg8[%c19_330, %c0_331], %1308 {strides = array<i32>} : memref<20x32xf32, #tpu.memory_space<vmem>>, vector<1x32xf32>,
    %c19_332 = arith.constant 19 : index
    %c0_333 = arith.constant 0 : index
    %1310 = vector.load %arg9[%c19_332, %c0_333] : memref<20x20xf32, #tpu.memory_space<vmem>>, vector<1x20xf32>
    tpu.vector_store %arg9[%c19_332, %c0_333], %1265 {strides = array<i32>} : memref<20x20xf32, #tpu.memory_space<vmem>>, vector<1x20xf32>,
    %c0_334 = arith.constant 0 : index
    %c0_335 = arith.constant 0 : index
    %1311 = vector.load %arg8[%c0_334, %c0_335] : memref<20x32xf32, #tpu.memory_space<vmem>>, vector<20x32xf32>
    %c0_336 = arith.constant 0 : index
    %c0_337 = arith.constant 0 : index
    %1312 = vector.load %arg9[%c0_336, %c0_337] : memref<20x20xf32, #tpu.memory_space<vmem>>, vector<20x20xf32>
    %c128 = arith.constant 128 : index
    %c0_338 = arith.constant 0 : index
    %1313 = vector.load %arg5[%c128, %c0_338] : memref<176x128xf32, #tpu.memory_space<vmem>>, vector<32x128xf32>
    %cst_339 = arith.constant dense<0.000000e+00> : vector<20x128xf32>
    %1314 = tpu.matmul %1311, %1313, %cst_339 {dimension_numbers = #tpu.dot_dimension_numbers<[1], [0], [0], [1], [0, 0, 1, 1], [], []>} : vector<20x32xf32>, vector<32x128xf32>, vector<20x128xf32> -> vector<20x128xf32>
    %1315 = vector.extract_strided_slice %1314 {offsets = [0, 0], sizes = [20, 64], strides = [1, 1]} : vector<20x128xf32> to vector<20x64xf32>
    %1316 = vector.extract_strided_slice %89 {offsets = [0, 64], sizes = [1, 64], strides = [1, 1]} : vector<1x128xf32> to vector<1x64xf32>
    %1317 = vector.broadcast %1316 : vector<1x64xf32> to vector<20x64xf32>
    %1318 = arith.addf %1315, %1317 : vector<20x64xf32>
    %cst_340 = arith.constant dense<0xFF800000> : vector<20xf32>
    %1319 = vector.multi_reduction <maximumf>, %1318, %cst_340 [1] : vector<20x64xf32> to vector<20xf32>
    %1320 = vector.shape_cast %1319 : vector<20xf32> to vector<20x1xf32>
    %1321 = vector.broadcast %1320 : vector<20x1xf32> to vector<20x64xf32>
    %1322 = arith.subf %1318, %1321 : vector<20x64xf32>
    %1323 = math.exp %1322 : vector<20x64xf32>
    %cst_341 = arith.constant dense<0.000000e+00> : vector<20xf32>
    %1324 = vector.multi_reduction <add>, %1323, %cst_341 [1] : vector<20x64xf32> to vector<20xf32>
    %1325 = vector.shape_cast %1324 : vector<20xf32> to vector<20x1xf32>
    %1326 = math.log %1325 : vector<20x1xf32>
    %1327 = vector.broadcast %1326 : vector<20x1xf32> to vector<20x64xf32>
    %1328 = arith.subf %1322, %1327 : vector<20x64xf32>
    %c0_342 = arith.constant 0 : index
    %c0_343 = arith.constant 0 : index
    %1329 = vector.load %arg6[%c0_342, %c0_343] : memref<20x128xf32, #tpu.memory_space<vmem>>, vector<20x64xf32>
    tpu.vector_store %arg6[%c0_342, %c0_343], %1328 {strides = array<i32>} : memref<20x128xf32, #tpu.memory_space<vmem>>, vector<20x64xf32>,
    %c0_344 = arith.constant 0 : index
    %c64_345 = arith.constant 64 : index
    %1330 = vector.load %arg6[%c0_344, %c64_345] : memref<20x128xf32, #tpu.memory_space<vmem>>, vector<20x32xf32>
    tpu.vector_store %arg6[%c0_344, %c64_345], %1311 {strides = array<i32>} : memref<20x128xf32, #tpu.memory_space<vmem>>, vector<20x32xf32>,
    %c0_346 = arith.constant 0 : index
    %c96_347 = arith.constant 96 : index
    %1331 = vector.load %arg6[%c0_346, %c96_347] : memref<20x128xf32, #tpu.memory_space<vmem>>, vector<20x20xf32>
    tpu.vector_store %arg6[%c0_346, %c96_347], %1312 {strides = array<i32>} : memref<20x128xf32, #tpu.memory_space<vmem>>, vector<20x20xf32>,
    %cst_348 = arith.constant 0.000000e+00 : f32
    %1332 = vector.broadcast %cst_348 : f32 to vector<20x12xf32>
    %c0_349 = arith.constant 0 : index
    %c116 = arith.constant 116 : index
    %1333 = vector.load %arg6[%c0_349, %c116] : memref<20x128xf32, #tpu.memory_space<vmem>>, vector<20x12xf32>
    tpu.vector_store %arg6[%c0_349, %c116], %1332 {strides = array<i32>} : memref<20x128xf32, #tpu.memory_space<vmem>>, vector<20x12xf32>,
    return
  }
  func.func @transform_0(%arg0: i32, %arg1: memref<20xi32, #tpu.memory_space<smem>>) -> (i32, i32) {
    %c0_i32 = arith.constant 0 : i32
    %c0_i32_0 = arith.constant 0 : i32
    %c0_i32_1 = arith.constant 0 : i32
    return %c0_i32, %c0_i32_0 : i32, i32
  }
  func.func @transform_1(%arg0: i32, %arg1: memref<20xi32, #tpu.memory_space<smem>>) -> (i32, i32) {
    %c0_i32 = arith.constant 0 : i32
    %c0_i32_0 = arith.constant 0 : i32
    %c0_i32_1 = arith.constant 0 : i32
    return %c0_i32, %c0_i32_0 : i32, i32
  }
  func.func @transform_2(%arg0: i32, %arg1: memref<20xi32, #tpu.memory_space<smem>>) -> (i32, i32) {
    %c0_i32 = arith.constant 0 : i32
    %c0_i32_0 = arith.constant 0 : i32
    %c0_i32_1 = arith.constant 0 : i32
    return %c0_i32, %c0_i32_0 : i32, i32
  }
  func.func @transform_3(%arg0: i32, %arg1: memref<20xi32, #tpu.memory_space<smem>>) -> (i32, i32) {
    %c0_i32 = arith.constant 0 : i32
    %c0_i32_0 = arith.constant 0 : i32
    %c0_i32_1 = arith.constant 0 : i32
    return %c0_i32, %c0_i32_0 : i32, i32
  }
  func.func @transform_4(%arg0: i32, %arg1: memref<20xi32, #tpu.memory_space<smem>>) -> (i32, i32) {
    %c0_i32 = arith.constant 0 : i32
    %c0_i32_0 = arith.constant 0 : i32
    %c0_i32_1 = arith.constant 0 : i32
    return %c0_i32, %c0_i32_0 : i32, i32
  }
}

</mosaic_0001>

<bundles_post_ra>
// kernel: attn_decoder_steps.1
= control target key start
LH: loop header
LB: loop body
LE: loop exit
PB: predicated region body
PF: predicated region fallthrough
CT: control target
= control target key end

     0   :  { %s9161_s0 = inlined_call_operand.vmem [shape: s32[20], index: 0, kind: input, shape index: {}]   ;;  %s9162_s1 = inlined_call_operand.vmem [shape: f32[1,32], index: 1, kind: input, shape index: {}]   ;;  %s9163_s2 = inlined_call_operand.vmem [shape: f32[20,32], index: 2, kind: input, shape index: {}]   ;;  %s9164_s3 = inlined_call_operand.vmem [shape: f32[64,32], index: 3, kind: input, shape index: {}]   ;;  %s9165_s4 = inlined_call_operand.hbm [shape: f32[176,128], index: 4, kind: input, shape index: {}]   ;;  %s9166_s5 = inlined_call_operand.vmem [shape: f32[20,128], index: 5, kind: output, shape index: {}]  }
   0x1   :  { %s10_s20 = sshll.u32 %s9161_s0, 4  ;;  %s11_s20 = int_to_ptr.vmem [resolvable:$true] %s10_s20 }
   0x2   :  { %s7895_s21 = scalar_lea.vmem %s11_s20, 16  ;;  %p7900_p1 = scmp.lt.s32.totalorder %s11_s20, %s11_s20 }
   0x3   :  { %p7896_p0 = scmp.ne.s32.totalorder %s11_s20, %s7895_s21  ;;  %p7901_p2 = scmp.lt.s32.totalorder %s7895_s21, %s7895_s21 }
   0x5   :  { %p7902_p3 = por %p7901_p2, %p7900_p1 }
   0x7   :  { %p7903_p4 = pnand %p7902_p3, %p7896_p0 }
   0x9   :  { %7906 = shalt.err (!%p7903_p4)  }
   0xa   :  { %s7933_s22 = smov [#allocation6]  }
   0xb   :  { %13 = dma.vmem_to_smem %s11_s20, 16, %s7933_s22, [#allocation5] }
   0xc   :  { %7929 = dma.done.wait [#allocation5], 16 }
   0xd   :  { %7930 = vsyncadd [#allocation5], 4294967280 }
   0xe   :  { %15 = sfence }
   0xf   :  { %16 = vsyncpa [#allocation8], 0  ;;  %s7934_s23 = smov [#allocation7]   ;;  %s7907_s0 = scalar_lea.hbm %s9165_s4, 2816 }
  0x10   :  { %s28_s24 = sshll.u32 %s7934_s23, 4  ;;  %p7908_p5 = scmp.ne.s32.totalorder %s9165_s4, %s7907_s0  ;;  %s29_s24 = int_to_ptr.vmem [resolvable:$true] %s28_s24 }
  0x11   :  { %p7911_p6 = scmp.lt.u32.totalorder %s7907_s0, %s9165_s4 }
  0x13   :  { %p7913_p7 = pnand %p7911_p6, %p7908_p5 }
  0x15   :  { %7916 = shalt.err (!%p7913_p7)
}
  0x16   :  { %s7917_s6 = scalar_lea.vmem %s29_s24, 2816  ;;  %p7922_p9 = scmp.lt.s32.totalorder %s29_s24, %s29_s24 }
  0x17   :  { %p7918_p8 = scmp.ne.s32.totalorder %s29_s24, %s7917_s6  ;;  %p7923_p10 = scmp.lt.s32.totalorder %s7917_s6, %s7917_s6 }
  0x19   :  { %p7924_p11 = por %p7923_p10, %p7922_p9 }
  0x1b   :  { %p7925_p12 = pnand %p7924_p11, %p7918_p8 }
  0x1d   :  { %7928 = shalt.err (!%p7925_p12)
}
  0x1e   :  { %s7935_s7 = smov 128   ;;  %s7936_s8 = smov 8  }
  0x1f   :  { %34 = dma.hbm_to_vmem [thread:$0]  %s9165_s4, 2816, %s29_s24, [#allocation8], %s7935_s7, %s7935_s7, %s7936_s8  }
  0x20   :  { %7931 = dma.done.wait [#allocation8], 2816  }
  0x21   :  { %7932 = vsyncadd [#allocation8], 4294964480  ;;  %v7937_v0 = vmov 0.0|0.0   ;;  %vm7938_vm0 = vmmov 0   ;;  %v7939_v1 = vmov 0.0   ;;  %s7996_s11 = sld [smem:[#allocation6]] }
  0x22   :  { %7352 = vmatprep.subr.bf16.mxu1 %v7937_v0  ;;  %6700 = vmatprep.mubr.msk.f32.mxu1 %vm7938_vm0, %v7939_v1  ;;  %s7998_s12 = sld [smem:[#allocation6 + $0x1]]  ;;  %s8003_s4 = sld [smem:[#allocation6 + $0x2]]  ;;  %v219_v2 = vld [vmem:[#allocation7 + $0x60] sm:$0xff]  ;;  %v220_v3 = vld [vmem:[#allocation7 + $0x68] sm:$0xff]  ;;  %v221_v4 = vld [vmem:[#allocation7 + $0x70] sm:$0xff]  ;;  %vm41_vm1 = vcmask 253952  }
  0x23   :  { %7346 = vmatprep.subr.bf16.mxu0 %v7937_v0  ;;  %6683 = vmatprep.mubr.msk.f32.mxu0 %vm7938_vm0, %v7939_v1  ;;  %s8005_s13 = sld [smem:[#allocation6 + $0x3]]  ;;  %s8007_s14 = sld [smem:[#allocation6 + $0x4]]  ;;  %v7353_v5 = vpack.c.bf16 %v220_v3, %v219_v2  ;;  %v222_v6 = vld [vmem:[#allocation7 + $0x78] sm:$0xff]  ;;  %v122_v7 = vld [vmem:[#allocation7] sm:$0xff]  ;;  %v123_v10 = vld [vmem:[#allocation7 + $0x8] sm:$0xff]  ;;  %vm126_vm2 = vcmask 261120  }
  0x24   :  { %s8009_s15 = sld [smem:[#allocation6 + $0x5]]  ;;  %s8011_s16 = sld [smem:[#allocation6 + $0x6]]  ;;  %v7356_v8 = vpack.c.bf16 %v222_v6, %v221_v4  ;;  %v312_v9 = vld [vmem:[#allocation7 + $0x20] sm:$0xff]  ;;  %v313_v11 = vld [vmem:[#allocation7 + $0x28] sm:$0xff]  ;;  %v7347_v12 = vpack.c.bf16 %v123_v10, %v122_v7  ;;  %v124_v13 = vld [vmem:[#allocation7 + $0x10] sm:$0xff]  ;;  %vm414_vm3 = vcmask 1043456  }
  0x25   :  { %s8013_s17 = sld [smem:[#allocation6 + $0x7]]  ;;  %7354 = vmatpush3.bf16.msra.mxu1 %v7353_v5  ;;  %v125_v14 = vld [vmem:[#allocation7 + $0x18] sm:$0xff]  ;;  %v8054_v23 = vpack.c.bf16 %v313_v11, %v312_v9  ;;  %v314_v26 = vld [vmem:[#allocation7 + $0x30] sm:$0xff]  ;;  %v217_v28 = vld [vmem:[%s9163_s2 + $0x8] sm:$0xff]  ;;  %vm398_vm4 = vcmask 155648   ;;  %vm410_vm5 = vcmask 162816  }
  0x26   :  { %7355 = vmatprep.subr.bf16.mxu1 %v7937_v0  ;;  %7348 = vmatpush3.bf16.msra.mxu0 %v7347_v12  ;;  %v7350_v18 = vpack.c.bf16 %v125_v14, %v124_v13  ;;  %v216_v22 = vld [vmem:[%s9163_s2] sm:$0xff]  ;;  %v218_v30 = vld [vmem:[%s9163_s2 + $0x10] sm:$0xf]  ;;  %v8109_v43 = vld [vmem:[#allocation7 + $0xa0] sm:$0x1]  ;;  %s7941_s2 = smov 20  }
  0x27   :  { %s39_s20 = scalar_lea.vmem %s9164_s3, %s7996_s11  ;;  %7349 = vmatprep.subr.bf16.mxu0 %v7937_v0  ;;  %v315_v27 = vld [vmem:[#allocation7 + $0x38] sm:$0xff]  ;;  %v8117_v53 = vld [vmem:[#allocation7 + $0xa8] sm:$0x1]  ;;  %v316_v59 = vld [vmem:[#allocation7 + $0x40] sm:$0xff]  ;;  %s6254_s24 = sld [smem:[#allocation6 + $0x9]]  ;;  %vm706_vm6 = vcmask 156673  }
  0x28   :  { %s44_s23 = scalar_lea.vmem %s9164_s3, %s7998_s12  ;;  %s48_s26 = scalar_lea.vmem %s9164_s3, %s8003_s4  ;;  %v40_v15 = vld [vmem:[%s39_s20] sm:$0x1]  ;;  %v8070_v29 = vpack.c.bf16 %v315_v27, %v314_v26  ;;  %v317_v60 = vld [vmem:[#allocation7 + $0x48] sm:$0xff]  ;;  %v318_v62 = vld [vmem:[#allocation7 + $0x50] sm:$0xff]  ;;  %vm993_vm7 = vcmask 157698   ;;  %vm1280_vm8 = vcmask 158723  }
  0x29   :  { %s52_s28 = scalar_lea.vmem %s9164_s3, %s8005_s13  ;;  %s56_s6 = scalar_lea.vmem %s9164_s3, %s8007_s14  ;;  %v45_v16 = vld [vmem:[%s44_s23] sm:$0x1]  ;;  %42 = vst.msk [vmem:[#allocation2] sm:$0x1] %vm41_vm1, %v40_v15  ;;  %7357 = vmatpush3.bf16.msra.mxu1 %v7356_v8  ;;  %v8129_v61 = vpack.c.bf16 %v317_v60, %v316_v59  ;;  %vm1567_vm9 = vcmask 159748   ;;  %vm1854_vm10 = vcmask 160773  }
  0x2a   :  { %s60_s9 = scalar_lea.vmem %s9164_s3, %s8009_s15  ;;  %s64_s12 = scalar_lea.vmem %s9164_s3, %s8011_s16  ;;  %v49_v17 = vld [vmem:[%s48_s26] sm:$0x1]  ;;  %46 = vst.msk [vmem:[#allocation2 + $0x1] sm:$0x1] %vm41_vm1, %v45_v16  ;;  %7358 = vmatprep.subr.bf16.mxu1 %v7937_v0  ;;  %7351 = vmatpush3.bf16.msra.mxu0 %v7350_v18  ;;  %vm2141_vm11 = vcmask 161798   ;;  %vm2428_vm12 = vcmask 162823  }
  0x2b   :  { %s68_s18 = scalar_lea.vmem %s9164_s3, %s8013_s17  ;;  %50 = vst.msk [vmem:[#allocation2 + $0x2] sm:$0x1] %vm41_vm1, %v49_v17  ;;  %v53_v19 = vld [vmem:[%s52_s28] sm:$0x1]  ;;  %7367 = vmatprep.subr.bf16.mxu0 %v7937_v0  ;;  %s6253_s23 = sld [smem:[#allocation6 + $0x8]]  ;;  %v612_v17 = vlaneseq  ;;  %vm6144_vm13 = vcmask 523264  }
  0x2c   :  { %v57_v20 = vld [vmem:[%s56_s6] sm:$0x1]  ;;  %54 = vst.msk [vmem:[#allocation2 + $0x3] sm:$0x1] %vm41_vm1, %v53_v19  ;;  %6701 = vmatmul.mubr.msk.f32.vlgmr.msra.gmra.mrb[0].mxu1 %vm126_vm2, %v216_v22  ;;  %s6255_s25 = sld [smem:[#allocation6 + $0xa]]  ;;  %s6256_s26 = sld [smem:[#allocation6 + $0xb]] }
  0x2d   :  { %v61_v21 = vld [vmem:[%s60_s9] sm:$0x1]  ;;  %58 = vst.msk [vmem:[#allocation2 + $0x4] sm:$0x1] %vm41_vm1, %v57_v20  ;;  %7360 = vmatpush3.bf16.msra.mxu1 %v8054_v23  ;;  %6703 = vmatprep.mubr.msk.f32.mxu1 %vm7938_vm0, %v7939_v1  ;;  %s6257_s0 = sld [smem:[#allocation6 + $0xc]]  ;;  %s6258_s27 = sld [smem:[#allocation6 + $0xd]] }
  0x2e   :  { %62 = vst.msk [vmem:[#allocation2 + $0x5] sm:$0x1] %vm41_vm1, %v61_v21  ;;  %v65_v24 = vld [vmem:[%s64_s12] sm:$0x1]  ;;  %7361 = vmatprep.subr.bf16.mxu1 %v7937_v0  ;;  %s8132_s28 = sld [smem:[#allocation6 + $0xe]]  ;;  %s8134_s29 = sld [smem:[#allocation6 + $0xf]] }
  0x2f   :  { %v69_v25 = vld [vmem:[%s68_s18] sm:$0x1]  ;;  %66 = vst.msk [vmem:[#allocation2 + $0x6] sm:$0x1] %vm41_vm1, %v65_v24  ;;  %s8139_s30 = sld [smem:[#allocation6 + $0x10]]  ;;  %s8141_s6 = sld [smem:[#allocation6 + $0x11]] }
  0x30   :  { %70 = vst.msk [vmem:[#allocation2 + $0x7] sm:$0x1] %vm41_vm1, %v69_v25  ;;  %6704 = vmatmul.mubr.msk.f32.gmra.mrb[2].mxu1 %vm126_vm2, %v217_v28  ;;  %v8091_v32 = vld [vmem:[%s9162_s1] sm:$0x1]  ;;  %s7940_s1 = smov 52   ;;  %s8143_s7 = sld [smem:[#allocation6 + $0x12]] }
  0x31   :  { %6706 = vmatprep.mubr.msk.f32.mxu1 %vm7938_vm0, %v7939_v1  ;;  %7363 = vmatpush3.bf16.msra.mxu1 %v8070_v29  ;;  %v319_v63 = vld [vmem:[#allocation7 + $0x58] sm:$0xff]  ;;  %s8145_s8 = sld [smem:[#allocation6 + $0x13]]  ;;  %s72_s11 = scalar_lea.vmem %s9164_s3, %s6253_s23  ;;  %v613_v18 = vshrl.u32 %v612_v17, 7  ;;  %vm6151_vm14 = vcmask 519168   ;;  %vm6194_vm15 = vcmask 785920  }
  0x32   :  { %7364 = vmatprep.subr.bf16.mxu1 %v7937_v0  ;;  %v8136_v2 = vpack.c.bf16 %v319_v63, %v318_v62  ;;  %s76_s13 = scalar_lea.vmem %s9164_s3, %s6254_s24  ;;  %v73_v3 = vld [vmem:[%s72_s11] sm:$0x1]  ;;  %s80_s15 = scalar_lea.vmem %s9164_s3, %s6255_s25 }
  0x33   :  { %v77_v4 = vld [vmem:[%s76_s13] sm:$0x1]  ;;  %s84_s19 = scalar_lea.vmem %s9164_s3, %s6256_s26  ;;  %74 = vst.msk [vmem:[#allocation2 + $0x8] sm:$0x1] %vm41_vm1, %v73_v3  ;;  %s88_s22 = scalar_lea.vmem %s9164_s3, %s6257_s0  ;;  %v614_v20 = vsub.s32 0, %v613_v18 }
  0x34   :  { %6707 = vmatmul.mubr.msk.f32.gmra.mrb[4].mxu1 %vm126_vm2, %v218_v30  ;;  %78 = vst.msk [vmem:[#allocation2 + $0x9] sm:$0x1] %vm41_vm1, %v77_v4  ;;  %v81_v5 = vld [vmem:[%s80_s15] sm:$0x1]  ;;  %s92_s24 = scalar_lea.vmem %s9164_s3, %s6258_s27  ;;  %s96_s9 = scalar_lea.vmem %s9164_s3, %s8132_s28 }
  0x35   :  { %6717 = vmatprep.mubr.msk.f32.mxu1 %vm7938_vm0, %v7939_v1  ;;  %v85_v6 = vld [vmem:[%s84_s19] sm:$0x1]  ;;  %82 = vst.msk [vmem:[#allocation2 + $0xa] sm:$0x1] %vm41_vm1, %v81_v5  ;;  %s100_s11 = scalar_lea.vmem %s9164_s3, %s8134_s29  ;;  %s104_s4 = scalar_lea.vmem %s9164_s3, %s8139_s30  ;;  %v615_v25 = vrot.slane %v8091_v32, %v614_v20  ;;  %v8256_v5 = vrot.slane %v8109_v43, 7 }
  0x36   :  { %86 = vst.msk [vmem:[#allocation2 + $0xb] sm:$0x1] %vm41_vm1, %v85_v6  ;;  %v89_v7 = vld [vmem:[%s88_s22] sm:$0x1]  ;;  %s108_s14 = scalar_lea.vmem %s9164_s3, %s8141_s6  ;;  %s112_s15 = scalar_lea.vmem %s9164_s3, %s8143_s7 }
  0x37   :  { %v119_v31 = vld [vmem:[#allocation2] sm:$0xff]  ;;  %90 = vst.msk [vmem:[#allocation2 + $0xc] sm:$0x1] %vm41_vm1, %v89_v7  ;;  %s116_s19 = scalar_lea.vmem %s9164_s3, %s8145_s8  ;;  %s7942_s3 = smov 108  }
  0x38   :  { %6684 = vmatmul.mubr.msk.f32.vlgmr.msra.gmra.mrb[0].mxu0 %vm126_vm2, %v119_v31  ;;  %6718 = vmatmul.mubr.msk.f32.vlgmr.msra.gmra.mrb[6].mxu1 %vm126_vm2, %v8091_v32  ;;  %v93_v8 = vld [vmem:[%s92_s24] sm:$0x1]  ;;  %s7943_s30 = smov 32   ;;  %s7944_s6 = smov 76  }
  0x39   :  { %6686 = vmatprep.mubr.msk.f32.mxu0 %vm7938_vm0, %v7939_v1  ;;  %6726 = vmatprep.mubr.msk.f32.mxu1 %vm7938_vm0, %v7939_v1  ;;  %94 = vst.msk [vmem:[#allocation2 + $0xd] sm:$0x1] %vm41_vm1, %v93_v8  ;;  %v97_v9 = vld [vmem:[%s96_s9] sm:$0x1]  ;;  %s7945_s7 = smov 44   ;;  %s7946_s8 = smov 64  }
  0x3a   :  { %7369 = vmatpush3.bf16.msra.mxu0 %v8129_v61  ;;  %v101_v10 = vld [vmem:[%s100_s11] sm:$0x1]  ;;  %98 = vst.msk [vmem:[#allocation2 + $0xe] sm:$0x1] %vm41_vm1, %v97_v9  ;;  %s7947_s20 = smov 96  }
  0x3b   :  { %7370 = vmatprep.subr.bf16.mxu0 %v7937_v0  ;;  %102 = vst.msk [vmem:[#allocation2 + $0xf] sm:$0x1] %vm41_vm1, %v101_v10  ;;  %v105_v11 = vld [vmem:[%s104_s4] sm:$0x1] }
  0x3c   :  { %v109_v12 = vld [vmem:[%s108_s14] sm:$0x1]  ;;  %106 = vst.msk [vmem:[#allocation2 + $0x10] sm:$0x1] %vm41_vm1, %v105_v11 }
  0x3d   :  { %110 = vst.msk [vmem:[#allocation2 + $0x11] sm:$0x1] %vm41_vm1, %v109_v12  ;;  %v113_v13 = vld [vmem:[%s112_s15] sm:$0x1] }
  0x3e   :  { %7372 = vmatpush3.bf16.msra.mxu0 %v8136_v2  ;;  %v117_v14 = vld [vmem:[%s116_s19] sm:$0x1]  ;;  %114 = vst.msk [vmem:[#allocation2 + $0x12] sm:$0x1] %vm41_vm1, %v113_v13 }
  0x3f   :  { %7379 = vmatprep.subr.bf16.mxu0 %v7937_v0  ;;  %118 = vst.msk [vmem:[#allocation2 + $0x13] sm:$0x1] %vm41_vm1, %v117_v14 }
  0x42   :  { %v120_v15 = vld [vmem:[#allocation2 + $0x8] sm:$0xff] }
  0x43   :  { %6687 = vmatmul.mubr.msk.f32.gmra.mrb[2].mxu0 %vm126_vm2, %v120_v15 }
  0x44   :  { %6689 = vmatprep.mubr.msk.f32.mxu0 %vm7938_vm0, %v7939_v1 }
  0x46   :  { %v121_v16 = vld [vmem:[#allocation2 + $0x10] sm:$0xf] }
  0x47   :  { %6690 = vmatmul.mubr.msk.f32.gmra.mrb[4].mxu0 %vm126_vm2, %v121_v16 }
  0x48   :  { %6737 = vmatprep.mubr.msk.f32.mxu0 %vm7938_vm0, %v7939_v1 }
  0xff   :  { %v298_v33 = vpop.f32.mrb[0].mxu1 }
 0x100   :  { %v6702_v34 = vpop.f32.mrb[1].mxu1 }
 0x103   :  { %v303_v35 = vpop.f32.mrb[2].mxu1 }
 0x104   :  { %v8097_v36 = vpack.c.bf16 %v303_v35, %v298_v33  ;;  %v6705_v37 = vpop.f32.mrb[3].mxu1 }
 0x106   :  { %7366 = vmatpush3.bf16.msra.mxu1 %v8097_v36 }
 0x107   :  { %v8102_v40 = vpop.f32.mrb[4].mxu1  ;;  %6724 = vmatprep.subr.mxu1 %v7939_v1 }
 0x108   :  { %v6708_v41 = vpop.f32.mrb[5].mxu1 }
 0x10a   :  { %6725 = vmatpush3.msk.msra.mxu1 %vm414_vm3, %v8102_v40 }
 0x10b   :  { %v8099_v38 = vpop.f32.mrb[0].mxu0  ;;  %v8107_v42 = vpop.f32.mrb[6].mxu1  ;;  %7373 = vmatprep.subr.bf16.mxu1 %v7937_v0 }
 0x10c   :  { %v6685_v39 = vpop.f32.mrb[1].mxu0  ;;  %v396_v44 = vadd.f32 %v8107_v42, %v8099_v38  ;;  %v6719_v45 = vpop.f32.mrb[7].mxu1 }
 0x10e   :  { %v397_v46 = vadd.f32 %v396_v44, %v8109_v43 }
 0x110   :  { %v399_v47 = vsel %vm398_vm4, %v397_v46, -inf }
 0x111   :  { %400 = vmax.xlane.f32.xlu0 %v399_v47 }
 0x116   :  { %v8223_v30 = vpop.f32.mrb[2].mxu0 }
 0x117   :  { %v6688_v31 = vpop.f32.mrb[3].mxu0 }
 0x11a   :  { %v8230_v32 = vpop.f32.mrb[4].mxu0 }
 0x11b   :  { %v6691_v33 = vpop.f32.mrb[5].mxu0 }
 0x19e   :  { %v401_v48 = vpop.xlane.xlu0 %400 }
 0x19f   :  { %v402_v49 = vsub.f32 %v397_v46, %v401_v48 }
 0x1a1   :  { %v403_v50 = vmul.f32 1.442695, %v402_v49 }
 0x1a3   :  { %7679 = vpow2.f32 %v403_v50 }
 0x1ad   :  { %v7680_v51 = vpop.eup %7679 }
 0x1ae   :  { %v405_v52 = vsel %vm398_vm4, %v7680_v51, 0.0 }
 0x1af   :  { %406 = vadd.xlane.f32.xlu0 %v405_v52 }
 0x1c5   :  { %591 = vrot.lane.b32.xlu0 %v8117_v53, %s7940_s1 }
 0x1c9   :  { %616 = vrot.lane.b32.xlu0 %v615_v25, %s7943_s30 }
 0x23c   :  { %v407_v54 = vpop.xlane.xlu0 %406 }
 0x23d   :  { %7681 = vrcp.f32 %v407_v54 }
 0x240   :  { %v8215_v26 = vpop.permute.xlu0 %591 }
 0x241   :  { %v594_v27 = vadd.f32 %v8215_v26, %v8107_v42 }
 0x247   :  { %v7682_v55 = vpop.eup %7681 }
 0x248   :  { %v409_v56 = vmul.f32 %v7682_v55, %v7680_v51  ;;  %v617_v55 = vpop.permute.xlu0 %616 }
 0x24a   :  { %6727 = vmatmul.mubr.msk.f32.vlgmr.msra.gmra.mrb[8].mxu1 %vm410_vm5, %v409_v56  ;;  %626 = vst.msk [vmem:[#allocation4] sm:$0x1] %vm398_vm4, %v409_v56 }
 0x24b   :  { %7375 = vmatpush3.bf16.msra.mxu1 %v8054_v23  ;;  %6748 = vmatprep.mubr.msk.f32.mxu1 %vm7938_vm0, %v7939_v1 }
 0x24c   :  { %7376 = vmatprep.subr.bf16.mxu1 %v7937_v0 }
 0x24f   :  { %7378 = vmatpush3.bf16.msra.mxu1 %v8070_v29 }
 0x250   :  { %7382 = vmatprep.subr.bf16.mxu1 %v7937_v0 }
 0x31d   :  { %v484_v57 = vpop.f32.mrb[8].mxu1 }
 0x31e   :  { %489 = vrot.lane.b32.xlu1 %v484_v57, %s7941_s2  ;;  %v6728_v58 = vpop.f32.mrb[9].mxu1 }
 0x390   :  { %v490_v19 = vpop.permute.xlu1 %489 }
 0x391   :  { %v492_v21 = vadd.f32 %v490_v19, %v8099_v38 }
 0x393   :  { %v493_v22 = vadd.f32 %v492_v21, %v8109_v43 }
 0x395   :  { %v494_v24 = vmax.f32 %v493_v22, 0.0 }
 0x397   :  { %496 = vrot.lane.b32.xlu1 %v494_v24, %s7942_s3 }
 0x39b   :  { %571 = vrot.lane.b32.xlu1 %v8107_v42, %s7942_s3 }
 0x39f   :  { %576 = vrot.lane.b32.xlu1 %v8109_v43, %s7944_s6 }
 0x3a3   :  { %596 = vrot.lane.b32.xlu1 %v594_v27, %s7945_s7 }
 0x3a7   :  { %587 = vrot.lane.b32.xlu1 %v8117_v53, %s7946_s8 }
 0x409   :  { %v497_v28 = vpop.permute.xlu1 %496 }
 0x40a   :  { %6738 = vmatmul.mubr.msk.f32.vlgmr.msra.gmra.mrb[6].mxu0 %vm126_vm2, %v497_v28 }
 0x40b   :  { %7381 = vmatpush3.bf16.msra.mxu0 %v8097_v36  ;;  %6757 = vmatprep.mubr.msk.f32.mxu0 %vm7938_vm0, %v7939_v1 }
 0x40c   :  { %6755 = vmatprep.subr.mxu0 %v7939_v1 }
 0x40d   :  { %v572_v34 = vpop.permute.xlu1 %571 }
 0x40f   :  { %6756 = vmatpush3.msk.msra.mxu0 %vm414_vm3, %v8102_v40 }
 0x410   :  { %7388 = vmatprep.subr.bf16.mxu0 %v7937_v0 }
 0x411   :  { %v8235_v41 = vpop.permute.xlu1 %576 }
 0x415   :  { %v597_v48 = vpop.permute.xlu1 %596 }
 0x419   :  { %v8239_v50 = vpop.permute.xlu1 %587 }
 0x4dd   :  { %v566_v35 = vpop.f32.mrb[6].mxu0 }
 0x4de   :  { %v574_v37 = vadd.f32 %v572_v34, %v566_v35  ;;  %v6739_v39 = vpop.f32.mrb[7].mxu0  ;;  %v590_v51 = vadd.f32 %v8239_v50, %v566_v35 }
 0x4e0   :  { %v579_v42 = vadd.f32 %v8235_v41, %v574_v37 }
 0x4e2   :  { %v6275_v44 = vmul.f32 -1.442695, %v579_v42 }
 0x4e4   :  { %7683 = vpow2.f32 %v6275_v44 }
 0x4ee   :  { %v7684_v45 = vpop.eup %7683 }
 0x4ef   :  { %v583_v46 = vadd.f32 1.0, %v7684_v45 }
 0x4f1   :  { %7685 = vrcp.f32 %v583_v46 }
 0x4fb   :  { %v7686_v47 = vpop.eup %7685 }
 0x4fc   :  { %v599_v49 = vmul.f32 %v7686_v47, %v597_v48  ;;  %v606_v56 = vsub.f32 1.0, %v7686_v47  ;;  %v619_v58 = vmul.f32 %v7686_v47, %v617_v55 }
 0x4fe   :  { %601 = vrot.lane.b32.xlu1 %v599_v49, %s7946_s8 }
 0x570   :  { %v602_v52 = vpop.permute.xlu1 %601 }
 0x571   :  { %v604_v53 = vadd.f32 %v602_v52, %v590_v51 }
 0x573   :  { %7687 = vtanh.f32 %v604_v53 }
 0x57d   :  { %v7688_v54 = vpop.eup %7687 }
 0x57e   :  { %608 = vrot.lane.b32.xlu1 %v7688_v54, %s7947_s20 }
 0x5f0   :  { %v609_v57 = vpop.permute.xlu1 %608 }
 0x5f1   :  { %v611_v59 = vmul.f32 %v609_v57, %v606_v56 }
 0x5f3   :  { %v8243_v60 = vadd.f32 %v619_v58, %v611_v59 }
 0x5f5   :  { %622 = vrot.lane.b32.xlu1 %v8243_v60, %s7947_s20 }
 0x667   :  { %v623_v62 = vpop.permute.xlu1 %622 }
 0x668   :  { %625 = vst.msk [vmem:[#allocation3] sm:$0x1] %vm41_vm1, %v623_v62  ;;  %6749 = vmatmul.mubr.msk.f32.vlgmr.msra.gmra.mrb[10].mxu1 %vm126_vm2, %v623_v62 }
 0x669   :  { %7384 = vmatpush3.bf16.msra.mxu1 %v8129_v61  ;;  %6768 = vmatprep.mubr.msk.f32.mxu1 %vm7938_vm0, %v7939_v1 }
 0x66a   :  { %7385 = vmatprep.subr.bf16.mxu1 %v7937_v0 }
 0x66d   :  { %7387 = vmatpush3.bf16.msra.mxu1 %v8136_v2 }
 0x66e   :  { %7394 = vmatprep.subr.bf16.mxu1 %v7937_v0 }
 0x73b   :  { %v695_v63 = vpop.f32.mrb[10].mxu1 }
 0x73c   :  { %v700_v3 = vrot.slane %v695_v63, 7  ;;  %v6750_v4 = vpop.f32.mrb[11].mxu1  ;;  %v888_v28 = vadd.f32 %v695_v63, %v8215_v26 }
 0x73e   :  { %v702_v6 = vadd.f32 %v700_v3, %v8099_v38  ;;  %v8303_v3 = vrot.slane %v8109_v43, 6 }
 0x740   :  { %v705_v7 = vadd.f32 %v8256_v5, %v702_v6 }
 0x742   :  { %v707_v8 = vsel %vm706_vm6, %v705_v7, -inf }
 0x743   :  { %708 = vmax.xlane.f32.xlu0 %v707_v8 }
 0x7d0   :  { %v709_v9 = vpop.xlane.xlu0 %708 }
 0x7d1   :  { %v710_v10 = vsub.f32 %v705_v7, %v709_v9 }
 0x7d3   :  { %v711_v11 = vmul.f32 1.442695, %v710_v10 }
 0x7d5   :  { %7689 = vpow2.f32 %v711_v11 }
 0x7df   :  { %v7690_v12 = vpop.eup %7689 }
 0x7e0   :  { %v713_v13 = vsel %vm706_vm6, %v7690_v12, 0.0 }
 0x7e1   :  { %714 = vadd.xlane.f32.xlu1 %v713_v13 }
 0x86e   :  { %v715_v14 = vpop.xlane.xlu1 %714 }
 0x86f   :  { %7691 = vrcp.f32 %v715_v14 }
 0x879   :  { %v7692_v15 = vpop.eup %7691 }
 0x87a   :  { %v717_v16 = vmul.f32 %v7692_v15, %v7690_v12 }
 0x87c   :  { %913 = vst.msk [vmem:[#allocation4] sm:$0x2] %vm706_vm6, %v717_v16  ;;  %v719_v17 = vrot.slane %v717_v16, 1 }
 0x87e   :  { %6758 = vmatmul.mubr.msk.f32.vlgmr.msra.gmra.mrb[8].mxu0 %vm410_vm5, %v719_v17 }
 0x87f   :  { %7390 = vmatpush3.bf16.msra.mxu0 %v8054_v23  ;;  %6779 = vmatprep.mubr.msk.f32.mxu0 %vm7938_vm0, %v7939_v1 }
 0x880   :  { %7391 = vmatprep.subr.bf16.mxu0 %v7937_v0 }
 0x883   :  { %7393 = vmatpush3.bf16.msra.mxu0 %v8070_v29 }
 0x884   :  { %7397 = vmatprep.subr.bf16.mxu0 %v7937_v0 }
 0x951   :  { %v788_v18 = vpop.f32.mrb[8].mxu0 }
 0x952   :  { %v793_v19 = vrot.slane %v788_v18, 7  ;;  %v6759_v20 = vpop.f32.mrb[9].mxu0 }
 0x954   :  { %794 = vrot.lane.b32.xlu0 %v793_v19, %s7941_s2 }
 0x958   :  { %876 = vrot.lane.b32.xlu0 %v695_v63, %s7942_s3 }
 0x9c6   :  { %v795_v21 = vpop.permute.xlu0 %794 }
 0x9c7   :  { %v797_v22 = vadd.f32 %v795_v21, %v8099_v38 }
 0x9c9   :  { %v798_v24 = vadd.f32 %v797_v22, %v8256_v5 }
 0x9ca   :  { %v877_v33 = vpop.permute.xlu0 %876 }
 0x9cb   :  { %v799_v25 = vmax.f32 %v798_v24, 0.0 }
 0x9cd   :  { %v801_v27 = vrot.slane %v799_v25, 1 }
 0x9cf   :  { %802 = vrot.lane.b32.xlu1 %v801_v27, %s7942_s3 }
 0x9d3   :  { %890 = vrot.lane.b32.xlu1 %v888_v28, %s7945_s7 }
 0xa41   :  { %v803_v31 = vpop.permute.xlu1 %802 }
 0xa42   :  { %6769 = vmatmul.mubr.msk.f32.vlgmr.msra.gmra.mrb[12].mxu1 %vm126_vm2, %v803_v31 }
 0xa43   :  { %7396 = vmatpush3.bf16.msra.mxu1 %v8097_v36  ;;  %6788 = vmatprep.mubr.msk.f32.mxu1 %vm7938_vm0, %v7939_v1 }
 0xa44   :  { %6786 = vmatprep.subr.mxu1 %v7939_v1 }
 0xa45   :  { %v891_v47 = vpop.permute.xlu1 %890 }
 0xa47   :  { %6787 = vmatpush3.msk.msra.mxu1 %vm414_vm3, %v8102_v40 }
 0xa48   :  { %7403 = vmatprep.subr.bf16.mxu1 %v7937_v0 }
 0xb15   :  { %v872_v34 = vpop.f32.mrb[12].mxu1 }
 0xb16   :  { %v879_v35 = vadd.f32 %v877_v33, %v872_v34  ;;  %v6770_v37 = vpop.f32.mrb[13].mxu1  ;;  %v887_v49 = vadd.f32 %v872_v34, %v8239_v50 }
 0xb18   :  { %v880_v39 = vadd.f32 %v879_v35, %v8235_v41 }
 0xb1a   :  { %v6280_v42 = vmul.f32 -1.442695, %v880_v39 }
 0xb1c   :  { %7693 = vpow2.f32 %v6280_v42 }
 0xb26   :  { %v7694_v44 = vpop.eup %7693 }
 0xb27   :  { %v884_v45 = vadd.f32 1.0, %v7694_v44 }
 0xb29   :  { %7695 = vrcp.f32 %v884_v45 }
 0xb33   :  { %v7696_v46 = vpop.eup %7695 }
 0xb34   :  { %v893_v48 = vmul.f32 %v7696_v46, %v891_v47  ;;  %v900_v54 = vsub.f32 1.0, %v7696_v46  ;;  %v906_v56 = vmul.f32 %v7696_v46, %v8243_v60 }
 0xb36   :  { %895 = vrot.lane.b32.xlu0 %v893_v48, %s7946_s8 }
 0xba8   :  { %v896_v51 = vpop.permute.xlu0 %895 }
 0xba9   :  { %v898_v52 = vadd.f32 %v896_v51, %v887_v49 }
 0xbab   :  { %7697 = vtanh.f32 %v898_v52 }
 0xbb5   :  { %v7698_v53 = vpop.eup %7697 }
 0xbb6   :  { %902 = vrot.lane.b32.xlu1 %v7698_v53, %s7947_s20 }
 0xc28   :  { %v903_v55 = vpop.permute.xlu1 %902 }
 0xc29   :  { %v905_v57 = vmul.f32 %v903_v55, %v900_v54 }
 0xc2b   :  { %v8290_v58 = vadd.f32 %v906_v56, %v905_v57 }
 0xc2d   :  { %909 = vrot.lane.b32.xlu0 %v8290_v58, %s7947_s20 }
 0xc9f   :  { %v910_v59 = vpop.permute.xlu0 %909 }
 0xca0   :  { %912 = vst.msk [vmem:[#allocation3 + $0x1] sm:$0x1] %vm41_vm1, %v910_v59  ;;  %6780 = vmatmul.mubr.msk.f32.vlgmr.msra.gmra.mrb[10].mxu0 %vm126_vm2, %v910_v59 }
 0xca1   :  { %7399 = vmatpush3.bf16.msra.mxu0 %v8129_v61  ;;  %6799 = vmatprep.mubr.msk.f32.mxu0 %vm7938_vm0, %v7939_v1 }
 0xca2   :  { %7400 = vmatprep.subr.bf16.mxu0 %v7937_v0 }
 0xca5   :  { %7402 = vmatpush3.bf16.msra.mxu0 %v8136_v2 }
 0xca6   :  { %7409 = vmatprep.subr.bf16.mxu0 %v7937_v0 }
 0xd73   :  { %v982_v60 = vpop.f32.mrb[10].mxu0 }
 0xd74   :  { %v987_v62 = vrot.slane %v982_v60, 6  ;;  %v6781_v63 = vpop.f32.mrb[11].mxu0  ;;  %v1175_v20 = vadd.f32 %v982_v60, %v8215_v26 }
 0xd75   :  { %v8350_v63 = vrot.slane %v8109_v43, 5 }
 0xd76   :  { %v989_v4 = vadd.f32 %v987_v62, %v8099_v38 }
 0xd78   :  { %v992_v6 = vadd.f32 %v8303_v3, %v989_v4 }
 0xd7a   :  { %v994_v7 = vsel %vm993_vm7, %v992_v6, -inf }
 0xd7b   :  { %995 = vmax.xlane.f32.xlu1 %v994_v7 }
 0xe08   :  { %v996_v8 = vpop.xlane.xlu1 %995 }
 0xe09   :  { %v997_v9 = vsub.f32 %v992_v6, %v996_v8 }
 0xe0b   :  { %v998_v10 = vmul.f32 1.442695, %v997_v9 }
 0xe0d   :  { %7699 = vpow2.f32 %v998_v10 }
 0xe17   :  { %v7700_v11 = vpop.eup %7699 }
 0xe18   :  { %v1000_v12 = vsel %vm993_vm7, %v7700_v11, 0.0 }
 0xe19   :  { %1001 = vadd.xlane.f32.xlu0 %v1000_v12 }
 0xea6   :  { %v1002_v13 = vpop.xlane.xlu0 %1001 }
 0xea7   :  { %7701 = vrcp.f32 %v1002_v13 }
 0xeb1   :  { %v7702_v14 = vpop.eup %7701 }
 0xeb2   :  { %v1004_v15 = vmul.f32 %v7702_v14, %v7700_v11 }
 0xeb4   :  { %1200 = vst.msk [vmem:[#allocation4] sm:$0x4] %vm993_vm7, %v1004_v15  ;;  %v1006_v16 = vrot.slane %v1004_v15, 2 }
 0xeb6   :  { %6789 = vmatmul.mubr.msk.f32.vlgmr.msra.gmra.mrb[14].mxu1 %vm410_vm5, %v1006_v16 }
 0xeb7   :  { %7405 = vmatpush3.bf16.msra.mxu1 %v8054_v23  ;;  %6810 = vmatprep.mubr.msk.f32.mxu1 %vm7938_vm0, %v7939_v1 }
 0xeb8   :  { %7406 = vmatprep.subr.bf16.mxu1 %v7937_v0 }
 0xebb   :  { %7408 = vmatpush3.bf16.msra.mxu1 %v8070_v29 }
 0xebc   :  { %7412 = vmatprep.subr.bf16.mxu1 %v7937_v0 }
 0xf89   :  { %v1075_v17 = vpop.f32.mrb[14].mxu1 }
 0xf8a   :  { %v1080_v18 = vrot.slane %v1075_v17, 6  ;;  %v6790_v19 = vpop.f32.mrb[15].mxu1 }
 0xf8c   :  { %1081 = vrot.lane.b32.xlu0 %v1080_v18, %s7941_s2 }
 0xf90   :  { %1177 = vrot.lane.b32.xlu0 %v1175_v20, %s7945_s7 }
 0xffe   :  { %v1082_v21 = vpop.permute.xlu0 %1081 }
 0xfff   :  { %v1084_v22 = vadd.f32 %v1082_v21, %v8099_v38 }
0x1001   :  { %v1085_v24 = vadd.f32 %v1084_v22, %v8303_v3 }
0x1002   :  { %v1178_v46 = vpop.permute.xlu0 %1177 }
0x1003   :  { %v1086_v25 = vmax.f32 %v1085_v24, 0.0 }
0x1005   :  { %v1088_v27 = vrot.slane %v1086_v25, 2 }
0x1007   :  { %1089 = vrot.lane.b32.xlu1 %v1088_v27, %s7942_s3 }
0x100b   :  { %1163 = vrot.lane.b32.xlu1 %v982_v60, %s7942_s3 }
0x1079   :  { %v1090_v28 = vpop.permute.xlu1 %1089 }
0x107a   :  { %6800 = vmatmul.mubr.msk.f32.vlgmr.msra.gmra.mrb[12].mxu0 %vm126_vm2, %v1090_v28 }
0x107b   :  { %7411 = vmatpush3.bf16.msra.mxu0 %v8097_v36  ;;  %6819 = vmatprep.mubr.msk.f32.mxu0 %vm7938_vm0, %v7939_v1 }
0x107c   :  { %6817 = vmatprep.subr.mxu0 %v7939_v1 }
0x107d   :  { %v1164_v31 = vpop.permute.xlu1 %1163 }
0x107f   :  { %6818 = vmatpush3.msk.msra.mxu0 %vm414_vm3, %v8102_v40 }
0x1080   :  { %7418 = vmatprep.subr.bf16.mxu0 %v7937_v0 }
0x114d   :  { %v1159_v33 = vpop.f32.mrb[12].mxu0 }
0x114e   :  { %v1166_v34 = vadd.f32 %v1164_v31, %v1159_v33  ;;  %v6801_v35 = vpop.f32.mrb[13].mxu0  ;;  %v1174_v48 = vadd.f32 %v1159_v33, %v8239_v50 }
0x1150   :  { %v1167_v37 = vadd.f32 %v1166_v34, %v8235_v41 }
0x1152   :  { %v6285_v39 = vmul.f32 -1.442695, %v1167_v37 }
0x1154   :  { %7703 = vpow2.f32 %v6285_v39 }
0x115e   :  { %v7704_v42 = vpop.eup %7703 }
0x115f   :  { %v1171_v44 = vadd.f32 1.0, %v7704_v42 }
0x1161   :  { %7705 = vrcp.f32 %v1171_v44 }
0x116b   :  { %v7706_v45 = vpop.eup %7705 }
0x116c   :  { %v1180_v47 = vmul.f32 %v7706_v45, %v1178_v46  ;;  %v1187_v53 = vsub.f32 1.0, %v7706_v45  ;;  %v1193_v55 = vmul.f32 %v7706_v45, %v8290_v58 }
0x116e   :  { %1182 = vrot.lane.b32.xlu1 %v1180_v47, %s7946_s8 }
0x11e0   :  { %v1183_v49 = vpop.permute.xlu1 %1182 }
0x11e1   :  { %v1185_v51 = vadd.f32 %v1183_v49, %v1174_v48 }
0x11e3   :  { %7707 = vtanh.f32 %v1185_v51 }
0x11ed   :  { %v7708_v52 = vpop.eup %7707 }
0x11ee   :  { %1189 = vrot.lane.b32.xlu0 %v7708_v52, %s7947_s20 }
0x1260   :  { %v1190_v54 = vpop.permute.xlu0 %1189 }
0x1261   :  { %v1192_v56 = vmul.f32 %v1190_v54, %v1187_v53 }
0x1263   :  { %v8337_v57 = vadd.f32 %v1193_v55, %v1192_v56 }
0x1265   :  { %1196 = vrot.lane.b32.xlu1 %v8337_v57, %s7947_s20 }
0x12d7   :  { %v1197_v59 = vpop.permute.xlu1 %1196 }
0x12d8   :  { %1199 = vst.msk [vmem:[#allocation3 + $0x2] sm:$0x1] %vm41_vm1, %v1197_v59  ;;  %6811 = vmatmul.mubr.msk.f32.vlgmr.msra.gmra.mrb[16].mxu1 %vm126_vm2, %v1197_v59 }
0x12d9   :  { %7414 = vmatpush3.bf16.msra.mxu1 %v8129_v61  ;;  %6830 = vmatprep.mubr.msk.f32.mxu1 %vm7938_vm0, %v7939_v1 }
0x12da   :  { %7415 = vmatprep.subr.bf16.mxu1 %v7937_v0 }
0x12dd   :  { %7417 = vmatpush3.bf16.msra.mxu1 %v8136_v2 }
0x12de   :  { %7424 = vmatprep.subr.bf16.mxu1 %v7937_v0 }
0x13ab   :  { %v1269_v58 = vpop.f32.mrb[16].mxu1 }
0x13ac   :  { %v1274_v60 = vrot.slane %v1269_v58, 5  ;;  %v6812_v62 = vpop.f32.mrb[17].mxu1  ;;  %v1462_v27 = vadd.f32 %v1269_v58, %v8215_v26 }
0x13ae   :  { %v1276_v4 = vadd.f32 %v1274_v60, %v8099_v38 }
0x13b0   :  { %v1279_v6 = vadd.f32 %v8350_v63, %v1276_v4  ;;  %v8397_v4 = vrot.slane %v8109_v43, 4 }
0x13b2   :  { %v1281_v7 = vsel %vm1280_vm8, %v1279_v6, -inf }
0x13b3   :  { %1282 = vmax.xlane.f32.xlu0 %v1281_v7 }
0x1440   :  { %v1283_v8 = vpop.xlane.xlu0 %1282 }
0x1441   :  { %v1284_v9 = vsub.f32 %v1279_v6, %v1283_v8 }
0x1443   :  { %v1285_v10 = vmul.f32 1.442695, %v1284_v9 }
0x1445   :  { %7709 = vpow2.f32 %v1285_v10 }
0x144f   :  { %v7710_v11 = vpop.eup %7709 }
0x1450   :  { %v1287_v12 = vsel %vm1280_vm8, %v7710_v11, 0.0 }
0x1451   :  { %1288 = vadd.xlane.f32.xlu1 %v1287_v12 }
0x14de   :  { %v1289_v13 = vpop.xlane.xlu1 %1288 }
0x14df   :  { %7711 = vrcp.f32 %v1289_v13 }
0x14e9   :  { %v7712_v14 = vpop.eup %7711 }
0x14ea   :  { %v1291_v15 = vmul.f32 %v7712_v14, %v7710_v11 }
0x14ec   :  { %1487 = vst.msk [vmem:[#allocation4] sm:$0x8] %vm1280_vm8, %v1291_v15  ;;  %v1293_v16 = vrot.slane %v1291_v15, 3 }
0x14ee   :  { %6820 = vmatmul.mubr.msk.f32.vlgmr.msra.gmra.mrb[14].mxu0 %vm410_vm5, %v1293_v16 }
0x14ef   :  { %7420 = vmatpush3.bf16.msra.mxu0 %v8054_v23  ;;  %6841 = vmatprep.mubr.msk.f32.mxu0 %vm7938_vm0, %v7939_v1 }
0x14f0   :  { %7421 = vmatprep.subr.bf16.mxu0 %v7937_v0 }
0x14f3   :  { %7423 = vmatpush3.bf16.msra.mxu0 %v8070_v29 }
0x14f4   :  { %7427 = vmatprep.subr.bf16.mxu0 %v7937_v0 }
0x15c1   :  { %v1362_v17 = vpop.f32.mrb[14].mxu0 }
0x15c2   :  { %v1367_v18 = vrot.slane %v1362_v17, 5  ;;  %v6821_v19 = vpop.f32.mrb[15].mxu0 }
0x15c4   :  { %1368 = vrot.lane.b32.xlu0 %v1367_v18, %s7941_s2 }
0x15c8   :  { %1450 = vrot.lane.b32.xlu0 %v1269_v58, %s7942_s3 }
0x1636   :  { %v1369_v20 = vpop.permute.xlu0 %1368 }
0x1637   :  { %v1371_v21 = vadd.f32 %v1369_v20, %v8099_v38 }
0x1639   :  { %v1372_v22 = vadd.f32 %v1371_v21, %v8350_v63 }
0x163a   :  { %v1451_v31 = vpop.permute.xlu0 %1450 }
0x163b   :  { %v1373_v24 = vmax.f32 %v1372_v22, 0.0 }
0x163d   :  { %v1375_v25 = vrot.slane %v1373_v24, 3 }
0x163f   :  { %1376 = vrot.lane.b32.xlu1 %v1375_v25, %s7942_s3 }
0x1643   :  { %1464 = vrot.lane.b32.xlu1 %v1462_v27, %s7945_s7 }
0x16b1   :  { %v1377_v28 = vpop.permute.xlu1 %1376 }
0x16b2   :  { %6831 = vmatmul.mubr.msk.f32.vlgmr.msra.gmra.mrb[18].mxu1 %vm126_vm2, %v1377_v28 }
0x16b3   :  { %7426 = vmatpush3.bf16.msra.mxu1 %v8097_v36  ;;  %6850 = vmatprep.mubr.msk.f32.mxu1 %vm7938_vm0, %v7939_v1 }
0x16b4   :  { %6848 = vmatprep.subr.mxu1 %v7939_v1 }
0x16b5   :  { %v1465_v46 = vpop.permute.xlu1 %1464 }
0x16b7   :  { %6849 = vmatpush3.msk.msra.mxu1 %vm414_vm3, %v8102_v40 }
0x16b8   :  { %7433 = vmatprep.subr.bf16.mxu1 %v7937_v0 }
0x1785   :  { %v1446_v33 = vpop.f32.mrb[18].mxu1 }
0x1786   :  { %v1453_v34 = vadd.f32 %v1451_v31, %v1446_v33  ;;  %v6832_v35 = vpop.f32.mrb[19].mxu1  ;;  %v1461_v48 = vadd.f32 %v1446_v33, %v8239_v50 }
0x1788   :  { %v1454_v37 = vadd.f32 %v1453_v34, %v8235_v41 }
0x178a   :  { %v6290_v39 = vmul.f32 -1.442695, %v1454_v37 }
0x178c   :  { %7713 = vpow2.f32 %v6290_v39 }
0x1796   :  { %v7714_v42 = vpop.eup %7713 }
0x1797   :  { %v1458_v44 = vadd.f32 1.0, %v7714_v42 }
0x1799   :  { %7715 = vrcp.f32 %v1458_v44 }
0x17a3   :  { %v7716_v45 = vpop.eup %7715 }
0x17a4   :  { %v1467_v47 = vmul.f32 %v7716_v45, %v1465_v46  ;;  %v1474_v53 = vsub.f32 1.0, %v7716_v45  ;;  %v1480_v55 = vmul.f32 %v7716_v45, %v8337_v57 }
0x17a6   :  { %1469 = vrot.lane.b32.xlu0 %v1467_v47, %s7946_s8 }
0x1818   :  { %v1470_v49 = vpop.permute.xlu0 %1469 }
0x1819   :  { %v1472_v51 = vadd.f32 %v1470_v49, %v1461_v48 }
0x181b   :  { %7717 = vtanh.f32 %v1472_v51 }
0x1825   :  { %v7718_v52 = vpop.eup %7717 }
0x1826   :  { %1476 = vrot.lane.b32.xlu1 %v7718_v52, %s7947_s20 }
0x1898   :  { %v1477_v54 = vpop.permute.xlu1 %1476 }
0x1899   :  { %v1479_v56 = vmul.f32 %v1477_v54, %v1474_v53 }
0x189b   :  { %v8384_v59 = vadd.f32 %v1480_v55, %v1479_v56 }
0x189d   :  { %1483 = vrot.lane.b32.xlu0 %v8384_v59, %s7947_s20 }
0x190f   :  { %v1484_v58 = vpop.permute.xlu0 %1483 }
0x1910   :  { %1486 = vst.msk [vmem:[#allocation3 + $0x3] sm:$0x1] %vm41_vm1, %v1484_v58  ;;  %6842 = vmatmul.mubr.msk.f32.vlgmr.msra.gmra.mrb[16].mxu0 %vm126_vm2, %v1484_v58 }
0x1911   :  { %7429 = vmatpush3.bf16.msra.mxu0 %v8129_v61  ;;  %6861 = vmatprep.mubr.msk.f32.mxu0 %vm7938_vm0, %v7939_v1 }
0x1912   :  { %7430 = vmatprep.subr.bf16.mxu0 %v7937_v0 }
0x1915   :  { %7432 = vmatpush3.bf16.msra.mxu0 %v8136_v2 }
0x1916   :  { %7439 = vmatprep.subr.bf16.mxu0 %v7937_v0 }
0x19e3   :  { %v1556_v57 = vpop.f32.mrb[16].mxu0 }
0x19e4   :  { %v1561_v60 = vrot.slane %v1556_v57, 4  ;;  %v6843_v62 = vpop.f32.mrb[17].mxu0  ;;  %v1749_v21 = vadd.f32 %v1556_v57, %v8215_v26 }
0x19e6   :  { %v1563_v6 = vadd.f32 %v1561_v60, %v8099_v38 }
0x19e8   :  { %v1566_v7 = vadd.f32 %v8397_v4, %v1563_v6 }
0x19ea   :  { %v1568_v8 = vsel %vm1567_vm9, %v1566_v7, -inf }
0x19eb   :  { %1569 = vmax.xlane.f32.xlu1 %v1568_v8 }
0x1a78   :  { %v1570_v9 = vpop.xlane.xlu1 %1569 }
0x1a79   :  { %v1571_v10 = vsub.f32 %v1566_v7, %v1570_v9  ;;  %v8444_v7 = vrot.slane %v8109_v43, 3 }
0x1a7b   :  { %v1572_v11 = vmul.f32 1.442695, %v1571_v10 }
0x1a7d   :  { %7719 = vpow2.f32 %v1572_v11 }
0x1a87   :  { %v7720_v12 = vpop.eup %7719 }
0x1a88   :  { %v1574_v13 = vsel %vm1567_vm9, %v7720_v12, 0.0 }
0x1a89   :  { %1575 = vadd.xlane.f32.xlu0 %v1574_v13 }
0x1b16   :  { %v1576_v14 = vpop.xlane.xlu0 %1575 }
0x1b17   :  { %7721 = vrcp.f32 %v1576_v14 }
0x1b21   :  { %v7722_v15 = vpop.eup %7721 }
0x1b22   :  { %v1578_v16 = vmul.f32 %v7722_v15, %v7720_v12 }
0x1b24   :  { %1774 = vst.msk [vmem:[#allocation4] sm:$0x10] %vm1567_vm9, %v1578_v16  ;;  %v1580_v17 = vrot.slane %v1578_v16, 4 }
0x1b26   :  { %6851 = vmatmul.mubr.msk.f32.vlgmr.msra.gmra.mrb[20].mxu1 %vm410_vm5, %v1580_v17 }
0x1b27   :  { %7435 = vmatpush3.bf16.msra.mxu1 %v8054_v23  ;;  %6872 = vmatprep.mubr.msk.f32.mxu1 %vm7938_vm0, %v7939_v1 }
0x1b28   :  { %7436 = vmatprep.subr.bf16.mxu1 %v7937_v0 }
0x1b2b   :  { %7438 = vmatpush3.bf16.msra.mxu1 %v8070_v29 }
0x1b2c   :  { %7442 = vmatprep.subr.bf16.mxu1 %v7937_v0 }
0x1bf9   :  { %v1649_v18 = vpop.f32.mrb[20].mxu1 }
0x1bfa   :  { %v1654_v19 = vrot.slane %v1649_v18, 4  ;;  %v6852_v20 = vpop.f32.mrb[21].mxu1 }
0x1bfc   :  { %1655 = vrot.lane.b32.xlu0 %v1654_v19, %s7941_s2 }
0x1c00   :  { %1751 = vrot.lane.b32.xlu0 %v1749_v21, %s7945_s7 }
0x1c6e   :  { %v1656_v22 = vpop.permute.xlu0 %1655 }
0x1c6f   :  { %v1658_v24 = vadd.f32 %v1656_v22, %v8099_v38 }
0x1c71   :  { %v1659_v25 = vadd.f32 %v1658_v24, %v8397_v4 }
0x1c72   :  { %v1752_v47 = vpop.permute.xlu0 %1751 }
0x1c73   :  { %v1660_v27 = vmax.f32 %v1659_v25, 0.0 }
0x1c75   :  { %v1662_v28 = vrot.slane %v1660_v27, 4 }
0x1c77   :  { %1663 = vrot.lane.b32.xlu1 %v1662_v28, %s7942_s3 }
0x1c7b   :  { %1737 = vrot.lane.b32.xlu1 %v1556_v57, %s7942_s3 }
0x1ce9   :  { %v1664_v31 = vpop.permute.xlu1 %1663 }
0x1cea   :  { %6862 = vmatmul.mubr.msk.f32.vlgmr.msra.gmra.mrb[18].mxu0 %vm126_vm2, %v1664_v31 }
0x1ceb   :  { %7441 = vmatpush3.bf16.msra.mxu0 %v8097_v36  ;;  %6881 = vmatprep.mubr.msk.f32.mxu0 %vm7938_vm0, %v7939_v1 }
0x1cec   :  { %6879 = vmatprep.subr.mxu0 %v7939_v1 }
0x1ced   :  { %v1738_v33 = vpop.permute.xlu1 %1737 }
0x1cef   :  { %6880 = vmatpush3.msk.msra.mxu0 %vm414_vm3, %v8102_v40 }
0x1cf0   :  { %7448 = vmatprep.subr.bf16.mxu0 %v7937_v0 }
0x1dbd   :  { %v1733_v34 = vpop.f32.mrb[18].mxu0 }
0x1dbe   :  { %v1740_v35 = vadd.f32 %v1738_v33, %v1733_v34  ;;  %v6863_v37 = vpop.f32.mrb[19].mxu0  ;;  %v1748_v49 = vadd.f32 %v1733_v34, %v8239_v50 }
0x1dc0   :  { %v1741_v39 = vadd.f32 %v1740_v35, %v8235_v41 }
0x1dc2   :  { %v6295_v42 = vmul.f32 -1.442695, %v1741_v39 }
0x1dc4   :  { %7723 = vpow2.f32 %v6295_v42 }
0x1dce   :  { %v7724_v44 = vpop.eup %7723 }
0x1dcf   :  { %v1745_v45 = vadd.f32 1.0, %v7724_v44 }
0x1dd1   :  { %7725 = vrcp.f32 %v1745_v45 }
0x1ddb   :  { %v7726_v46 = vpop.eup %7725 }
0x1ddc   :  { %v1754_v48 = vmul.f32 %v7726_v46, %v1752_v47  ;;  %v1761_v54 = vsub.f32 1.0, %v7726_v46  ;;  %v1767_v56 = vmul.f32 %v7726_v46, %v8384_v59 }
0x1dde   :  { %1756 = vrot.lane.b32.xlu1 %v1754_v48, %s7946_s8 }
0x1e50   :  { %v1757_v51 = vpop.permute.xlu1 %1756 }
0x1e51   :  { %v1759_v52 = vadd.f32 %v1757_v51, %v1748_v49 }
0x1e53   :  { %7727 = vtanh.f32 %v1759_v52 }
0x1e5d   :  { %v7728_v53 = vpop.eup %7727 }
0x1e5e   :  { %1763 = vrot.lane.b32.xlu0 %v7728_v53, %s7947_s20 }
0x1ed0   :  { %v1764_v55 = vpop.permute.xlu0 %1763 }
0x1ed1   :  { %v1766_v58 = vmul.f32 %v1764_v55, %v1761_v54 }
0x1ed3   :  { %v8431_v57 = vadd.f32 %v1767_v56, %v1766_v58 }
0x1ed5   :  { %1770 = vrot.lane.b32.xlu1 %v8431_v57, %s7947_s20 }
0x1f47   :  { %v1771_v60 = vpop.permute.xlu1 %1770 }
0x1f48   :  { %1773 = vst.msk [vmem:[#allocation3 + $0x4] sm:$0x1] %vm41_vm1, %v1771_v60  ;;  %6873 = vmatmul.mubr.msk.f32.vlgmr.msra.gmra.mrb[22].mxu1 %vm126_vm2, %v1771_v60 }
0x1f49   :  { %7444 = vmatpush3.bf16.msra.mxu1 %v8129_v61  ;;  %6892 = vmatprep.mubr.msk.f32.mxu1 %vm7938_vm0, %v7939_v1 }
0x1f4a   :  { %7445 = vmatprep.subr.bf16.mxu1 %v7937_v0 }
0x1f4d   :  { %7447 = vmatpush3.bf16.msra.mxu1 %v8136_v2 }
0x1f4e   :  { %7454 = vmatprep.subr.bf16.mxu1 %v7937_v0 }
0x201b   :  { %v1843_v59 = vpop.f32.mrb[22].mxu1 }
0x201c   :  { %v1848_v62 = vrot.slane %v1843_v59, 3  ;;  %v6874_v6 = vpop.f32.mrb[23].mxu1  ;;  %v2036_v31 = vadd.f32 %v1843_v59, %v8215_v26 }
0x201e   :  { %v1850_v8 = vadd.f32 %v1848_v62, %v8099_v38 }
0x2020   :  { %v1853_v9 = vadd.f32 %v8444_v7, %v1850_v8 }
0x2022   :  { %v1855_v10 = vsel %vm1854_vm10, %v1853_v9, -inf }
0x2023   :  { %1856 = vmax.xlane.f32.xlu0 %v1855_v10 }
0x20b0   :  { %v1857_v11 = vpop.xlane.xlu0 %1856 }
0x20b1   :  { %v1858_v12 = vsub.f32 %v1853_v9, %v1857_v11  ;;  %v8490_v9 = vld [vmem:[#allocation7 + $0xa0] sm:$0x1] }
0x20b2   :  { %v8493_v10 = vrot.slane %v8490_v9, 2 }
0x20b3   :  { %v1859_v13 = vmul.f32 1.442695, %v1858_v12 }
0x20b5   :  { %7729 = vpow2.f32 %v1859_v13 }
0x20bf   :  { %v7730_v14 = vpop.eup %7729 }
0x20c0   :  { %v1861_v15 = vsel %vm1854_vm10, %v7730_v14, 0.0 }
0x20c1   :  { %1862 = vadd.xlane.f32.xlu1 %v1861_v15 }
0x214e   :  { %v1863_v16 = vpop.xlane.xlu1 %1862 }
0x214f   :  { %7731 = vrcp.f32 %v1863_v16 }
0x2159   :  { %v7732_v43 = vpop.eup %7731 }
0x215a   :  { %v1865_v17 = vmul.f32 %v7732_v43, %v7730_v14 }
0x215c   :  { %2061 = vst.msk [vmem:[#allocation4] sm:$0x20] %vm1854_vm10, %v1865_v17  ;;  %v1867_v18 = vrot.slane %v1865_v17, 5 }
0x215e   :  { %6882 = vmatmul.mubr.msk.f32.vlgmr.msra.gmra.mrb[20].mxu0 %vm410_vm5, %v1867_v18 }
0x215f   :  { %7450 = vmatpush3.bf16.msra.mxu0 %v8054_v23  ;;  %6903 = vmatprep.mubr.msk.f32.mxu0 %vm7938_vm0, %v7939_v1 }
0x2160   :  { %7451 = vmatprep.subr.bf16.mxu0 %v7937_v0 }
0x2163   :  { %7453 = vmatpush3.bf16.msra.mxu0 %v8070_v29 }
0x2164   :  { %7457 = vmatprep.subr.bf16.mxu0 %v7937_v0 }
0x2231   :  { %v1936_v19 = vpop.f32.mrb[20].mxu0 }
0x2232   :  { %v1941_v20 = vrot.slane %v1936_v19, 3  ;;  %v6883_v21 = vpop.f32.mrb[21].mxu0 }
0x2234   :  { %1942 = vrot.lane.b32.xlu0 %v1941_v20, %s7941_s2 }
0x2238   :  { %2024 = vrot.lane.b32.xlu0 %v1843_v59, %s7942_s3 }
0x22a6   :  { %v1943_v22 = vpop.permute.xlu0 %1942 }
0x22a7   :  { %v1945_v24 = vadd.f32 %v1943_v22, %v8099_v38 }
0x22a9   :  { %v1946_v25 = vadd.f32 %v1945_v24, %v8444_v7 }
0x22aa   :  { %v2025_v34 = vpop.permute.xlu0 %2024 }
0x22ab   :  { %v1947_v27 = vmax.f32 %v1946_v25, 0.0 }
0x22ad   :  { %v1949_v28 = vrot.slane %v1947_v27, 5 }
0x22af   :  { %1950 = vrot.lane.b32.xlu1 %v1949_v28, %s7942_s3 }
0x22b3   :  { %2038 = vrot.lane.b32.xlu1 %v2036_v31, %s7945_s7 }
0x2321   :  { %v1951_v33 = vpop.permute.xlu1 %1950 }
0x2322   :  { %6893 = vmatmul.mubr.msk.f32.vlgmr.msra.gmra.mrb[24].mxu1 %vm126_vm2, %v1951_v33 }
0x2323   :  { %7456 = vmatpush3.bf16.msra.mxu1 %v8097_v36  ;;  %6912 = vmatprep.mubr.msk.f32.mxu1 %vm7938_vm0, %v7939_v1 }
0x2324   :  { %6910 = vmatprep.subr.mxu1 %v7939_v1 }
0x2325   :  { %v2039_v48 = vpop.permute.xlu1 %2038 }
0x2327   :  { %6911 = vmatpush3.msk.msra.mxu1 %vm414_vm3, %v8102_v40 }
0x2328   :  { %7463 = vmatprep.subr.bf16.mxu1 %v7937_v0 }
0x23f5   :  { %v2020_v35 = vpop.f32.mrb[24].mxu1 }
0x23f6   :  { %v2027_v37 = vadd.f32 %v2025_v34, %v2020_v35  ;;  %v6894_v39 = vpop.f32.mrb[25].mxu1  ;;  %v2035_v51 = vadd.f32 %v2020_v35, %v8239_v50 }
0x23f8   :  { %v2028_v42 = vadd.f32 %v2027_v37, %v8235_v41 }
0x23fa   :  { %v6300_v44 = vmul.f32 -1.442695, %v2028_v42 }
0x23fc   :  { %7733 = vpow2.f32 %v6300_v44 }
0x2406   :  { %v7734_v45 = vpop.eup %7733 }
0x2407   :  { %v2032_v46 = vadd.f32 1.0, %v7734_v45 }
0x2409   :  { %7735 = vrcp.f32 %v2032_v46 }
0x2413   :  { %v7736_v47 = vpop.eup %7735 }
0x2414   :  { %v2041_v49 = vmul.f32 %v7736_v47, %v2039_v48  ;;  %v2048_v55 = vsub.f32 1.0, %v7736_v47  ;;  %v2054_v58 = vmul.f32 %v7736_v47, %v8431_v57 }
0x2416   :  { %2043 = vrot.lane.b32.xlu0 %v2041_v49, %s7946_s8 }
0x2488   :  { %v2044_v52 = vpop.permute.xlu0 %2043 }
0x2489   :  { %v2046_v53 = vadd.f32 %v2044_v52, %v2035_v51 }
0x248b   :  { %7737 = vtanh.f32 %v2046_v53 }
0x2495   :  { %v7738_v54 = vpop.eup %7737 }
0x2496   :  { %2050 = vrot.lane.b32.xlu1 %v7738_v54, %s7947_s20 }
0x2508   :  { %v2051_v56 = vpop.permute.xlu1 %2050 }
0x2509   :  { %v2053_v60 = vmul.f32 %v2051_v56, %v2048_v55 }
0x250b   :  { %v8478_v59 = vadd.f32 %v2054_v58, %v2053_v60 }
0x250d   :  { %2057 = vrot.lane.b32.xlu0 %v8478_v59, %s7947_s20 }
0x257f   :  { %v2058_v62 = vpop.permute.xlu0 %2057 }
0x2580   :  { %2060 = vst.msk [vmem:[#allocation3 + $0x5] sm:$0x1] %vm41_vm1, %v2058_v62  ;;  %6904 = vmatmul.mubr.msk.f32.vlgmr.msra.gmra.mrb[22].mxu0 %vm126_vm2, %v2058_v62 }
0x2581   :  { %7459 = vmatpush3.bf16.msra.mxu0 %v8129_v61  ;;  %6923 = vmatprep.mubr.msk.f32.mxu0 %vm7938_vm0, %v7939_v1 }
0x2582   :  { %7460 = vmatprep.subr.bf16.mxu0 %v7937_v0 }
0x2585   :  { %7462 = vmatpush3.bf16.msra.mxu0 %v8136_v2 }
0x2586   :  { %7469 = vmatprep.subr.bf16.mxu0 %v7937_v0 }
0x2653   :  { %v2130_v57 = vpop.f32.mrb[22].mxu0 }
0x2654   :  { %v2135_v6 = vrot.slane %v2130_v57, 2  ;;  %v6905_v8 = vpop.f32.mrb[23].mxu0  ;;  %v2323_v27 = vadd.f32 %v2130_v57, %v8215_v26 }
0x2656   :  { %v2137_v11 = vadd.f32 %v2135_v6, %v8099_v38 }
0x2658   :  { %v2140_v12 = vadd.f32 %v8493_v10, %v2137_v11 }
0x265a   :  { %v2142_v13 = vsel %vm2141_vm11, %v2140_v12, -inf }
0x265b   :  { %2143 = vmax.xlane.f32.xlu1 %v2142_v13 }
0x26e8   :  { %v2144_v14 = vpop.xlane.xlu1 %2143 }
0x26e9   :  { %v2145_v15 = vsub.f32 %v2140_v12, %v2144_v14  ;;  %v8540_v14 = vrot.slane %v8490_v9, 1 }
0x26eb   :  { %v2146_v16 = vmul.f32 1.442695, %v2145_v15 }
0x26ed   :  { %7739 = vpow2.f32 %v2146_v16 }
0x26f7   :  { %v7740_v43 = vpop.eup %7739 }
0x26f8   :  { %v2148_v17 = vsel %vm2141_vm11, %v7740_v43, 0.0 }
0x26f9   :  { %2149 = vadd.xlane.f32.xlu0 %v2148_v17 }
0x2786   :  { %v2150_v18 = vpop.xlane.xlu0 %2149 }
0x2787   :  { %7741 = vrcp.f32 %v2150_v18 }
0x2791   :  { %v7742_v19 = vpop.eup %7741 }
0x2792   :  { %v2152_v20 = vmul.f32 %v7742_v19, %v7740_v43 }
0x2794   :  { %2348 = vst.msk [vmem:[#allocation4] sm:$0x40] %vm2141_vm11, %v2152_v20  ;;  %v2154_v21 = vrot.slane %v2152_v20, 6 }
0x2796   :  { %6913 = vmatmul.mubr.msk.f32.vlgmr.msra.gmra.mrb[26].mxu1 %vm410_vm5, %v2154_v21 }
0x2797   :  { %7465 = vmatpush3.bf16.msra.mxu1 %v8054_v23  ;;  %6934 = vmatprep.mubr.msk.f32.mxu1 %vm7938_vm0, %v7939_v1 }
0x2798   :  { %7466 = vmatprep.subr.bf16.mxu1 %v7937_v0 }
0x279b   :  { %7468 = vmatpush3.bf16.msra.mxu1 %v8070_v29 }
0x279c   :  { %7472 = vmatprep.subr.bf16.mxu1 %v7937_v0 }
0x2869   :  { %v2223_v22 = vpop.f32.mrb[26].mxu1 }
0x286a   :  { %v2228_v24 = vrot.slane %v2223_v22, 2  ;;  %v6914_v25 = vpop.f32.mrb[27].mxu1 }
0x286c   :  { %2229 = vrot.lane.b32.xlu0 %v2228_v24, %s7941_s2 }
0x2870   :  { %2325 = vrot.lane.b32.xlu0 %v2323_v27, %s7945_s7 }
0x28de   :  { %v2230_v28 = vpop.permute.xlu0 %2229 }
0x28df   :  { %v2232_v31 = vadd.f32 %v2230_v28, %v8099_v38 }
0x28e1   :  { %v2233_v33 = vadd.f32 %v2232_v31, %v8493_v10 }
0x28e2   :  { %v2326_v52 = vpop.permute.xlu0 %2325 }
0x28e3   :  { %v2234_v34 = vmax.f32 %v2233_v33, 0.0 }
0x28e5   :  { %v2236_v35 = vrot.slane %v2234_v34, 6 }
0x28e7   :  { %2237 = vrot.lane.b32.xlu1 %v2236_v35, %s7942_s3 }
0x28eb   :  { %2311 = vrot.lane.b32.xlu1 %v2130_v57, %s7942_s3 }
0x2959   :  { %v2238_v37 = vpop.permute.xlu1 %2237 }
0x295a   :  { %6924 = vmatmul.mubr.msk.f32.vlgmr.msra.gmra.mrb[24].mxu0 %vm126_vm2, %v2238_v37 }
0x295b   :  { %7471 = vmatpush3.bf16.msra.mxu0 %v8097_v36  ;;  %6943 = vmatprep.mubr.msk.f32.mxu0 %vm7938_vm0, %v7939_v1 }
0x295c   :  { %6941 = vmatprep.subr.mxu0 %v7939_v1 }
0x295d   :  { %v2312_v39 = vpop.permute.xlu1 %2311 }
0x295f   :  { %6942 = vmatpush3.msk.msra.mxu0 %vm414_vm3, %v8102_v40 }
0x2960   :  { %7478 = vmatprep.subr.bf16.mxu0 %v7937_v0 }
0x2a2d   :  { %v2307_v42 = vpop.f32.mrb[24].mxu0 }
0x2a2e   :  { %v2314_v44 = vadd.f32 %v2312_v39, %v2307_v42  ;;  %v6925_v45 = vpop.f32.mrb[25].mxu0  ;;  %v2322_v54 = vadd.f32 %v2307_v42, %v8239_v50 }
0x2a30   :  { %v2315_v46 = vadd.f32 %v2314_v44, %v8235_v41 }
0x2a32   :  { %v6305_v47 = vmul.f32 -1.442695, %v2315_v46 }
0x2a34   :  { %7743 = vpow2.f32 %v6305_v47 }
0x2a3e   :  { %v7744_v48 = vpop.eup %7743 }
0x2a3f   :  { %v2319_v49 = vadd.f32 1.0, %v7744_v48 }
0x2a41   :  { %7745 = vrcp.f32 %v2319_v49 }
0x2a4b   :  { %v7746_v51 = vpop.eup %7745 }
0x2a4c   :  { %v2328_v53 = vmul.f32 %v7746_v51, %v2326_v52  ;;  %v2335_v60 = vsub.f32 1.0, %v7746_v51  ;;  %v2341_v57 = vmul.f32 %v7746_v51, %v8478_v59 }
0x2a4e   :  { %2330 = vrot.lane.b32.xlu1 %v2328_v53, %s7946_s8 }
0x2ac0   :  { %v2331_v55 = vpop.permute.xlu1 %2330 }
0x2ac1   :  { %v2333_v56 = vadd.f32 %v2331_v55, %v2322_v54 }
0x2ac3   :  { %7747 = vtanh.f32 %v2333_v56 }
0x2acd   :  { %v7748_v58 = vpop.eup %7747 }
0x2ace   :  { %2337 = vrot.lane.b32.xlu0 %v7748_v58, %s7947_s20 }
0x2b40   :  { %v2338_v62 = vpop.permute.xlu0 %2337 }
0x2b41   :  { %v2340_v6 = vmul.f32 %v2338_v62, %v2335_v60 }
0x2b43   :  { %v8527_v8 = vadd.f32 %v2341_v57, %v2340_v6 }
0x2b45   :  { %2344 = vrot.lane.b32.xlu1 %v8527_v8, %s7947_s20 }
0x2bb7   :  { %v2345_v11 = vpop.permute.xlu1 %2344 }
0x2bb8   :  { %2347 = vst.msk [vmem:[#allocation3 + $0x6] sm:$0x1] %vm41_vm1, %v2345_v11  ;;  %6935 = vmatmul.mubr.msk.f32.vlgmr.msra.gmra.mrb[28].mxu1 %vm126_vm2, %v2345_v11 }
0x2bb9   :  { %7474 = vmatpush3.bf16.msra.mxu1 %v8129_v61  ;;  %6954 = vmatprep.mubr.msk.f32.mxu1 %vm7938_vm0, %v7939_v1 }
0x2bba   :  { %7475 = vmatprep.subr.bf16.mxu1 %v7937_v0 }
0x2bbd   :  { %7477 = vmatpush3.bf16.msra.mxu1 %v8136_v2 }
0x2bbe   :  { %7484 = vmatprep.subr.bf16.mxu1 %v7937_v0 }
0x2c8b   :  { %v2417_v59 = vpop.f32.mrb[28].mxu1 }
0x2c8c   :  { %v2422_v12 = vrot.slane %v2417_v59, 1  ;;  %v6936_v13 = vpop.f32.mrb[29].mxu1  ;;  %v2610_v44 = vadd.f32 %v2417_v59, %v8215_v26 }
0x2c8e   :  { %v2424_v15 = vadd.f32 %v2422_v12, %v8099_v38 }
0x2c90   :  { %v2427_v16 = vadd.f32 %v8540_v14, %v2424_v15 }
0x2c92   :  { %v2429_v43 = vsel %vm2428_vm12, %v2427_v16, -inf }
0x2c93   :  { %2430 = vmax.xlane.f32.xlu0 %v2429_v43 }
0x2d20   :  { %v2431_v17 = vpop.xlane.xlu0 %2430 }
0x2d21   :  { %v2432_v18 = vsub.f32 %v2427_v16, %v2431_v17 }
0x2d23   :  { %v2433_v19 = vmul.f32 1.442695, %v2432_v18 }
0x2d25   :  { %7749 = vpow2.f32 %v2433_v19 }
0x2d2f   :  { %v7750_v20 = vpop.eup %7749 }
0x2d30   :  { %v2435_v21 = vsel %vm2428_vm12, %v7750_v20, 0.0 }
0x2d31   :  { %2436 = vadd.xlane.f32.xlu1 %v2435_v21 }
0x2dbe   :  { %v2437_v22 = vpop.xlane.xlu1 %2436 }
0x2dbf   :  { %7751 = vrcp.f32 %v2437_v22 }
0x2dc9   :  { %v7752_v24 = vpop.eup %7751 }
0x2dca   :  { %v2439_v25 = vmul.f32 %v7752_v24, %v7750_v20 }
0x2dcc   :  { %2635 = vst.msk [vmem:[#allocation4] sm:$0x80] %vm2428_vm12, %v2439_v25  ;;  %v2441_v27 = vrot.slane %v2439_v25, 7 }
0x2dce   :  { %6944 = vmatmul.mubr.msk.f32.vlgmr.msra.gmra.mrb[26].mxu0 %vm410_vm5, %v2441_v27 }
0x2dcf   :  { %7480 = vmatpush3.bf16.msra.mxu0 %v8054_v23  ;;  %6965 = vmatprep.mubr.msk.f32.mxu0 %vm7938_vm0, %v7939_v1 }
0x2dd0   :  { %7481 = vmatprep.subr.bf16.mxu0 %v7937_v0 }
0x2dd3   :  { %7483 = vmatpush3.bf16.msra.mxu0 %v8070_v29 }
0x2dd4   :  { %7487 = vmatprep.subr.bf16.mxu0 %v7937_v0 }
0x2ea1   :  { %v2510_v28 = vpop.f32.mrb[26].mxu0 }
0x2ea2   :  { %v2515_v31 = vrot.slane %v2510_v28, 1  ;;  %v6945_v33 = vpop.f32.mrb[27].mxu0 }
0x2ea4   :  { %2516 = vrot.lane.b32.xlu0 %v2515_v31, %s7941_s2 }
0x2ea8   :  { %2598 = vrot.lane.b32.xlu0 %v2417_v59, %s7942_s3 }
0x2f16   :  { %v2517_v34 = vpop.permute.xlu0 %2516 }
0x2f17   :  { %v2519_v35 = vadd.f32 %v2517_v34, %v8099_v38 }
0x2f19   :  { %v2520_v37 = vadd.f32 %v2519_v35, %v8540_v14 }
0x2f1a   :  { %v2599_v38 = vpop.permute.xlu0 %2598 }
0x2f1b   :  { %v2521_v39 = vmax.f32 %v2520_v37, 0.0 }
0x2f1d   :  { %v2523_v42 = vrot.slane %v2521_v39, 7 }
0x2f1f   :  { %2524 = vrot.lane.b32.xlu1 %v2523_v42, %s7942_s3 }
0x2f23   :  { %2612 = vrot.lane.b32.xlu1 %v2610_v44, %s7945_s7 }
0x2f91   :  { %v2525_v45 = vpop.permute.xlu1 %2524 }
0x2f92   :  { %6955 = vmatmul.mubr.msk.f32.vlgmr.msra.gmra.mrb[30].mxu1 %vm126_vm2, %v2525_v45 }
0x2f93   :  { %7486 = vmatpush3.bf16.msra.mxu1 %v8097_v36  ;;  %6974 = vmatprep.mubr.msk.f32.mxu1 %vm7938_vm0, %v7939_v1 }
0x2f94   :  { %6972 = vmatprep.subr.mxu1 %v7939_v1 }
0x2f95   :  { %v2613_v55 = vpop.permute.xlu1 %2612 }
0x2f97   :  { %6973 = vmatpush3.msk.msra.mxu1 %vm414_vm3, %v8102_v40 }
0x2f98   :  { %7493 = vmatprep.subr.bf16.mxu1 %v7937_v0 }
0x3065   :  { %v2594_v46 = vpop.f32.mrb[30].mxu1 }
0x3066   :  { %v2601_v47 = vadd.f32 %v2599_v38, %v2594_v46  ;;  %v6956_v48 = vpop.f32.mrb[31].mxu1  ;;  %v2609_v58 = vadd.f32 %v2594_v46, %v8239_v50 }
0x3068   :  { %v2602_v49 = vadd.f32 %v2601_v47, %v8235_v41 }
0x306a   :  { %v6310_v51 = vmul.f32 -1.442695, %v2602_v49 }
0x306c   :  { %7753 = vpow2.f32 %v6310_v51 }
0x3076   :  { %v7754_v52 = vpop.eup %7753 }
0x3077   :  { %v2606_v53 = vadd.f32 1.0, %v7754_v52 }
0x3079   :  { %7755 = vrcp.f32 %v2606_v53 }
0x3083   :  { %v7756_v54 = vpop.eup %7755 }
0x3084   :  { %v2615_v56 = vmul.f32 %v7756_v54, %v2613_v55  ;;  %v2622_v6 = vsub.f32 1.0, %v7756_v54  ;;  %v2628_v59 = vmul.f32 %v7756_v54, %v8527_v8 }
0x3086   :  { %2617 = vrot.lane.b32.xlu0 %v2615_v56, %s7946_s8 }
0x30f8   :  { %v2618_v60 = vpop.permute.xlu0 %2617 }
0x30f9   :  { %v2620_v62 = vadd.f32 %v2618_v60, %v2609_v58 }
0x30fb   :  { %7757 = vtanh.f32 %v2620_v62 }
0x3105   :  { %v7758_v57 = vpop.eup %7757 }
0x3106   :  { %2624 = vrot.lane.b32.xlu1 %v7758_v57, %s7947_s20 }
0x3178   :  { %v2625_v11 = vpop.permute.xlu1 %2624 }
0x3179   :  { %v2627_v12 = vmul.f32 %v2625_v11, %v2622_v6 }
0x317b   :  { %v8574_v13 = vadd.f32 %v2628_v59, %v2627_v12 }
0x317d   :  { %2631 = vrot.lane.b32.xlu0 %v8574_v13, %s7947_s20 }
0x31ef   :  { %v2632_v15 = vpop.permute.xlu0 %2631 }
0x31f0   :  { %2634 = vst.msk [vmem:[#allocation3 + $0x7] sm:$0x1] %vm41_vm1, %v2632_v15  ;;  %6966 = vmatmul.mubr.msk.f32.vlgmr.msra.gmra.mrb[28].mxu0 %vm126_vm2, %v2632_v15 }
0x31f1   :  { %7489 = vmatpush3.bf16.msra.mxu0 %v8129_v61  ;;  %6985 = vmatprep.mubr.msk.f32.mxu0 %vm7938_vm0, %v7939_v1 }
0x31f2   :  { %7490 = vmatprep.subr.bf16.mxu0 %v7937_v0 }
0x31f5   :  { %7492 = vmatpush3.bf16.msra.mxu0 %v8136_v2 }
0x31f6   :  { %7499 = vmatprep.subr.bf16.mxu0 %v7937_v0 }
0x32c3   :  { %v2704_v8 = vpop.f32.mrb[28].mxu0 }
0x32c4   :  { %v2708_v16 = vadd.f32 %v2704_v8, %v8223_v30  ;;  %v6967_v43 = vpop.f32.mrb[29].mxu0  ;;  %v2889_v34 = vadd.f32 %v2704_v8, %v8215_v26 }
0x32c6   :  { %v2709_v17 = vadd.f32 %v8490_v9, %v2708_v16 }
0x32c8   :  { %v2710_v18 = vsel %vm398_vm4, %v2709_v17, -inf }
0x32c9   :  { %2711 = vmax.xlane.f32.xlu1 %v2710_v18 }
0x3356   :  { %v2712_v19 = vpop.xlane.xlu1 %2711 }
0x3357   :  { %v2713_v20 = vsub.f32 %v2709_v17, %v2712_v19 }
0x3359   :  { %v2714_v21 = vmul.f32 1.442695, %v2713_v20 }
0x335b   :  { %7759 = vpow2.f32 %v2714_v21 }
0x3365   :  { %v7760_v22 = vpop.eup %7759 }
0x3366   :  { %v2716_v24 = vsel %vm398_vm4, %v7760_v22, 0.0 }
0x3367   :  { %2717 = vadd.xlane.f32.xlu0 %v2716_v24 }
0x33f4   :  { %v2718_v25 = vpop.xlane.xlu0 %2717 }
0x33f5   :  { %7761 = vrcp.f32 %v2718_v25 }
0x33ff   :  { %v7762_v27 = vpop.eup %7761 }
0x3400   :  { %v2720_v28 = vmul.f32 %v7762_v27, %v7760_v22 }
0x3402   :  { %6975 = vmatmul.mubr.msk.f32.vlgmr.msra.gmra.mrb[32].mxu1 %vm410_vm5, %v2720_v28  ;;  %2914 = vst.msk [vmem:[#allocation4 + $0x8] sm:$0x1] %vm398_vm4, %v2720_v28 }
0x3403   :  { %7495 = vmatpush3.bf16.msra.mxu1 %v8054_v23  ;;  %6996 = vmatprep.mubr.msk.f32.mxu1 %vm7938_vm0, %v7939_v1 }
0x3404   :  { %7496 = vmatprep.subr.bf16.mxu1 %v7937_v0 }
0x3407   :  { %7498 = vmatpush3.bf16.msra.mxu1 %v8070_v29 }
0x3408   :  { %7502 = vmatprep.subr.bf16.mxu1 %v7937_v0 }
0x34d5   :  { %v2790_v31 = vpop.f32.mrb[32].mxu1 }
0x34d6   :  { %2795 = vrot.lane.b32.xlu0 %v2790_v31, %s7941_s2  ;;  %v6976_v33 = vpop.f32.mrb[33].mxu1 }
0x34da   :  { %2891 = vrot.lane.b32.xlu0 %v2889_v34, %s7945_s7 }
0x3548   :  { %v2796_v35 = vpop.permute.xlu0 %2795 }
0x3549   :  { %v2798_v37 = vadd.f32 %v2796_v35, %v8223_v30 }
0x354b   :  { %v2799_v39 = vadd.f32 %v8490_v9, %v2798_v37 }
0x354c   :  { %v2892_v53 = vpop.permute.xlu0 %2891 }
0x354d   :  { %v2800_v42 = vmax.f32 %v2799_v39, 0.0 }
0x354f   :  { %2802 = vrot.lane.b32.xlu1 %v2800_v42, %s7942_s3 }
0x3553   :  { %2877 = vrot.lane.b32.xlu1 %v2704_v8, %s7942_s3 }
0x35c1   :  { %v2803_v44 = vpop.permute.xlu1 %2802 }
0x35c2   :  { %6986 = vmatmul.mubr.msk.f32.vlgmr.msra.gmra.mrb[30].mxu0 %vm126_vm2, %v2803_v44 }
0x35c3   :  { %7501 = vmatpush3.bf16.msra.mxu0 %v8097_v36  ;;  %7005 = vmatprep.mubr.msk.f32.mxu0 %vm7938_vm0, %v7939_v1 }
0x35c4   :  { %7003 = vmatprep.subr.mxu0 %v7939_v1 }
0x35c5   :  { %v2878_v9 = vpop.permute.xlu1 %2877 }
0x35c7   :  { %7004 = vmatpush3.msk.msra.mxu0 %vm414_vm3, %v8102_v40 }
0x35c8   :  { %7508 = vmatprep.subr.bf16.mxu0 %v7937_v0 }
0x3695   :  { %v2872_v45 = vpop.f32.mrb[30].mxu0 }
0x3696   :  { %v2880_v38 = vadd.f32 %v2878_v9, %v2872_v45  ;;  %v6987_v46 = vpop.f32.mrb[31].mxu0  ;;  %v2888_v55 = vadd.f32 %v2872_v45, %v8239_v50 }
0x3698   :  { %v2881_v47 = vadd.f32 %v2880_v38, %v8235_v41 }
0x369a   :  { %v6315_v48 = vmul.f32 -1.442695, %v2881_v47 }
0x369c   :  { %7763 = vpow2.f32 %v6315_v48 }
0x36a6   :  { %v7764_v49 = vpop.eup %7763 }
0x36a7   :  { %v2885_v51 = vadd.f32 1.0, %v7764_v49 }
0x36a9   :  { %7765 = vrcp.f32 %v2885_v51 }
0x36b3   :  { %v7766_v52 = vpop.eup %7765 }
0x36b4   :  { %v2894_v54 = vmul.f32 %v7766_v52, %v2892_v53  ;;  %v2901_v62 = vsub.f32 1.0, %v7766_v52  ;;  %v2907_v6 = vmul.f32 %v7766_v52, %v8574_v13 }
0x36b6   :  { %2896 = vrot.lane.b32.xlu1 %v2894_v54, %s7946_s8 }
0x3728   :  { %v2897_v56 = vpop.permute.xlu1 %2896 }
0x3729   :  { %v2899_v58 = vadd.f32 %v2897_v56, %v2888_v55 }
0x372b   :  { %7767 = vtanh.f32 %v2899_v58 }
0x3735   :  { %v7768_v60 = vpop.eup %7767 }
0x3736   :  { %2903 = vrot.lane.b32.xlu0 %v7768_v60, %s7947_s20 }
0x37a8   :  { %v2904_v57 = vpop.permute.xlu0 %2903 }
0x37a9   :  { %v2906_v11 = vmul.f32 %v2904_v57, %v2901_v62 }
0x37ab   :  { %v8618_v59 = vadd.f32 %v2907_v6, %v2906_v11 }
0x37ad   :  { %2910 = vrot.lane.b32.xlu1 %v8618_v59, %s7947_s20 }
0x381f   :  { %v2911_v12 = vpop.permute.xlu1 %2910 }
0x3820   :  { %2913 = vst.msk [vmem:[#allocation3 + $0x8] sm:$0x1] %vm41_vm1, %v2911_v12  ;;  %6997 = vmatmul.mubr.msk.f32.vlgmr.msra.gmra.mrb[34].mxu1 %vm126_vm2, %v2911_v12 }
0x3821   :  { %7504 = vmatpush3.bf16.msra.mxu1 %v8129_v61  ;;  %7016 = vmatprep.mubr.msk.f32.mxu1 %vm7938_vm0, %v7939_v1 }
0x3822   :  { %7505 = vmatprep.subr.bf16.mxu1 %v7937_v0 }
0x3825   :  { %7507 = vmatpush3.bf16.msra.mxu1 %v8136_v2 }
0x3826   :  { %7514 = vmatprep.subr.bf16.mxu1 %v7937_v0 }
0x38f3   :  { %v2983_v13 = vpop.f32.mrb[34].mxu1 }
0x38f4   :  { %v2988_v15 = vrot.slane %v2983_v13, 7  ;;  %v6998_v8 = vpop.f32.mrb[35].mxu1  ;;  %v3173_v9 = vadd.f32 %v2983_v13, %v8215_v26 }
0x38f6   :  { %v2990_v16 = vadd.f32 %v2988_v15, %v8223_v30 }
0x38f8   :  { %v2991_v43 = vadd.f32 %v2990_v16, %v8256_v5 }
0x38fa   :  { %v2992_v17 = vsel %vm706_vm6, %v2991_v43, -inf }
0x38fb   :  { %2993 = vmax.xlane.f32.xlu0 %v2992_v17 }
0x3988   :  { %v2994_v18 = vpop.xlane.xlu0 %2993 }
0x3989   :  { %v2995_v19 = vsub.f32 %v2991_v43, %v2994_v18 }
0x398b   :  { %v2996_v20 = vmul.f32 1.442695, %v2995_v19 }
0x398d   :  { %7769 = vpow2.f32 %v2996_v20 }
0x3997   :  { %v7770_v21 = vpop.eup %7769 }
0x3998   :  { %v2998_v22 = vsel %vm706_vm6, %v7770_v21, 0.0 }
0x3999   :  { %2999 = vadd.xlane.f32.xlu1 %v2998_v22 }
0x3a26   :  { %v3000_v24 = vpop.xlane.xlu1 %2999 }
0x3a27   :  { %7771 = vrcp.f32 %v3000_v24 }
0x3a31   :  { %v7772_v25 = vpop.eup %7771 }
0x3a32   :  { %v3002_v27 = vmul.f32 %v7772_v25, %v7770_v21 }
0x3a34   :  { %3198 = vst.msk [vmem:[#allocation4 + $0x8] sm:$0x2] %vm706_vm6, %v3002_v27  ;;  %v3004_v28 = vrot.slane %v3002_v27, 1 }
0x3a36   :  { %7006 = vmatmul.mubr.msk.f32.vlgmr.msra.gmra.mrb[32].mxu0 %vm410_vm5, %v3004_v28 }
0x3a37   :  { %7510 = vmatpush3.bf16.msra.mxu0 %v8054_v23  ;;  %7027 = vmatprep.mubr.msk.f32.mxu0 %vm7938_vm0, %v7939_v1 }
0x3a38   :  { %7511 = vmatprep.subr.bf16.mxu0 %v7937_v0 }
0x3a3b   :  { %7513 = vmatpush3.bf16.msra.mxu0 %v8070_v29 }
0x3a3c   :  { %7517 = vmatprep.subr.bf16.mxu0 %v7937_v0 }
0x3b09   :  { %v3073_v31 = vpop.f32.mrb[32].mxu0 }
0x3b0a   :  { %v3078_v33 = vrot.slane %v3073_v31, 7  ;;  %v7007_v34 = vpop.f32.mrb[33].mxu0 }
0x3b0c   :  { %3079 = vrot.lane.b32.xlu0 %v3078_v33, %s7941_s2 }
0x3b10   :  { %3161 = vrot.lane.b32.xlu0 %v2983_v13, %s7942_s3 }
0x3b7e   :  { %v3080_v35 = vpop.permute.xlu0 %3079 }
0x3b7f   :  { %v3082_v37 = vadd.f32 %v3080_v35, %v8223_v30 }
0x3b81   :  { %v3083_v39 = vadd.f32 %v3082_v37, %v8256_v5 }
0x3b82   :  { %v3162_v38 = vpop.permute.xlu0 %3161 }
0x3b83   :  { %v3084_v42 = vmax.f32 %v3083_v39, 0.0 }
0x3b85   :  { %v3086_v44 = vrot.slane %v3084_v42, 1 }
0x3b87   :  { %3087 = vrot.lane.b32.xlu1 %v3086_v44, %s7942_s3 }
0x3b8b   :  { %3175 = vrot.lane.b32.xlu1 %v3173_v9, %s7945_s7 }
0x3bf9   :  { %v3088_v45 = vpop.permute.xlu1 %3087 }
0x3bfa   :  { %7017 = vmatmul.mubr.msk.f32.vlgmr.msra.gmra.mrb[36].mxu1 %vm126_vm2, %v3088_v45 }
0x3bfb   :  { %7516 = vmatpush3.bf16.msra.mxu1 %v8097_v36  ;;  %7036 = vmatprep.mubr.msk.f32.mxu1 %vm7938_vm0, %v7939_v1 }
0x3bfc   :  { %7034 = vmatprep.subr.mxu1 %v7939_v1 }
0x3bfd   :  { %v3176_v55 = vpop.permute.xlu1 %3175 }
0x3bff   :  { %7035 = vmatpush3.msk.msra.mxu1 %vm414_vm3, %v8102_v40 }
0x3c00   :  { %7523 = vmatprep.subr.bf16.mxu1 %v7937_v0 }
0x3ccd   :  { %v3157_v46 = vpop.f32.mrb[36].mxu1 }
0x3cce   :  { %v3164_v47 = vadd.f32 %v3162_v38, %v3157_v46  ;;  %v7018_v48 = vpop.f32.mrb[37].mxu1  ;;  %v3172_v58 = vadd.f32 %v3157_v46, %v8239_v50 }
0x3cd0   :  { %v3165_v49 = vadd.f32 %v3164_v47, %v8235_v41 }
0x3cd2   :  { %v6320_v51 = vmul.f32 -1.442695, %v3165_v49 }
0x3cd4   :  { %7773 = vpow2.f32 %v6320_v51 }
0x3cde   :  { %v7774_v52 = vpop.eup %7773 }
0x3cdf   :  { %v3169_v53 = vadd.f32 1.0, %v7774_v52 }
0x3ce1   :  { %7775 = vrcp.f32 %v3169_v53 }
0x3ceb   :  { %v7776_v54 = vpop.eup %7775 }
0x3cec   :  { %v3178_v56 = vmul.f32 %v7776_v54, %v3176_v55  ;;  %v3185_v6 = vsub.f32 1.0, %v7776_v54  ;;  %v3191_v12 = vmul.f32 %v7776_v54, %v8618_v59 }
0x3cee   :  { %3180 = vrot.lane.b32.xlu0 %v3178_v56, %s7946_s8 }
0x3d60   :  { %v3181_v60 = vpop.permute.xlu0 %3180 }
0x3d61   :  { %v3183_v62 = vadd.f32 %v3181_v60, %v3172_v58 }
0x3d63   :  { %7777 = vtanh.f32 %v3183_v62 }
0x3d6d   :  { %v7778_v57 = vpop.eup %7777 }
0x3d6e   :  { %3187 = vrot.lane.b32.xlu1 %v7778_v57, %s7947_s20 }
0x3de0   :  { %v3188_v11 = vpop.permute.xlu1 %3187 }
0x3de1   :  { %v3190_v13 = vmul.f32 %v3188_v11, %v3185_v6 }
0x3de3   :  { %v8662_v15 = vadd.f32 %v3191_v12, %v3190_v13 }
0x3de5   :  { %3194 = vrot.lane.b32.xlu0 %v8662_v15, %s7947_s20 }
0x3e57   :  { %v3195_v8 = vpop.permute.xlu0 %3194 }
0x3e58   :  { %3197 = vst.msk [vmem:[#allocation3 + $0x9] sm:$0x1] %vm41_vm1, %v3195_v8  ;;  %7028 = vmatmul.mubr.msk.f32.vlgmr.msra.gmra.mrb[34].mxu0 %vm126_vm2, %v3195_v8 }
0x3e59   :  { %7519 = vmatpush3.bf16.msra.mxu0 %v8129_v61  ;;  %7047 = vmatprep.mubr.msk.f32.mxu0 %vm7938_vm0, %v7939_v1 }
0x3e5a   :  { %7520 = vmatprep.subr.bf16.mxu0 %v7937_v0 }
0x3e5d   :  { %7522 = vmatpush3.bf16.msra.mxu0 %v8136_v2 }
0x3e5e   :  { %7529 = vmatprep.subr.bf16.mxu0 %v7937_v0 }
0x3f2b   :  { %v3267_v59 = vpop.f32.mrb[34].mxu0 }
0x3f2c   :  { %v3272_v16 = vrot.slane %v3267_v59, 6  ;;  %v7029_v43 = vpop.f32.mrb[35].mxu0  ;;  %v3457_v39 = vadd.f32 %v3267_v59, %v8215_v26 }
0x3f2e   :  { %v3274_v17 = vadd.f32 %v3272_v16, %v8223_v30 }
0x3f30   :  { %v3275_v18 = vadd.f32 %v3274_v17, %v8303_v3 }
0x3f32   :  { %v3276_v19 = vsel %vm993_vm7, %v3275_v18, -inf }
0x3f33   :  { %3277 = vmax.xlane.f32.xlu1 %v3276_v19 }
0x3fc0   :  { %v3278_v20 = vpop.xlane.xlu1 %3277 }
0x3fc1   :  { %v3279_v21 = vsub.f32 %v3275_v18, %v3278_v20 }
0x3fc3   :  { %v3280_v22 = vmul.f32 1.442695, %v3279_v21 }
0x3fc5   :  { %7779 = vpow2.f32 %v3280_v22 }
0x3fcf   :  { %v7780_v24 = vpop.eup %7779 }
0x3fd0   :  { %v3282_v25 = vsel %vm993_vm7, %v7780_v24, 0.0 }
0x3fd1   :  { %3283 = vadd.xlane.f32.xlu0 %v3282_v25 }
0x405e   :  { %v3284_v27 = vpop.xlane.xlu0 %3283 }
0x405f   :  { %7781 = vrcp.f32 %v3284_v27 }
0x4069   :  { %v7782_v28 = vpop.eup %7781 }
0x406a   :  { %v3286_v31 = vmul.f32 %v7782_v28, %v7780_v24 }
0x406c   :  { %3482 = vst.msk [vmem:[#allocation4 + $0x8] sm:$0x4] %vm993_vm7, %v3286_v31  ;;  %v3288_v33 = vrot.slane %v3286_v31, 2 }
0x406e   :  { %7037 = vmatmul.mubr.msk.f32.vlgmr.msra.gmra.mrb[38].mxu1 %vm410_vm5, %v3288_v33 }
0x406f   :  { %7525 = vmatpush3.bf16.msra.mxu1 %v8054_v23  ;;  %7058 = vmatprep.mubr.msk.f32.mxu1 %vm7938_vm0, %v7939_v1 }
0x4070   :  { %7526 = vmatprep.subr.bf16.mxu1 %v7937_v0 }
0x4073   :  { %7528 = vmatpush3.bf16.msra.mxu1 %v8070_v29 }
0x4074   :  { %7532 = vmatprep.subr.bf16.mxu1 %v7937_v0 }
0x4141   :  { %v3357_v34 = vpop.f32.mrb[38].mxu1 }
0x4142   :  { %v3362_v35 = vrot.slane %v3357_v34, 6  ;;  %v7038_v37 = vpop.f32.mrb[39].mxu1 }
0x4144   :  { %3363 = vrot.lane.b32.xlu0 %v3362_v35, %s7941_s2 }
0x4148   :  { %3459 = vrot.lane.b32.xlu0 %v3457_v39, %s7945_s7 }
0x41b6   :  { %v3364_v42 = vpop.permute.xlu0 %3363 }
0x41b7   :  { %v3366_v44 = vadd.f32 %v3364_v42, %v8223_v30 }
0x41b9   :  { %v3367_v9 = vadd.f32 %v3366_v44, %v8303_v3 }
0x41ba   :  { %v3460_v58 = vpop.permute.xlu0 %3459 }
0x41bb   :  { %v3368_v45 = vmax.f32 %v3367_v9, 0.0 }
0x41bd   :  { %v3370_v38 = vrot.slane %v3368_v45, 2 }
0x41bf   :  { %3371 = vrot.lane.b32.xlu1 %v3370_v38, %s7942_s3 }
0x41c3   :  { %3445 = vrot.lane.b32.xlu1 %v3267_v59, %s7942_s3 }
0x4231   :  { %v3372_v46 = vpop.permute.xlu1 %3371 }
0x4232   :  { %7048 = vmatmul.mubr.msk.f32.vlgmr.msra.gmra.mrb[36].mxu0 %vm126_vm2, %v3372_v46 }
0x4233   :  { %7531 = vmatpush3.bf16.msra.mxu0 %v8097_v36  ;;  %7067 = vmatprep.mubr.msk.f32.mxu0 %vm7938_vm0, %v7939_v1 }
0x4234   :  { %7065 = vmatprep.subr.mxu0 %v7939_v1 }
0x4235   :  { %v3446_v47 = vpop.permute.xlu1 %3445 }
0x4237   :  { %7066 = vmatpush3.msk.msra.mxu0 %vm414_vm3, %v8102_v40 }
0x4238   :  { %7538 = vmatprep.subr.bf16.mxu0 %v7937_v0 }
0x4305   :  { %v3441_v48 = vpop.f32.mrb[36].mxu0 }
0x4306   :  { %v3448_v49 = vadd.f32 %v3446_v47, %v3441_v48  ;;  %v7049_v51 = vpop.f32.mrb[37].mxu0  ;;  %v3456_v62 = vadd.f32 %v3441_v48, %v8239_v50 }
0x4308   :  { %v3449_v52 = vadd.f32 %v3448_v49, %v8235_v41 }
0x430a   :  { %v6325_v53 = vmul.f32 -1.442695, %v3449_v52 }
0x430c   :  { %7783 = vpow2.f32 %v6325_v53 }
0x4316   :  { %v7784_v54 = vpop.eup %7783 }
0x4317   :  { %v3453_v55 = vadd.f32 1.0, %v7784_v54 }
0x4319   :  { %7785 = vrcp.f32 %v3453_v55 }
0x4323   :  { %v7786_v56 = vpop.eup %7785 }
0x4324   :  { %v3462_v60 = vmul.f32 %v7786_v56, %v3460_v58  ;;  %v3469_v12 = vsub.f32 1.0, %v7786_v56  ;;  %v3475_v8 = vmul.f32 %v7786_v56, %v8662_v15 }
0x4326   :  { %3464 = vrot.lane.b32.xlu1 %v3462_v60, %s7946_s8 }
0x4398   :  { %v3465_v57 = vpop.permute.xlu1 %3464 }
0x4399   :  { %v3467_v6 = vadd.f32 %v3465_v57, %v3456_v62 }
0x439b   :  { %7787 = vtanh.f32 %v3467_v6 }
0x43a5   :  { %v7788_v11 = vpop.eup %7787 }
0x43a6   :  { %3471 = vrot.lane.b32.xlu0 %v7788_v11, %s7947_s20 }
0x4418   :  { %v3472_v13 = vpop.permute.xlu0 %3471 }
0x4419   :  { %v3474_v59 = vmul.f32 %v3472_v13, %v3469_v12 }
0x441b   :  { %v8706_v16 = vadd.f32 %v3475_v8, %v3474_v59 }
0x441d   :  { %3478 = vrot.lane.b32.xlu1 %v8706_v16, %s7947_s20 }
0x448f   :  { %v3479_v43 = vpop.permute.xlu1 %3478 }
0x4490   :  { %3481 = vst.msk [vmem:[#allocation3 + $0xa] sm:$0x1] %vm41_vm1, %v3479_v43  ;;  %7059 = vmatmul.mubr.msk.f32.vlgmr.msra.gmra.mrb[40].mxu1 %vm126_vm2, %v3479_v43 }
0x4491   :  { %7534 = vmatpush3.bf16.msra.mxu1 %v8129_v61  ;;  %7078 = vmatprep.mubr.msk.f32.mxu1 %vm7938_vm0, %v7939_v1 }
0x4492   :  { %7535 = vmatprep.subr.bf16.mxu1 %v7937_v0 }
0x4495   :  { %7537 = vmatpush3.bf16.msra.mxu1 %v8136_v2 }
0x4496   :  { %7544 = vmatprep.subr.bf16.mxu1 %v7937_v0 }
0x4563   :  { %v3551_v15 = vpop.f32.mrb[40].mxu1 }
0x4564   :  { %v3556_v17 = vrot.slane %v3551_v15, 5  ;;  %v7060_v18 = vpop.f32.mrb[41].mxu1  ;;  %v3741_v47 = vadd.f32 %v3551_v15, %v8215_v26 }
0x4566   :  { %v3558_v19 = vadd.f32 %v3556_v17, %v8223_v30 }
0x4568   :  { %v3559_v20 = vadd.f32 %v3558_v19, %v8350_v63 }
0x456a   :  { %v3560_v21 = vsel %vm1280_vm8, %v3559_v20, -inf }
0x456b   :  { %3561 = vmax.xlane.f32.xlu0 %v3560_v21 }
0x45f8   :  { %v3562_v22 = vpop.xlane.xlu0 %3561 }
0x45f9   :  { %v3563_v24 = vsub.f32 %v3559_v20, %v3562_v22 }
0x45fb   :  { %v3564_v25 = vmul.f32 1.442695, %v3563_v24 }
0x45fd   :  { %7789 = vpow2.f32 %v3564_v25 }
0x4607   :  { %v7790_v27 = vpop.eup %7789 }
0x4608   :  { %v3566_v28 = vsel %vm1280_vm8, %v7790_v27, 0.0 }
0x4609   :  { %3567 = vadd.xlane.f32.xlu1 %v3566_v28 }
0x4696   :  { %v3568_v31 = vpop.xlane.xlu1 %3567 }
0x4697   :  { %7791 = vrcp.f32 %v3568_v31 }
0x46a1   :  { %v7792_v33 = vpop.eup %7791 }
0x46a2   :  { %v3570_v34 = vmul.f32 %v7792_v33, %v7790_v27 }
0x46a4   :  { %3766 = vst.msk [vmem:[#allocation4 + $0x8] sm:$0x8] %vm1280_vm8, %v3570_v34  ;;  %v3572_v35 = vrot.slane %v3570_v34, 3 }
0x46a6   :  { %7068 = vmatmul.mubr.msk.f32.vlgmr.msra.gmra.mrb[38].mxu0 %vm410_vm5, %v3572_v35 }
0x46a7   :  { %7540 = vmatpush3.bf16.msra.mxu0 %v8054_v23  ;;  %7089 = vmatprep.mubr.msk.f32.mxu0 %vm7938_vm0, %v7939_v1 }
0x46a8   :  { %7541 = vmatprep.subr.bf16.mxu0 %v7937_v0 }
0x46ab   :  { %7543 = vmatpush3.bf16.msra.mxu0 %v8070_v29 }
0x46ac   :  { %7547 = vmatprep.subr.bf16.mxu0 %v7937_v0 }
0x4779   :  { %v3641_v37 = vpop.f32.mrb[38].mxu0 }
0x477a   :  { %v3646_v39 = vrot.slane %v3641_v37, 5  ;;  %v7069_v42 = vpop.f32.mrb[39].mxu0 }
0x477c   :  { %3647 = vrot.lane.b32.xlu0 %v3646_v39, %s7941_s2 }
0x4780   :  { %3729 = vrot.lane.b32.xlu0 %v3551_v15, %s7942_s3 }
0x47ee   :  { %v3648_v44 = vpop.permute.xlu0 %3647 }
0x47ef   :  { %v3650_v9 = vadd.f32 %v3648_v44, %v8223_v30 }
0x47f1   :  { %v3651_v45 = vadd.f32 %v3650_v9, %v8350_v63 }
0x47f2   :  { %v3730_v49 = vpop.permute.xlu0 %3729 }
0x47f3   :  { %v3652_v38 = vmax.f32 %v3651_v45, 0.0 }
0x47f5   :  { %v3654_v46 = vrot.slane %v3652_v38, 3 }
0x47f7   :  { %3655 = vrot.lane.b32.xlu1 %v3654_v46, %s7942_s3 }
0x47fb   :  { %3743 = vrot.lane.b32.xlu1 %v3741_v47, %s7945_s7 }
0x4869   :  { %v3656_v48 = vpop.permute.xlu1 %3655 }
0x486a   :  { %7079 = vmatmul.mubr.msk.f32.vlgmr.msra.gmra.mrb[42].mxu1 %vm126_vm2, %v3656_v48 }
0x486b   :  { %7546 = vmatpush3.bf16.msra.mxu1 %v8097_v36  ;;  %7098 = vmatprep.mubr.msk.f32.mxu1 %vm7938_vm0, %v7939_v1 }
0x486c   :  { %7096 = vmatprep.subr.mxu1 %v7939_v1 }
0x486d   :  { %v3744_v62 = vpop.permute.xlu1 %3743 }
0x486f   :  { %7097 = vmatpush3.msk.msra.mxu1 %vm414_vm3, %v8102_v40 }
0x4870   :  { %7553 = vmatprep.subr.bf16.mxu1 %v7937_v0 }
0x493d   :  { %v3725_v51 = vpop.f32.mrb[42].mxu1 }
0x493e   :  { %v3732_v52 = vadd.f32 %v3730_v49, %v3725_v51  ;;  %v7080_v53 = vpop.f32.mrb[43].mxu1  ;;  %v3740_v6 = vadd.f32 %v3725_v51, %v8239_v50 }
0x4940   :  { %v3733_v54 = vadd.f32 %v3732_v52, %v8235_v41 }
0x4942   :  { %v6330_v55 = vmul.f32 -1.442695, %v3733_v54 }
0x4944   :  { %7793 = vpow2.f32 %v6330_v55 }
0x494e   :  { %v7794_v56 = vpop.eup %7793 }
0x494f   :  { %v3737_v58 = vadd.f32 1.0, %v7794_v56 }
0x4951   :  { %7795 = vrcp.f32 %v3737_v58 }
0x495b   :  { %v7796_v60 = vpop.eup %7795 }
0x495c   :  { %v3746_v57 = vmul.f32 %v7796_v60, %v3744_v62  ;;  %v3753_v8 = vsub.f32 1.0, %v7796_v60  ;;  %v3759_v43 = vmul.f32 %v7796_v60, %v8706_v16 }
0x495e   :  { %3748 = vrot.lane.b32.xlu0 %v3746_v57, %s7946_s8 }
0x49d0   :  { %v3749_v11 = vpop.permute.xlu0 %3748 }
0x49d1   :  { %v3751_v12 = vadd.f32 %v3749_v11, %v3740_v6 }
0x49d3   :  { %7797 = vtanh.f32 %v3751_v12 }
0x49dd   :  { %v7798_v13 = vpop.eup %7797 }
0x49de   :  { %3755 = vrot.lane.b32.xlu1 %v7798_v13, %s7947_s20 }
0x4a50   :  { %v3756_v59 = vpop.permute.xlu1 %3755 }
0x4a51   :  { %v3758_v15 = vmul.f32 %v3756_v59, %v3753_v8 }
0x4a53   :  { %v8750_v17 = vadd.f32 %v3759_v43, %v3758_v15 }
0x4a55   :  { %3762 = vrot.lane.b32.xlu0 %v8750_v17, %s7947_s20 }
0x4ac7   :  { %v3763_v18 = vpop.permute.xlu0 %3762 }
0x4ac8   :  { %3765 = vst.msk [vmem:[#allocation3 + $0xb] sm:$0x1] %vm41_vm1, %v3763_v18  ;;  %7090 = vmatmul.mubr.msk.f32.vlgmr.msra.gmra.mrb[40].mxu0 %vm126_vm2, %v3763_v18 }
0x4ac9   :  { %7549 = vmatpush3.bf16.msra.mxu0 %v8129_v61  ;;  %7109 = vmatprep.mubr.msk.f32.mxu0 %vm7938_vm0, %v7939_v1 }
0x4aca   :  { %7550 = vmatprep.subr.bf16.mxu0 %v7937_v0 }
0x4acd   :  { %7552 = vmatpush3.bf16.msra.mxu0 %v8136_v2 }
0x4ace   :  { %7559 = vmatprep.subr.bf16.mxu0 %v7937_v0 }
0x4b9b   :  { %v3835_v16 = vpop.f32.mrb[40].mxu0 }
0x4b9c   :  { %v3840_v19 = vrot.slane %v3835_v16, 4  ;;  %v7091_v20 = vpop.f32.mrb[41].mxu0  ;;  %v4025_v45 = vadd.f32 %v3835_v16, %v8215_v26 }
0x4b9e   :  { %v3842_v21 = vadd.f32 %v3840_v19, %v8223_v30 }
0x4ba0   :  { %v3843_v22 = vadd.f32 %v3842_v21, %v8397_v4 }
0x4ba2   :  { %v3844_v24 = vsel %vm1567_vm9, %v3843_v22, -inf }
0x4ba3   :  { %3845 = vmax.xlane.f32.xlu1 %v3844_v24 }
0x4c30   :  { %v3846_v25 = vpop.xlane.xlu1 %3845 }
0x4c31   :  { %v3847_v27 = vsub.f32 %v3843_v22, %v3846_v25 }
0x4c33   :  { %v3848_v28 = vmul.f32 1.442695, %v3847_v27 }
0x4c35   :  { %7799 = vpow2.f32 %v3848_v28 }
0x4c3f   :  { %v7800_v31 = vpop.eup %7799 }
0x4c40   :  { %v3850_v33 = vsel %vm1567_vm9, %v7800_v31, 0.0 }
0x4c41   :  { %3851 = vadd.xlane.f32.xlu0 %v3850_v33 }
0x4cce   :  { %v3852_v34 = vpop.xlane.xlu0 %3851 }
0x4ccf   :  { %7801 = vrcp.f32 %v3852_v34 }
0x4cd9   :  { %v7802_v35 = vpop.eup %7801 }
0x4cda   :  { %v3854_v37 = vmul.f32 %v7802_v35, %v7800_v31 }
0x4cdc   :  { %4050 = vst.msk [vmem:[#allocation4 + $0x8] sm:$0x10] %vm1567_vm9, %v3854_v37  ;;  %v3856_v39 = vrot.slane %v3854_v37, 4 }
0x4cde   :  { %7099 = vmatmul.mubr.msk.f32.vlgmr.msra.gmra.mrb[44].mxu1 %vm410_vm5, %v3856_v39 }
0x4cdf   :  { %7555 = vmatpush3.bf16.msra.mxu1 %v8054_v23  ;;  %7120 = vmatprep.mubr.msk.f32.mxu1 %vm7938_vm0, %v7939_v1 }
0x4ce0   :  { %7556 = vmatprep.subr.bf16.mxu1 %v7937_v0 }
0x4ce3   :  { %7558 = vmatpush3.bf16.msra.mxu1 %v8070_v29 }
0x4ce4   :  { %7562 = vmatprep.subr.bf16.mxu1 %v7937_v0 }
0x4db1   :  { %v3925_v42 = vpop.f32.mrb[44].mxu1 }
0x4db2   :  { %v3930_v44 = vrot.slane %v3925_v42, 4  ;;  %v7100_v9 = vpop.f32.mrb[45].mxu1 }
0x4db4   :  { %3931 = vrot.lane.b32.xlu0 %v3930_v44, %s7941_s2 }
0x4db8   :  { %4027 = vrot.lane.b32.xlu0 %v4025_v45, %s7945_s7 }
0x4e26   :  { %v3932_v38 = vpop.permute.xlu0 %3931 }
0x4e27   :  { %v3934_v46 = vadd.f32 %v3932_v38, %v8223_v30 }
0x4e29   :  { %v3935_v47 = vadd.f32 %v3934_v46, %v8397_v4 }
0x4e2a   :  { %v4028_v57 = vpop.permute.xlu0 %4027 }
0x4e2b   :  { %v3936_v48 = vmax.f32 %v3935_v47, 0.0 }
0x4e2d   :  { %v3938_v49 = vrot.slane %v3936_v48, 4 }
0x4e2f   :  { %3939 = vrot.lane.b32.xlu1 %v3938_v49, %s7942_s3 }
0x4e33   :  { %4013 = vrot.lane.b32.xlu1 %v3835_v16, %s7942_s3 }
0x4ea1   :  { %v3940_v51 = vpop.permute.xlu1 %3939 }
0x4ea2   :  { %7110 = vmatmul.mubr.msk.f32.vlgmr.msra.gmra.mrb[42].mxu0 %vm126_vm2, %v3940_v51 }
0x4ea3   :  { %7561 = vmatpush3.bf16.msra.mxu0 %v8097_v36  ;;  %7129 = vmatprep.mubr.msk.f32.mxu0 %vm7938_vm0, %v7939_v1 }
0x4ea4   :  { %7127 = vmatprep.subr.mxu0 %v7939_v1 }
0x4ea5   :  { %v4014_v4 = vpop.permute.xlu1 %4013 }
0x4ea7   :  { %7128 = vmatpush3.msk.msra.mxu0 %vm414_vm3, %v8102_v40 }
0x4ea8   :  { %7568 = vmatprep.subr.bf16.mxu0 %v7937_v0 }
0x4f75   :  { %v4009_v52 = vpop.f32.mrb[42].mxu0 }
0x4f76   :  { %v4016_v53 = vadd.f32 %v4014_v4, %v4009_v52  ;;  %v7111_v54 = vpop.f32.mrb[43].mxu0  ;;  %v4024_v11 = vadd.f32 %v4009_v52, %v8239_v50 }
0x4f78   :  { %v4017_v55 = vadd.f32 %v4016_v53, %v8235_v41 }
0x4f7a   :  { %v6335_v56 = vmul.f32 -1.442695, %v4017_v55 }
0x4f7c   :  { %7803 = vpow2.f32 %v6335_v56 }
0x4f86   :  { %v7804_v58 = vpop.eup %7803 }
0x4f87   :  { %v4021_v60 = vadd.f32 1.0, %v7804_v58 }
0x4f89   :  { %7805 = vrcp.f32 %v4021_v60 }
0x4f93   :  { %v7806_v62 = vpop.eup %7805 }
0x4f94   :  { %v4030_v6 = vmul.f32 %v7806_v62, %v4028_v57  ;;  %v4037_v59 = vsub.f32 1.0, %v7806_v62  ;;  %v4043_v15 = vmul.f32 %v7806_v62, %v8750_v17 }
0x4f96   :  { %4032 = vrot.lane.b32.xlu1 %v4030_v6, %s7946_s8 }
0x5008   :  { %v4033_v12 = vpop.permute.xlu1 %4032 }
0x5009   :  { %v4035_v13 = vadd.f32 %v4033_v12, %v4024_v11 }
0x500b   :  { %7807 = vtanh.f32 %v4035_v13 }
0x5015   :  { %v7808_v8 = vpop.eup %7807 }
0x5016   :  { %4039 = vrot.lane.b32.xlu0 %v7808_v8, %s7947_s20 }
0x5088   :  { %v4040_v43 = vpop.permute.xlu0 %4039 }
0x5089   :  { %v4042_v18 = vmul.f32 %v4040_v43, %v4037_v59 }
0x508b   :  { %v8794_v16 = vadd.f32 %v4043_v15, %v4042_v18 }
0x508d   :  { %4046 = vrot.lane.b32.xlu1 %v8794_v16, %s7947_s20 }
0x50ff   :  { %v4047_v19 = vpop.permute.xlu1 %4046 }
0x5100   :  { %4049 = vst.msk [vmem:[#allocation3 + $0xc] sm:$0x1] %vm41_vm1, %v4047_v19  ;;  %7121 = vmatmul.mubr.msk.f32.vlgmr.msra.gmra.mrb[46].mxu1 %vm126_vm2, %v4047_v19 }
0x5101   :  { %7564 = vmatpush3.bf16.msra.mxu1 %v8129_v61  ;;  %7140 = vmatprep.mubr.msk.f32.mxu1 %vm7938_vm0, %v7939_v1 }
0x5102   :  { %7565 = vmatprep.subr.bf16.mxu1 %v7937_v0 }
0x5105   :  { %7567 = vmatpush3.bf16.msra.mxu1 %v8136_v2 }
0x5106   :  { %7574 = vmatprep.subr.bf16.mxu1 %v7937_v0 }
0x51d3   :  { %v4119_v17 = vpop.f32.mrb[46].mxu1 }
0x51d4   :  { %v4124_v20 = vrot.slane %v4119_v17, 3  ;;  %v7122_v21 = vpop.f32.mrb[47].mxu1  ;;  %v4309_v51 = vadd.f32 %v4119_v17, %v8215_v26 }
0x51d6   :  { %v4126_v22 = vadd.f32 %v4124_v20, %v8223_v30 }
0x51d8   :  { %v4127_v24 = vadd.f32 %v4126_v22, %v8444_v7 }
0x51da   :  { %v4128_v25 = vsel %vm1854_vm10, %v4127_v24, -inf }
0x51db   :  { %4129 = vmax.xlane.f32.xlu0 %v4128_v25 }
0x5268   :  { %v4130_v27 = vpop.xlane.xlu0 %4129 }
0x5269   :  { %v4131_v28 = vsub.f32 %v4127_v24, %v4130_v27 }
0x526b   :  { %v4132_v31 = vmul.f32 1.442695, %v4131_v28 }
0x526d   :  { %7809 = vpow2.f32 %v4132_v31 }
0x5277   :  { %v7810_v33 = vpop.eup %7809 }
0x5278   :  { %v4134_v34 = vsel %vm1854_vm10, %v7810_v33, 0.0 }
0x5279   :  { %4135 = vadd.xlane.f32.xlu1 %v4134_v34 }
0x5306   :  { %v4136_v35 = vpop.xlane.xlu1 %4135 }
0x5307   :  { %7811 = vrcp.f32 %v4136_v35 }
0x5311   :  { %v7812_v37 = vpop.eup %7811 }
0x5312   :  { %v4138_v39 = vmul.f32 %v7812_v37, %v7810_v33 }
0x5314   :  { %4334 = vst.msk [vmem:[#allocation4 + $0x8] sm:$0x20] %vm1854_vm10, %v4138_v39  ;;  %v4140_v42 = vrot.slane %v4138_v39, 5 }
0x5316   :  { %7130 = vmatmul.mubr.msk.f32.vlgmr.msra.gmra.mrb[44].mxu0 %vm410_vm5, %v4140_v42 }
0x5317   :  { %7570 = vmatpush3.bf16.msra.mxu0 %v8054_v23  ;;  %7151 = vmatprep.mubr.msk.f32.mxu0 %vm7938_vm0, %v7939_v1 }
0x5318   :  { %7571 = vmatprep.subr.bf16.mxu0 %v7937_v0 }
0x531b   :  { %7573 = vmatpush3.bf16.msra.mxu0 %v8070_v29 }
0x531c   :  { %7577 = vmatprep.subr.bf16.mxu0 %v7937_v0 }
0x53e9   :  { %v4209_v44 = vpop.f32.mrb[44].mxu0 }
0x53ea   :  { %v4214_v9 = vrot.slane %v4209_v44, 3  ;;  %v7131_v45 = vpop.f32.mrb[45].mxu0 }
0x53ec   :  { %4215 = vrot.lane.b32.xlu0 %v4214_v9, %s7941_s2 }
0x53f0   :  { %4297 = vrot.lane.b32.xlu0 %v4119_v17, %s7942_s3 }
0x545e   :  { %v4216_v38 = vpop.permute.xlu0 %4215 }
0x545f   :  { %v4218_v46 = vadd.f32 %v4216_v38, %v8223_v30 }
0x5461   :  { %v4219_v47 = vadd.f32 %v4218_v46, %v8444_v7 }
0x5462   :  { %v4298_v7 = vpop.permute.xlu0 %4297 }
0x5463   :  { %v4220_v48 = vmax.f32 %v4219_v47, 0.0 }
0x5465   :  { %v4222_v49 = vrot.slane %v4220_v48, 5 }
0x5467   :  { %4223 = vrot.lane.b32.xlu1 %v4222_v49, %s7942_s3 }
0x546b   :  { %4311 = vrot.lane.b32.xlu1 %v4309_v51, %s7945_s7 }
0x54d9   :  { %v4224_v4 = vpop.permute.xlu1 %4223 }
0x54da   :  { %7141 = vmatmul.mubr.msk.f32.vlgmr.msra.gmra.mrb[48].mxu1 %vm126_vm2, %v4224_v4 }
0x54db   :  { %7576 = vmatpush3.bf16.msra.mxu1 %v8097_v36  ;;  %7160 = vmatprep.mubr.msk.f32.mxu1 %vm7938_vm0, %v7939_v1 }
0x54dc   :  { %7158 = vmatprep.subr.mxu1 %v7939_v1 }
0x54dd   :  { %v4312_v57 = vpop.permute.xlu1 %4311 }
0x54df   :  { %7159 = vmatpush3.msk.msra.mxu1 %vm414_vm3, %v8102_v40 }
0x54e0   :  { %7583 = vmatprep.subr.bf16.mxu1 %v7937_v0 }
0x55ad   :  { %v4293_v52 = vpop.f32.mrb[48].mxu1 }
0x55ae   :  { %v4300_v53 = vadd.f32 %v4298_v7, %v4293_v52  ;;  %v7142_v54 = vpop.f32.mrb[49].mxu1  ;;  %v4308_v11 = vadd.f32 %v4293_v52, %v8239_v50 }
0x55b0   :  { %v4301_v55 = vadd.f32 %v4300_v53, %v8235_v41 }
0x55b2   :  { %v6340_v56 = vmul.f32 -1.442695, %v4301_v55 }
0x55b4   :  { %7813 = vpow2.f32 %v6340_v56 }
0x55be   :  { %v7814_v58 = vpop.eup %7813 }
0x55bf   :  { %v4305_v60 = vadd.f32 1.0, %v7814_v58 }
0x55c1   :  { %7815 = vrcp.f32 %v4305_v60 }
0x55cb   :  { %v7816_v62 = vpop.eup %7815 }
0x55cc   :  { %v4314_v6 = vmul.f32 %v7816_v62, %v4312_v57  ;;  %v4321_v59 = vsub.f32 1.0, %v7816_v62  ;;  %v4327_v15 = vmul.f32 %v7816_v62, %v8794_v16 }
0x55ce   :  { %4316 = vrot.lane.b32.xlu0 %v4314_v6, %s7946_s8 }
0x5640   :  { %v4317_v12 = vpop.permute.xlu0 %4316 }
0x5641   :  { %v4319_v13 = vadd.f32 %v4317_v12, %v4308_v11 }
0x5643   :  { %7817 = vtanh.f32 %v4319_v13 }
0x564d   :  { %v7818_v8 = vpop.eup %7817 }
0x564e   :  { %4323 = vrot.lane.b32.xlu1 %v7818_v8, %s7947_s20 }
0x56c0   :  { %v4324_v43 = vpop.permute.xlu1 %4323 }
0x56c1   :  { %v4326_v18 = vmul.f32 %v4324_v43, %v4321_v59 }
0x56c3   :  { %v8838_v19 = vadd.f32 %v4327_v15, %v4326_v18 }
0x56c5   :  { %4330 = vrot.lane.b32.xlu0 %v8838_v19, %s7947_s20 }
0x5737   :  { %v4331_v17 = vpop.permute.xlu0 %4330 }
0x5738   :  { %4333 = vst.msk [vmem:[#allocation3 + $0xd] sm:$0x1] %vm41_vm1, %v4331_v17  ;;  %7152 = vmatmul.mubr.msk.f32.vlgmr.msra.gmra.mrb[46].mxu0 %vm126_vm2, %v4331_v17 }
0x5739   :  { %7579 = vmatpush3.bf16.msra.mxu0 %v8129_v61  ;;  %7171 = vmatprep.mubr.msk.f32.mxu0 %vm7938_vm0, %v7939_v1 }
0x573a   :  { %7580 = vmatprep.subr.bf16.mxu0 %v7937_v0 }
0x573d   :  { %7582 = vmatpush3.bf16.msra.mxu0 %v8136_v2 }
0x573e   :  { %7589 = vmatprep.subr.bf16.mxu0 %v7937_v0 }
0x580b   :  { %v4403_v16 = vpop.f32.mrb[46].mxu0 }
0x580c   :  { %v4408_v20 = vrot.slane %v4403_v16, 2  ;;  %v7153_v21 = vpop.f32.mrb[47].mxu0  ;;  %v4593_v38 = vadd.f32 %v4403_v16, %v8215_v26 }
0x580e   :  { %v4410_v22 = vadd.f32 %v4408_v20, %v8223_v30 }
0x5810   :  { %v4411_v24 = vadd.f32 %v4410_v22, %v8493_v10 }
0x5812   :  { %v4412_v25 = vsel %vm2141_vm11, %v4411_v24, -inf }
0x5813   :  { %4413 = vmax.xlane.f32.xlu1 %v4412_v25 }
0x58a0   :  { %v4414_v27 = vpop.xlane.xlu1 %4413 }
0x58a1   :  { %v4415_v28 = vsub.f32 %v4411_v24, %v4414_v27 }
0x58a3   :  { %v4416_v31 = vmul.f32 1.442695, %v4415_v28 }
0x58a5   :  { %7819 = vpow2.f32 %v4416_v31 }
0x58af   :  { %v7820_v33 = vpop.eup %7819 }
0x58b0   :  { %v4418_v34 = vsel %vm2141_vm11, %v7820_v33, 0.0 }
0x58b1   :  { %4419 = vadd.xlane.f32.xlu0 %v4418_v34 }
0x593e   :  { %v4420_v35 = vpop.xlane.xlu0 %4419 }
0x593f   :  { %7821 = vrcp.f32 %v4420_v35 }
0x5949   :  { %v7822_v37 = vpop.eup %7821 }
0x594a   :  { %v4422_v39 = vmul.f32 %v7822_v37, %v7820_v33 }
0x594c   :  { %4618 = vst.msk [vmem:[#allocation4 + $0x8] sm:$0x40] %vm2141_vm11, %v4422_v39  ;;  %v4424_v42 = vrot.slane %v4422_v39, 6 }
0x594e   :  { %7161 = vmatmul.mubr.msk.f32.vlgmr.msra.gmra.mrb[50].mxu1 %vm410_vm5, %v4424_v42 }
0x594f   :  { %7585 = vmatpush3.bf16.msra.mxu1 %v8054_v23  ;;  %7182 = vmatprep.mubr.msk.f32.mxu1 %vm7938_vm0, %v7939_v1 }
0x5950   :  { %7586 = vmatprep.subr.bf16.mxu1 %v7937_v0 }
0x5953   :  { %7588 = vmatpush3.bf16.msra.mxu1 %v8070_v29 }
0x5954   :  { %7592 = vmatprep.subr.bf16.mxu1 %v7937_v0 }
0x5a21   :  { %v4493_v44 = vpop.f32.mrb[50].mxu1 }
0x5a22   :  { %v4498_v9 = vrot.slane %v4493_v44, 2  ;;  %v7162_v45 = vpop.f32.mrb[51].mxu1 }
0x5a24   :  { %4499 = vrot.lane.b32.xlu0 %v4498_v9, %s7941_s2 }
0x5a28   :  { %4595 = vrot.lane.b32.xlu0 %v4593_v38, %s7945_s7 }
0x5a96   :  { %v4500_v46 = vpop.permute.xlu0 %4499 }
0x5a97   :  { %v4502_v47 = vadd.f32 %v4500_v46, %v8223_v30 }
0x5a99   :  { %v4503_v48 = vadd.f32 %v4502_v47, %v8493_v10 }
0x5a9a   :  { %v4596_v62 = vpop.permute.xlu0 %4595 }
0x5a9b   :  { %v4504_v49 = vmax.f32 %v4503_v48, 0.0 }
0x5a9d   :  { %v4506_v51 = vrot.slane %v4504_v49, 6 }
0x5a9f   :  { %4507 = vrot.lane.b32.xlu1 %v4506_v51, %s7942_s3 }
0x5aa3   :  { %4581 = vrot.lane.b32.xlu1 %v4403_v16, %s7942_s3 }
0x5b11   :  { %v4508_v4 = vpop.permute.xlu1 %4507 }
0x5b12   :  { %7172 = vmatmul.mubr.msk.f32.vlgmr.msra.gmra.mrb[48].mxu0 %vm126_vm2, %v4508_v4 }
0x5b13   :  { %7591 = vmatpush3.bf16.msra.mxu0 %v8097_v36  ;;  %7191 = vmatprep.mubr.msk.f32.mxu0 %vm7938_vm0, %v7939_v1 }
0x5b14   :  { %7189 = vmatprep.subr.mxu0 %v7939_v1 }
0x5b15   :  { %v4582_v10 = vpop.permute.xlu1 %4581 }
0x5b17   :  { %7190 = vmatpush3.msk.msra.mxu0 %vm414_vm3, %v8102_v40 }
0x5b18   :  { %7598 = vmatprep.subr.bf16.mxu0 %v7937_v0 }
0x5be5   :  { %v4577_v7 = vpop.f32.mrb[48].mxu0 }
0x5be6   :  { %v4584_v52 = vadd.f32 %v4582_v10, %v4577_v7  ;;  %v7173_v53 = vpop.f32.mrb[49].mxu0  ;;  %v4592_v6 = vadd.f32 %v4577_v7, %v8239_v50 }
0x5be8   :  { %v4585_v54 = vadd.f32 %v4584_v52, %v8235_v41 }
0x5bea   :  { %v6345_v55 = vmul.f32 -1.442695, %v4585_v54 }
0x5bec   :  { %7823 = vpow2.f32 %v6345_v55 }
0x5bf6   :  { %v7824_v56 = vpop.eup %7823 }
0x5bf7   :  { %v4589_v58 = vadd.f32 1.0, %v7824_v56 }
0x5bf9   :  { %7825 = vrcp.f32 %v4589_v58 }
0x5c03   :  { %v7826_v60 = vpop.eup %7825 }
0x5c04   :  { %v4598_v57 = vmul.f32 %v7826_v60, %v4596_v62  ;;  %v4605_v8 = vsub.f32 1.0, %v7826_v60  ;;  %v4611_v43 = vmul.f32 %v7826_v60, %v8838_v19 }
0x5c06   :  { %4600 = vrot.lane.b32.xlu1 %v4598_v57, %s7946_s8 }
0x5c78   :  { %v4601_v11 = vpop.permute.xlu1 %4600 }
0x5c79   :  { %v4603_v12 = vadd.f32 %v4601_v11, %v4592_v6 }
0x5c7b   :  { %7827 = vtanh.f32 %v4603_v12 }
0x5c85   :  { %v7828_v13 = vpop.eup %7827 }
0x5c86   :  { %4607 = vrot.lane.b32.xlu0 %v7828_v13, %s7947_s20 }
0x5cf8   :  { %v4608_v59 = vpop.permute.xlu0 %4607 }
0x5cf9   :  { %v4610_v15 = vmul.f32 %v4608_v59, %v4605_v8 }
0x5cfb   :  { %v8882_v18 = vadd.f32 %v4611_v43, %v4610_v15 }
0x5cfd   :  { %4614 = vrot.lane.b32.xlu1 %v8882_v18, %s7947_s20 }
0x5d6f   :  { %v4615_v17 = vpop.permute.xlu1 %4614 }
0x5d70   :  { %4617 = vst.msk [vmem:[#allocation3 + $0xe] sm:$0x1] %vm41_vm1, %v4615_v17  ;;  %7183 = vmatmul.mubr.msk.f32.vlgmr.msra.gmra.mrb[52].mxu1 %vm126_vm2, %v4615_v17 }
0x5d71   :  { %7594 = vmatpush3.bf16.msra.mxu1 %v8129_v61  ;;  %7202 = vmatprep.mubr.msk.f32.mxu1 %vm7938_vm0, %v7939_v1 }
0x5d72   :  { %7595 = vmatprep.subr.bf16.mxu1 %v7937_v0 }
0x5d75   :  { %7597 = vmatpush3.bf16.msra.mxu1 %v8136_v2 }
0x5d76   :  { %7604 = vmatprep.subr.bf16.mxu1 %v7937_v0 }
0x5e43   :  { %v4687_v19 = vpop.f32.mrb[52].mxu1 }
0x5e44   :  { %v4692_v16 = vrot.slane %v4687_v19, 1  ;;  %v7184_v20 = vpop.f32.mrb[53].mxu1  ;;  %v4877_v49 = vadd.f32 %v4687_v19, %v8215_v26 }
0x5e46   :  { %v4694_v21 = vadd.f32 %v4692_v16, %v8223_v30 }
0x5e48   :  { %v4695_v22 = vadd.f32 %v4694_v21, %v8540_v14 }
0x5e4a   :  { %v4696_v24 = vsel %vm2428_vm12, %v4695_v22, -inf }
0x5e4b   :  { %4697 = vmax.xlane.f32.xlu0 %v4696_v24 }
0x5ed8   :  { %v4698_v25 = vpop.xlane.xlu0 %4697 }
0x5ed9   :  { %v4699_v27 = vsub.f32 %v4695_v22, %v4698_v25 }
0x5edb   :  { %v4700_v28 = vmul.f32 1.442695, %v4699_v27 }
0x5edd   :  { %7829 = vpow2.f32 %v4700_v28 }
0x5ee7   :  { %v7830_v31 = vpop.eup %7829 }
0x5ee8   :  { %v4702_v33 = vsel %vm2428_vm12, %v7830_v31, 0.0 }
0x5ee9   :  { %4703 = vadd.xlane.f32.xlu1 %v4702_v33 }
0x5f76   :  { %v4704_v34 = vpop.xlane.xlu1 %4703 }
0x5f77   :  { %7831 = vrcp.f32 %v4704_v34 }
0x5f81   :  { %v7832_v35 = vpop.eup %7831 }
0x5f82   :  { %v4706_v37 = vmul.f32 %v7832_v35, %v7830_v31 }
0x5f84   :  { %4902 = vst.msk [vmem:[#allocation4 + $0x8] sm:$0x80] %vm2428_vm12, %v4706_v37  ;;  %v4708_v39 = vrot.slane %v4706_v37, 7 }
0x5f86   :  { %7192 = vmatmul.mubr.msk.f32.vlgmr.msra.gmra.mrb[50].mxu0 %vm410_vm5, %v4708_v39 }
0x5f87   :  { %7600 = vmatpush3.bf16.msra.mxu0 %v8054_v23  ;;  %7213 = vmatprep.mubr.msk.f32.mxu0 %vm7938_vm0, %v7939_v1 }
0x5f88   :  { %7601 = vmatprep.subr.bf16.mxu0 %v7937_v0 }
0x5f8b   :  { %7603 = vmatpush3.bf16.msra.mxu0 %v8070_v29 }
0x5f8c   :  { %7607 = vmatprep.subr.bf16.mxu0 %v7937_v0 }
0x6059   :  { %v4777_v42 = vpop.f32.mrb[50].mxu0 }
0x605a   :  { %v4782_v44 = vrot.slane %v4777_v42, 1  ;;  %v7193_v9 = vpop.f32.mrb[51].mxu0 }
0x605c   :  { %4783 = vrot.lane.b32.xlu0 %v4782_v44, %s7941_s2 }
0x6060   :  { %4865 = vrot.lane.b32.xlu0 %v4687_v19, %s7942_s3  ;;  %v7892_v19 = vld [vmem:[#allocation7 + $0xa0] sm:$0x1] }
0x60ce   :  { %v4784_v45 = vpop.permute.xlu0 %4783 }
0x60cf   :  { %v4786_v38 = vadd.f32 %v4784_v45, %v8223_v30 }
0x60d1   :  { %v4787_v46 = vadd.f32 %v4786_v38, %v8540_v14 }
0x60d2   :  { %v4866_v30 = vpop.permute.xlu0 %4865 }
0x60d3   :  { %v4788_v47 = vmax.f32 %v4787_v46, 0.0 }
0x60d5   :  { %v4790_v48 = vrot.slane %v4788_v47, 7 }
0x60d7   :  { %4791 = vrot.lane.b32.xlu1 %v4790_v48, %s7942_s3 }
0x60db   :  { %4879 = vrot.lane.b32.xlu1 %v4877_v49, %s7945_s7 }
0x6149   :  { %v4792_v51 = vpop.permute.xlu1 %4791 }
0x614a   :  { %7203 = vmatmul.mubr.msk.f32.vlgmr.msra.gmra.mrb[54].mxu1 %vm126_vm2, %v4792_v51 }
0x614b   :  { %7606 = vmatpush3.bf16.msra.mxu1 %v8097_v36  ;;  %7222 = vmatprep.mubr.msk.f32.mxu1 %vm7938_vm0, %v7939_v1 }
0x614c   :  { %7220 = vmatprep.subr.mxu1 %v7939_v1 }
0x614d   :  { %v4880_v56 = vpop.permute.xlu1 %4879 }
0x614f   :  { %7221 = vmatpush3.msk.msra.mxu1 %vm414_vm3, %v8102_v40 }
0x6150   :  { %7613 = vmatprep.subr.bf16.mxu1 %v7937_v0 }
0x621d   :  { %v4861_v14 = vpop.f32.mrb[54].mxu1 }
0x621e   :  { %v4868_v4 = vadd.f32 %v4866_v30, %v4861_v14  ;;  %v7204_v10 = vpop.f32.mrb[55].mxu1  ;;  %v4876_v60 = vadd.f32 %v4861_v14, %v8239_v50 }
0x6220   :  { %v4869_v7 = vadd.f32 %v4868_v4, %v8235_v41 }
0x6222   :  { %v6350_v52 = vmul.f32 -1.442695, %v4869_v7 }
0x6224   :  { %7833 = vpow2.f32 %v6350_v52 }
0x622e   :  { %v7834_v53 = vpop.eup %7833 }
0x622f   :  { %v4873_v54 = vadd.f32 1.0, %v7834_v53 }
0x6231   :  { %7835 = vrcp.f32 %v4873_v54 }
0x623b   :  { %v7836_v55 = vpop.eup %7835 }
0x623c   :  { %v4882_v58 = vmul.f32 %v7836_v55, %v4880_v56  ;;  %v4889_v11 = vsub.f32 1.0, %v7836_v55  ;;  %v4895_v13 = vmul.f32 %v7836_v55, %v8882_v18 }
0x623e   :  { %4884 = vrot.lane.b32.xlu0 %v4882_v58, %s7946_s8 }
0x62b0   :  { %v4885_v62 = vpop.permute.xlu0 %4884 }
0x62b1   :  { %v4887_v57 = vadd.f32 %v4885_v62, %v4876_v60 }
0x62b3   :  { %7837 = vtanh.f32 %v4887_v57 }
0x62bd   :  { %v7838_v6 = vpop.eup %7837 }
0x62be   :  { %4891 = vrot.lane.b32.xlu1 %v7838_v6, %s7947_s20 }
0x6330   :  { %v4892_v12 = vpop.permute.xlu1 %4891 }
0x6331   :  { %v4894_v8 = vmul.f32 %v4892_v12, %v4889_v11 }
0x6333   :  { %v8926_v59 = vadd.f32 %v4895_v13, %v4894_v8 }
0x6335   :  { %4898 = vrot.lane.b32.xlu0 %v8926_v59, %s7947_s20 }
0x63a7   :  { %v4899_v43 = vpop.permute.xlu0 %4898 }
0x63a8   :  { %4901 = vst.msk [vmem:[#allocation3 + $0xf] sm:$0x1] %vm41_vm1, %v4899_v43  ;;  %7214 = vmatmul.mubr.msk.f32.vlgmr.msra.gmra.mrb[52].mxu0 %vm126_vm2, %v4899_v43 }
0x63a9   :  { %7609 = vmatpush3.bf16.msra.mxu0 %v8129_v61  ;;  %7233 = vmatprep.mubr.msk.f32.mxu0 %vm7938_vm0, %v7939_v1 }
0x63aa   :  { %7610 = vmatprep.subr.bf16.mxu0 %v7937_v0 }
0x63ad   :  { %7612 = vmatpush3.bf16.msra.mxu0 %v8136_v2 }
0x63ae   :  { %7619 = vmatprep.subr.bf16.mxu0 %v7937_v0 }
0x647b   :  { %v4971_v15 = vpop.f32.mrb[52].mxu0 }
0x647c   :  { %v4975_v18 = vadd.f32 %v4971_v15, %v8230_v32  ;;  %v7215_v17 = vpop.f32.mrb[53].mxu0  ;;  %v5156_v37 = vadd.f32 %v4971_v15, %v8215_v26 }
0x647e   :  { %v4976_v16 = vadd.f32 %v7892_v19, %v4975_v18 }
0x6480   :  { %v4977_v20 = vsel %vm398_vm4, %v4976_v16, -inf }
0x6481   :  { %4978 = vmax.xlane.f32.xlu1 %v4977_v20 }
0x650e   :  { %v4979_v21 = vpop.xlane.xlu1 %4978 }
0x650f   :  { %v4980_v22 = vsub.f32 %v4976_v16, %v4979_v21 }
0x6511   :  { %v4981_v24 = vmul.f32 1.442695, %v4980_v22 }
0x6513   :  { %7839 = vpow2.f32 %v4981_v24 }
0x651d   :  { %v7840_v25 = vpop.eup %7839 }
0x651e   :  { %v4983_v27 = vsel %vm398_vm4, %v7840_v25, 0.0 }
0x651f   :  { %4984 = vadd.xlane.f32.xlu0 %v4983_v27 }
0x65ac   :  { %v4985_v28 = vpop.xlane.xlu0 %4984 }
0x65ad   :  { %7841 = vrcp.f32 %v4985_v28 }
0x65b7   :  { %v7842_v31 = vpop.eup %7841 }
0x65b8   :  { %v4987_v33 = vmul.f32 %v7842_v31, %v7840_v25 }
0x65ba   :  { %5181 = vst.msk [vmem:[#allocation4 + $0x10] sm:$0x1] %vm398_vm4, %v4987_v33  ;;  %7223 = vmatmul.mubr.msk.f32.vlgmr.msra.gmra.mrb[56].mxu1 %vm410_vm5, %v4987_v33  ;;  %vm6219_vm4 = vcmask 1044384  }
0x65bb   :  { %7615 = vmatpush3.bf16.msra.mxu1 %v8054_v23  ;;  %7244 = vmatprep.mubr.msk.f32.mxu1 %vm7938_vm0, %v7939_v1 }
0x65bc   :  { %7616 = vmatprep.subr.bf16.mxu1 %v7937_v0 }
0x65bf   :  { %7618 = vmatpush3.bf16.msra.mxu1 %v8070_v29 }
0x65c0   :  { %7622 = vmatprep.subr.bf16.mxu1 %v7937_v0 }
0x668d   :  { %v5057_v34 = vpop.f32.mrb[56].mxu1 }
0x668e   :  { %5062 = vrot.lane.b32.xlu0 %v5057_v34, %s7941_s2  ;;  %v7224_v35 = vpop.f32.mrb[57].mxu1 }
0x6692   :  { %5158 = vrot.lane.b32.xlu0 %v5156_v37, %s7945_s7 }
0x6700   :  { %v5063_v39 = vpop.permute.xlu0 %5062 }
0x6701   :  { %v5065_v42 = vadd.f32 %v5063_v39, %v8230_v32 }
0x6703   :  { %v5066_v44 = vadd.f32 %v7892_v19, %v5065_v42 }
0x6704   :  { %v5159_v10 = vpop.permute.xlu0 %5158 }
0x6705   :  { %v5067_v9 = vmax.f32 %v5066_v44, 0.0 }
0x6707   :  { %5069 = vrot.lane.b32.xlu1 %v5067_v9, %s7942_s3 }
0x670b   :  { %5144 = vrot.lane.b32.xlu1 %v4971_v15, %s7942_s3 }
0x6779   :  { %v5070_v45 = vpop.permute.xlu1 %5069 }
0x677a   :  { %7234 = vmatmul.mubr.msk.f32.vlgmr.msra.gmra.mrb[54].mxu0 %vm126_vm2, %v5070_v45 }
0x677b   :  { %7621 = vmatpush3.bf16.msra.mxu0 %v8097_v36  ;;  %7253 = vmatprep.mubr.msk.f32.mxu0 %vm7938_vm0, %v7939_v1 }
0x677c   :  { %7251 = vmatprep.subr.mxu0 %v7939_v1 }
0x677d   :  { %v5145_v38 = vpop.permute.xlu1 %5144 }
0x677f   :  { %7252 = vmatpush3.msk.msra.mxu0 %vm414_vm3, %v8102_v40 }
0x6780   :  { %7628 = vmatprep.subr.bf16.mxu0 %v7937_v0 }
0x684d   :  { %v5139_v46 = vpop.f32.mrb[54].mxu0 }
0x684e   :  { %v5147_v47 = vadd.f32 %v5145_v38, %v5139_v46  ;;  %v7235_v48 = vpop.f32.mrb[55].mxu0  ;;  %v5155_v52 = vadd.f32 %v5139_v46, %v8239_v50 }
0x6850   :  { %v5148_v49 = vadd.f32 %v5147_v47, %v8235_v41 }
0x6852   :  { %v6355_v51 = vmul.f32 -1.442695, %v5148_v49 }
0x6854   :  { %7843 = vpow2.f32 %v6355_v51 }
0x685e   :  { %v7844_v30 = vpop.eup %7843 }
0x685f   :  { %v5152_v14 = vadd.f32 1.0, %v7844_v30 }
0x6861   :  { %7845 = vrcp.f32 %v5152_v14 }
0x686b   :  { %v7846_v4 = vpop.eup %7845 }
0x686c   :  { %v5161_v7 = vmul.f32 %v7846_v4, %v5159_v10  ;;  %v5168_v56 = vsub.f32 1.0, %v7846_v4  ;;  %v5174_v60 = vmul.f32 %v7846_v4, %v8926_v59 }
0x686e   :  { %5163 = vrot.lane.b32.xlu1 %v5161_v7, %s7946_s8 }
0x68e0   :  { %v5164_v53 = vpop.permute.xlu1 %5163 }
0x68e1   :  { %v5166_v54 = vadd.f32 %v5164_v53, %v5155_v52 }
0x68e3   :  { %7847 = vtanh.f32 %v5166_v54 }
0x68ed   :  { %v7848_v55 = vpop.eup %7847 }
0x68ee   :  { %5170 = vrot.lane.b32.xlu0 %v7848_v55, %s7947_s20 }
0x6960   :  { %v5171_v58 = vpop.permute.xlu0 %5170 }
0x6961   :  { %v5173_v62 = vmul.f32 %v5171_v58, %v5168_v56 }
0x6963   :  { %v8968_v57 = vadd.f32 %v5174_v60, %v5173_v62 }
0x6965   :  { %5177 = vrot.lane.b32.xlu1 %v8968_v57, %s7947_s20 }
0x69d7   :  { %v5178_v6 = vpop.permute.xlu1 %5177 }
0x69d8   :  { %5180 = vst.msk [vmem:[#allocation3 + $0x10] sm:$0x1] %vm41_vm1, %v5178_v6  ;;  %7245 = vmatmul.mubr.msk.f32.vlgmr.msra.gmra.mrb[58].mxu1 %vm126_vm2, %v5178_v6 }
0x69d9   :  { %7624 = vmatpush3.bf16.msra.mxu1 %v8129_v61  ;;  %7264 = vmatprep.mubr.msk.f32.mxu1 %vm7938_vm0, %v7939_v1 }
0x69da   :  { %7625 = vmatprep.subr.bf16.mxu1 %v7937_v0 }
0x69dd   :  { %7627 = vmatpush3.bf16.msra.mxu1 %v8136_v2 }
0x69de   :  { %7634 = vmatprep.subr.bf16.mxu1 %v7937_v0 }
0x6aab   :  { %v5250_v11 = vpop.f32.mrb[58].mxu1 }
0x6aac   :  { %v5255_v12 = vrot.slane %v5250_v11, 7  ;;  %v7246_v13 = vpop.f32.mrb[59].mxu1  ;;  %v5440_v39 = vadd.f32 %v5250_v11, %v8215_v26 }
0x6aae   :  { %v5257_v8 = vadd.f32 %v5255_v12, %v8230_v32 }
0x6ab0   :  { %v5258_v59 = vadd.f32 %v5257_v8, %v8256_v5 }
0x6ab2   :  { %v5259_v43 = vsel %vm706_vm6, %v5258_v59, -inf }
0x6ab3   :  { %5260 = vmax.xlane.f32.xlu0 %v5259_v43 }
0x6b40   :  { %v5261_v15 = vpop.xlane.xlu0 %5260 }
0x6b41   :  { %v5262_v18 = vsub.f32 %v5258_v59, %v5261_v15 }
0x6b43   :  { %v5263_v17 = vmul.f32 1.442695, %v5262_v18 }
0x6b45   :  { %7849 = vpow2.f32 %v5263_v17 }
0x6b4f   :  { %v7850_v19 = vpop.eup %7849 }
0x6b50   :  { %v5265_v16 = vsel %vm706_vm6, %v7850_v19, 0.0 }
0x6b51   :  { %5266 = vadd.xlane.f32.xlu1 %v5265_v16 }
0x6bde   :  { %v5267_v20 = vpop.xlane.xlu1 %5266 }
0x6bdf   :  { %7851 = vrcp.f32 %v5267_v20 }
0x6be9   :  { %v7852_v21 = vpop.eup %7851 }
0x6bea   :  { %v5269_v22 = vmul.f32 %v7852_v21, %v7850_v19 }
0x6bec   :  { %5465 = vst.msk [vmem:[#allocation4 + $0x10] sm:$0x2] %vm706_vm6, %v5269_v22  ;;  %v5271_v24 = vrot.slane %v5269_v22, 1 }
0x6bee   :  { %7254 = vmatmul.mubr.msk.f32.vlgmr.msra.gmra.mrb[56].mxu0 %vm410_vm5, %v5271_v24 }
0x6bef   :  { %7630 = vmatpush3.bf16.msra.mxu0 %v8054_v23  ;;  %7275 = vmatprep.mubr.msk.f32.mxu0 %vm7938_vm0, %v7939_v1 }
0x6bf0   :  { %7631 = vmatprep.subr.bf16.mxu0 %v7937_v0 }
0x6bf3   :  { %7633 = vmatpush3.bf16.msra.mxu0 %v8070_v29 }
0x6bf4   :  { %7637 = vmatprep.subr.bf16.mxu0 %v7937_v0 }
0x6cc1   :  { %v5340_v25 = vpop.f32.mrb[56].mxu0 }
0x6cc2   :  { %v5345_v27 = vrot.slane %v5340_v25, 7  ;;  %v7255_v28 = vpop.f32.mrb[57].mxu0 }
0x6cc4   :  { %5346 = vrot.lane.b32.xlu0 %v5345_v27, %s7941_s2 }
0x6cc8   :  { %5428 = vrot.lane.b32.xlu0 %v5250_v11, %s7942_s3 }
0x6d36   :  { %v5347_v31 = vpop.permute.xlu0 %5346 }
0x6d37   :  { %v5349_v33 = vadd.f32 %v5347_v31, %v8230_v32 }
0x6d39   :  { %v5350_v34 = vadd.f32 %v5349_v33, %v8256_v5 }
0x6d3a   :  { %v5429_v5 = vpop.permute.xlu0 %5428 }
0x6d3b   :  { %v5351_v35 = vmax.f32 %v5350_v34, 0.0 }
0x6d3d   :  { %v5353_v37 = vrot.slane %v5351_v35, 1 }
0x6d3f   :  { %5354 = vrot.lane.b32.xlu1 %v5353_v37, %s7942_s3 }
0x6d43   :  { %5442 = vrot.lane.b32.xlu1 %v5440_v39, %s7945_s7 }
0x6db1   :  { %v5355_v42 = vpop.permute.xlu1 %5354 }
0x6db2   :  { %7265 = vmatmul.mubr.msk.f32.vlgmr.msra.gmra.mrb[60].mxu1 %vm126_vm2, %v5355_v42 }
0x6db3   :  { %7636 = vmatpush3.bf16.msra.mxu1 %v8097_v36  ;;  %7284 = vmatprep.mubr.msk.f32.mxu1 %vm7938_vm0, %v7939_v1 }
0x6db4   :  { %7282 = vmatprep.subr.mxu1 %v7939_v1 }
0x6db5   :  { %v5443_v51 = vpop.permute.xlu1 %5442 }
0x6db7   :  { %7283 = vmatpush3.msk.msra.mxu1 %vm414_vm3, %v8102_v40 }
0x6db8   :  { %7643 = vmatprep.subr.bf16.mxu1 %v7937_v0 }
0x6e85   :  { %v5424_v44 = vpop.f32.mrb[60].mxu1 }
0x6e86   :  { %v5431_v9 = vadd.f32 %v5429_v5, %v5424_v44  ;;  %v7266_v45 = vpop.f32.mrb[61].mxu1  ;;  %v5439_v14 = vadd.f32 %v5424_v44, %v8239_v50 }
0x6e88   :  { %v5432_v38 = vadd.f32 %v5431_v9, %v8235_v41 }
0x6e8a   :  { %v6360_v46 = vmul.f32 -1.442695, %v5432_v38 }
0x6e8c   :  { %7853 = vpow2.f32 %v6360_v46 }
0x6e96   :  { %v7854_v47 = vpop.eup %7853 }
0x6e97   :  { %v5436_v48 = vadd.f32 1.0, %v7854_v47 }
0x6e99   :  { %7855 = vrcp.f32 %v5436_v48 }
0x6ea3   :  { %v7856_v49 = vpop.eup %7855 }
0x6ea4   :  { %v5445_v30 = vmul.f32 %v7856_v49, %v5443_v51  ;;  %v5452_v52 = vsub.f32 1.0, %v7856_v49  ;;  %v5458_v54 = vmul.f32 %v7856_v49, %v8968_v57 }
0x6ea6   :  { %5447 = vrot.lane.b32.xlu0 %v5445_v30, %s7946_s8 }
0x6f18   :  { %v5448_v4 = vpop.permute.xlu0 %5447 }
0x6f19   :  { %v5450_v10 = vadd.f32 %v5448_v4, %v5439_v14 }
0x6f1b   :  { %7857 = vtanh.f32 %v5450_v10 }
0x6f25   :  { %v7858_v7 = vpop.eup %7857 }
0x6f26   :  { %5454 = vrot.lane.b32.xlu1 %v7858_v7, %s7947_s20 }
0x6f98   :  { %v5455_v53 = vpop.permute.xlu1 %5454 }
0x6f99   :  { %v5457_v55 = vmul.f32 %v5455_v53, %v5452_v52 }
0x6f9b   :  { %v9012_v56 = vadd.f32 %v5458_v54, %v5457_v55 }
0x6f9d   :  { %5461 = vrot.lane.b32.xlu0 %v9012_v56, %s7947_s20 }
0x700f   :  { %v5462_v58 = vpop.permute.xlu0 %5461 }
0x7010   :  { %5464 = vst.msk [vmem:[#allocation3 + $0x11] sm:$0x1] %vm41_vm1, %v5462_v58  ;;  %7276 = vmatmul.mubr.msk.f32.vlgmr.msra.gmra.mrb[58].mxu0 %vm126_vm2, %v5462_v58 }
0x7011   :  { %7639 = vmatpush3.bf16.msra.mxu0 %v8129_v61  ;;  %7295 = vmatprep.mubr.msk.f32.mxu0 %vm7938_vm0, %v7939_v1 }
0x7012   :  { %7640 = vmatprep.subr.bf16.mxu0 %v7937_v0 }
0x7015   :  { %7642 = vmatpush3.bf16.msra.mxu0 %v8136_v2 }
0x7016   :  { %7649 = vmatprep.subr.bf16.mxu0 %v7937_v0 }
0x70e3   :  { %v5534_v60 = vpop.f32.mrb[58].mxu0 }
0x70e4   :  { %v5539_v62 = vrot.slane %v5534_v60, 6  ;;  %v7277_v57 = vpop.f32.mrb[59].mxu0  ;;  %v5724_v24 = vadd.f32 %v5534_v60, %v8215_v26 }
0x70e5   :  { %v6041_v57 = vld [vmem:[#allocation7 + $0x88] sm:$0xff] }
0x70e6   :  { %v5541_v6 = vadd.f32 %v5539_v62, %v8230_v32 }
0x70e8   :  { %v5542_v11 = vadd.f32 %v5541_v6, %v8303_v3 }
0x70ea   :  { %v5543_v12 = vsel %vm993_vm7, %v5542_v11, -inf }
0x70eb   :  { %5544 = vmax.xlane.f32.xlu1 %v5543_v12 }
0x7178   :  { %v5545_v13 = vpop.xlane.xlu1 %5544 }
0x7179   :  { %v5546_v8 = vsub.f32 %v5542_v11, %v5545_v13 }
0x717b   :  { %v5547_v59 = vmul.f32 1.442695, %v5546_v8  ;;  %v6042_v8 = vld [vmem:[#allocation7 + $0x90] sm:$0xff] }
0x717d   :  { %7859 = vpow2.f32 %v5547_v59  ;;  %v6043_v59 = vld [vmem:[#allocation7 + $0x98] sm:$0xff] }
0x7187   :  { %v7860_v43 = vpop.eup %7859 }
0x7188   :  { %v5549_v15 = vsel %vm993_vm7, %v7860_v43, 0.0 }
0x7189   :  { %5550 = vadd.xlane.f32.xlu0 %v5549_v15  ;;  %v9076_v15 = vld [vmem:[#allocation3] sm:$0xff] }
0x7216   :  { %v5551_v18 = vpop.xlane.xlu0 %5550 }
0x7217   :  { %7861 = vrcp.f32 %v5551_v18  ;;  %v9082_v18 = vld [vmem:[#allocation3 + $0x8] sm:$0xff] }
0x7221   :  { %v7862_v17 = vpop.eup %7861 }
0x7222   :  { %v5553_v19 = vmul.f32 %v7862_v17, %v7860_v43  ;;  %v7662_v43 = vpack.c.bf16 %v6043_v59, %v6042_v8 }
0x7224   :  { %5749 = vst.msk [vmem:[#allocation4 + $0x10] sm:$0x4] %vm993_vm7, %v5553_v19  ;;  %v5555_v16 = vrot.slane %v5553_v19, 2 }
0x7226   :  { %7285 = vmatmul.mubr.msk.f32.vlgmr.msra.gmra.mrb[62].mxu1 %vm410_vm5, %v5555_v16 }
0x7227   :  { %7645 = vmatpush3.bf16.msra.mxu1 %v8054_v23  ;;  %7306 = vmatprep.mubr.msk.f32.mxu1 %vm7938_vm0, %v7939_v1 }
0x7228   :  { %7646 = vmatprep.subr.bf16.mxu1 %v7937_v0 }
0x722b   :  { %7648 = vmatpush3.bf16.msra.mxu1 %v8070_v29 }
0x722c   :  { %7652 = vmatprep.subr.bf16.mxu1 %v7937_v0 }
0x72f9   :  { %v5624_v20 = vpop.f32.mrb[62].mxu1 }
0x72fa   :  { %v5629_v21 = vrot.slane %v5624_v20, 6  ;;  %v7286_v22 = vpop.f32.mrb[63].mxu1 }
0x72fc   :  { %5630 = vrot.lane.b32.xlu0 %v5629_v21, %s7941_s2 }
0x7300   :  { %5726 = vrot.lane.b32.xlu0 %v5724_v24, %s7945_s7 }
0x736e   :  { %v5631_v25 = vpop.permute.xlu0 %5630 }
0x736f   :  { %v5633_v23 = vadd.f32 %v5631_v25, %v8230_v32 }
0x7371   :  { %v5634_v27 = vadd.f32 %v5633_v23, %v8303_v3 }
0x7372   :  { %v5727_v44 = vpop.permute.xlu0 %5726 }
0x7373   :  { %v5635_v28 = vmax.f32 %v5634_v27, 0.0 }
0x7375   :  { %v5637_v31 = vrot.slane %v5635_v28, 2 }
0x7377   :  { %5638 = vrot.lane.b32.xlu1 %v5637_v31, %s7942_s3 }
0x737b   :  { %5712 = vrot.lane.b32.xlu1 %v5534_v60, %s7942_s3 }
0x73e9   :  { %v5639_v29 = vpop.permute.xlu1 %5638 }
0x73ea   :  { %7296 = vmatmul.mubr.msk.f32.vlgmr.msra.gmra.mrb[60].mxu0 %vm126_vm2, %v5639_v29 }
0x73eb   :  { %7651 = vmatpush3.bf16.msra.mxu0 %v8097_v36  ;;  %7315 = vmatprep.mubr.msk.f32.mxu0 %vm7938_vm0, %v7939_v1 }
0x73ec   :  { %7313 = vmatprep.subr.mxu0 %v7939_v1 }
0x73ed   :  { %v5713_v3 = vpop.permute.xlu1 %5712 }
0x73ef   :  { %7314 = vmatpush3.msk.msra.mxu0 %vm414_vm3, %v8102_v40  ;;  %vm6214_vm3 = vcmask 945920  }
0x73f0   :  { %7658 = vmatprep.subr.bf16.mxu0 %v7937_v0 }
0x74bd   :  { %v5708_v33 = vpop.f32.mrb[60].mxu0 }
0x74be   :  { %v5715_v34 = vadd.f32 %v5713_v3, %v5708_v33  ;;  %v7297_v35 = vpop.f32.mrb[61].mxu0  ;;  %v5723_v40 = vadd.f32 %v5708_v33, %v8239_v50 }
0x74c0   :  { %v5716_v37 = vadd.f32 %v5715_v34, %v8235_v41 }
0x74c2   :  { %v6365_v39 = vmul.f32 -1.442695, %v5716_v37 }
0x74c4   :  { %7863 = vpow2.f32 %v6365_v39 }
0x74ce   :  { %v7864_v42 = vpop.eup %7863 }
0x74cf   :  { %v5720_v36 = vadd.f32 1.0, %v7864_v42 }
0x74d1   :  { %7865 = vrcp.f32 %v5720_v36 }
0x74db   :  { %v7866_v5 = vpop.eup %7865 }
0x74dc   :  { %v5729_v9 = vmul.f32 %v7866_v5, %v5727_v44  ;;  %v5736_v47 = vsub.f32 1.0, %v7866_v5  ;;  %v5742_v49 = vmul.f32 %v7866_v5, %v9012_v56 }
0x74de   :  { %5731 = vrot.lane.b32.xlu1 %v5729_v9, %s7946_s8 }
0x7550   :  { %v5732_v45 = vpop.permute.xlu1 %5731 }
0x7551   :  { %v5734_v38 = vadd.f32 %v5732_v45, %v5723_v40  ;;  %v7894_v45 = vld [vmem:[#allocation7 + $0xa8] ss:$0 sm:$0xff] }
0x7553   :  { %7867 = vtanh.f32 %v5734_v38 }
0x755d   :  { %v7868_v46 = vpop.eup %7867 }
0x755e   :  { %5738 = vrot.lane.b32.xlu0 %v7868_v46, %s7947_s20 }
0x75d0   :  { %v5739_v48 = vpop.permute.xlu0 %5738 }
0x75d1   :  { %v5741_v51 = vmul.f32 %v5739_v48, %v5736_v47 }
0x75d3   :  { %v9056_v30 = vadd.f32 %v5742_v49, %v5741_v51 }
0x75d5   :  { %5745 = vrot.lane.b32.xlu1 %v9056_v30, %s7947_s20 }
0x7647   :  { %v5746_v14 = vpop.permute.xlu1 %5745 }
0x7648   :  { %5748 = vst.msk [vmem:[#allocation3 + $0x12] sm:$0x1] %vm41_vm1, %v5746_v14  ;;  %7307 = vmatmul.mubr.msk.f32.vlgmr.msra.gmra.mrb[64].mxu1 %vm126_vm2, %v5746_v14 }
0x7649   :  { %7654 = vmatpush3.bf16.msra.mxu1 %v8129_v61  ;;  %7326 = vmatprep.mubr.msk.f32.mxu1 %vm7938_vm0, %v7939_v1 }
0x764a   :  { %7655 = vmatprep.subr.bf16.mxu1 %v7937_v0 }
0x764d   :  { %7657 = vmatpush3.bf16.msra.mxu1 %v8136_v2  ;;  %v6040_v2 = vld [vmem:[#allocation7 + $0x80] sm:$0xff] }
0x764e   :  { %v7659_v12 = vpack.c.bf16 %v6041_v57, %v6040_v2 }
0x771b   :  { %v5818_v4 = vpop.f32.mrb[64].mxu1 }
0x771c   :  { %v5823_v10 = vrot.slane %v5818_v4, 5  ;;  %v7308_v7 = vpop.f32.mrb[65].mxu1  ;;  %v6008_v31 = vadd.f32 %v5818_v4, %v8215_v26 }
0x771e   :  { %v5825_v52 = vadd.f32 %v5823_v10, %v8230_v32 }
0x7720   :  { %v5826_v53 = vadd.f32 %v5825_v52, %v8350_v63 }
0x7722   :  { %v5827_v54 = vsel %vm1280_vm8, %v5826_v53, -inf }
0x7723   :  { %5828 = vmax.xlane.f32.xlu0 %v5827_v54 }
0x77b0   :  { %v5829_v55 = vpop.xlane.xlu0 %5828 }
0x77b1   :  { %v5830_v56 = vsub.f32 %v5826_v53, %v5829_v55 }
0x77b3   :  { %v5831_v61 = vmul.f32 1.442695, %v5830_v56  ;;  %v6037_v56 = vld [vmem:[#allocation4] sm:$0xff] }
0x77b5   :  { %7869 = vpow2.f32 %v5831_v61 }
0x77bf   :  { %v7870_v58 = vpop.eup %7869 }
0x77c0   :  { %v5833_v60 = vsel %vm1280_vm8, %v7870_v58, 0.0 }
0x77c1   :  { %5834 = vadd.xlane.f32.xlu1 %v5833_v60 }
0x784e   :  { %v5835_v62 = vpop.xlane.xlu1 %5834 }
0x784f   :  { %7871 = vrcp.f32 %v5835_v62 }
0x7859   :  { %v7872_v6 = vpop.eup %7871 }
0x785a   :  { %v5837_v11 = vmul.f32 %v7872_v6, %v7870_v58 }
0x785c   :  { %6033 = vst.msk [vmem:[#allocation4 + $0x10] sm:$0x8] %vm1280_vm8, %v5837_v11  ;;  %v5839_v13 = vrot.slane %v5837_v11, 3 }
0x785e   :  { %7316 = vmatmul.mubr.msk.f32.vlgmr.msra.gmra.mrb[62].mxu0 %vm410_vm5, %v5839_v13 }
0x785f   :  { %7660 = vmatpush3.bf16.msra.mxu0 %v7659_v12  ;;  %7337 = vmatprep.mubr.msk.f32.mxu0 %vm7938_vm0, %v7939_v1 }
0x7860   :  { %7661 = vmatprep.subr.bf16.mxu0 %v7937_v0 }
0x7863   :  { %7663 = vmatpush3.bf16.msra.mxu0 %v7662_v43  ;;  %v6039_v61 = vld [vmem:[#allocation4 + $0x10] sm:$0xf] }
0x7866   :  { %7338 = vmatmul.mubr.msk.f32.vlgmr.msra.gmra.mrb[64].mxu0 %vm126_vm2, %v9076_v15 }
0x7867   :  { %7340 = vmatprep.mubr.msk.f32.mxu0 %vm7938_vm0, %v7939_v1 }
0x786a   :  { %7341 = vmatmul.mubr.msk.f32.gmra.mrb[66].mxu0 %vm126_vm2, %v9082_v18 }
0x786b   :  { %7343 = vmatprep.mubr.msk.f32.mxu0 %vm7938_vm0, %v7939_v1  ;;  %vm6211_vm0 = vcmask 950016  }
0x7931   :  { %v5908_v17 = vpop.f32.mrb[62].mxu0 }
0x7932   :  { %v5913_v19 = vrot.slane %v5908_v17, 5  ;;  %v7317_v0 = vpop.f32.mrb[63].mxu0 }
0x7934   :  { %5914 = vrot.lane.b32.xlu0 %v5913_v19, %s7941_s2 }
0x7938   :  { %5996 = vrot.lane.b32.xlu0 %v5818_v4, %s7942_s3 }
0x7939   :  { %v6119_v16 = vpop.f32.mrb[64].mxu0 }
0x793a   :  { %v7339_v20 = vpop.f32.mrb[65].mxu0 }
0x793d   :  { %v6124_v21 = vpop.f32.mrb[66].mxu0 }
0x793e   :  { %v7342_v22 = vpop.f32.mrb[67].mxu0 }
0x79a6   :  { %v5915_v24 = vpop.permute.xlu0 %5914 }
0x79a7   :  { %v5917_v25 = vadd.f32 %v5915_v24, %v8230_v32 }
0x79a9   :  { %v5918_v23 = vadd.f32 %v5917_v25, %v8350_v63 }
0x79aa   :  { %v5997_v3 = vpop.permute.xlu0 %5996 }
0x79ab   :  { %v5919_v27 = vmax.f32 %v5918_v23, 0.0 }
0x79ad   :  { %v5921_v28 = vrot.slane %v5919_v27, 3 }
0x79af   :  { %5922 = vrot.lane.b32.xlu1 %v5921_v28, %s7942_s3 }
0x79b3   :  { %6010 = vrot.lane.b32.xlu1 %v6008_v31, %s7945_s7  ;;  %v6038_v31 = vld [vmem:[#allocation4 + $0x8] sm:$0xff] }
0x7a21   :  { %v5923_v29 = vpop.permute.xlu1 %5922 }
0x7a22   :  { %7327 = vmatmul.mubr.msk.f32.vlgmr.msra.gmra.mrb[66].mxu1 %vm126_vm2, %v5923_v29 }
0x7a25   :  { %v6011_v36 = vpop.permute.xlu1 %6010 }
0x7af5   :  { %v5992_v33 = vpop.f32.mrb[66].mxu1 }
0x7af6   :  { %v5999_v34 = vadd.f32 %v5997_v3, %v5992_v33  ;;  %v7328_v35 = vpop.f32.mrb[67].mxu1  ;;  %v6007_v26 = vadd.f32 %v5992_v33, %v8239_v50 }
0x7af8   :  { %v6000_v37 = vadd.f32 %v5999_v34, %v8235_v41 }
0x7afa   :  { %v6370_v32 = vmul.f32 -1.442695, %v6000_v37 }
0x7afc   :  { %7873 = vpow2.f32 %v6370_v32 }
0x7b06   :  { %v7874_v63 = vpop.eup %7873 }
0x7b07   :  { %v6004_v39 = vadd.f32 1.0, %v7874_v63 }
0x7b09   :  { %7875 = vrcp.f32 %v6004_v39 }
0x7b13   :  { %v7876_v42 = vpop.eup %7875 }
0x7b14   :  { %v6013_v5 = vmul.f32 %v7876_v42, %v6011_v36  ;;  %v6020_v41 = vsub.f32 1.0, %v7876_v42  ;;  %v6026_v46 = vmul.f32 %v7876_v42, %v9056_v30 }
0x7b16   :  { %6015 = vrot.lane.b32.xlu0 %v6013_v5, %s7946_s8 }
0x7b88   :  { %v6016_v44 = vpop.permute.xlu0 %6015 }
0x7b89   :  { %v6018_v9 = vadd.f32 %v6016_v44, %v6007_v26 }
0x7b8b   :  { %7877 = vtanh.f32 %v6018_v9 }
0x7b95   :  { %v7878_v40 = vpop.eup %7877 }
0x7b96   :  { %6022 = vrot.lane.b32.xlu1 %v7878_v40, %s7947_s20 }
0x7b9a   :  { %6138 = vrot.lane.b32.xlu1 %v7894_v45, %s7946_s8 }
0x7c08   :  { %v6023_v38 = vpop.permute.xlu1 %6022 }
0x7c09   :  { %v6025_v47 = vmul.f32 %v6023_v38, %v6020_v41 }
0x7c0b   :  { %v6027_v48 = vadd.f32 %v6026_v46, %v6025_v47 }
0x7c0c   :  { %v6139_v49 = vpop.permute.xlu1 %6138 }
0x7c0d   :  { %v6142_v51 = vadd.f32 %v6139_v49, %v6124_v21  ;;  %6029 = vrot.lane.b32.xlu0 %v6027_v48, %s7947_s20  ;;  %v6141_v14 = vadd.f32 %v6139_v49, %v6119_v16 }
0x7c0f   :  { %v6148_v50 = vsel %vm6144_vm13, %v6142_v51, -inf  ;;  %v6145_v4 = vsel %vm6144_vm13, %v6141_v14, -inf }
0x7c10   :  { %6149 = vmax.xlane.f32.xlu1 %v6148_v50 }
0x7c2c   :  { %6146 = vmax.xlane.f32.xlu0 %v6145_v4 }
0x7c7f   :  { %v6030_v10 = vpop.permute.xlu0 %6029 }
0x7c80   :  { %6032 = vst.msk [vmem:[#allocation3 + $0x13] sm:$0x1] %vm41_vm1, %v6030_v10  ;;  %vm6216_vm1 = vcmask 1048480  }
0x7c87   :  { %v6036_v7 = vld [vmem:[#allocation3 + $0x10] sm:$0xf] }
0x7c88   :  { %7344 = vmatmul.mubr.msk.f32.gmra.mrb[68].mxu0 %vm126_vm2, %v6036_v7  ;;  %vm6197_vm2 = vcmask 781824  }
0x7c9d   :  { %v6150_v30 = vpop.xlane.xlu1 %6149 }
0x7c9e   :  { %v6156_v52 = vsub.f32 %v6142_v51, %v6150_v30 }
0x7ca0   :  { %v6160_v53 = vmul.f32 1.442695, %v6156_v52 }
0x7ca2   :  { %7879 = vpow2.f32 %v6160_v53 }
0x7cac   :  { %v7880_v54 = vpop.eup %7879 }
0x7cad   :  { %v6167_v55 = vsel %vm6144_vm13, %v7880_v54, 0.0 }
0x7cae   :  { %6168 = vadd.xlane.f32.xlu1 %v6167_v55 }
0x7cb9   :  { %v6147_v57 = vpop.xlane.xlu0 %6146 }
0x7cba   :  { %v6155_v6 = vsub.f32 %v6141_v14, %v6147_v57 }
0x7cbc   :  { %v6158_v11 = vmul.f32 1.442695, %v6155_v6 }
0x7cbf   :  { %6185 = vrot.lane.b32.xlu1 %v9076_v15, %s7946_s8 }
0x7cc3   :  { %6189 = vrot.lane.b32.xlu1 %v6036_v7, %s7946_s8 }
0x7cc7   :  { %6202 = vrot.lane.b32.xlu1 %v6037_v56, %s7947_s20 }
0x7ccb   :  { %6206 = vrot.lane.b32.xlu1 %v6039_v61, %s7947_s20 }
0x7d3b   :  { %v6169_v58 = vpop.xlane.xlu1 %6168 }
0x7d3c   :  { %7881 = vlog2.f32 %v6169_v58 }
0x7d3d   :  { %7883 = vpow2.f32 %v6158_v11 }
0x7d3f   :  { %v6186_v21 = vpop.permute.xlu1 %6185 }
0x7d43   :  { %v6190_v25 = vpop.permute.xlu1 %6189 }
0x7d46   :  { %v7882_v60 = vpop.eup %7881 }
0x7d47   :  { %v6176_v62 = vmul.f32 0.6931472, %v7882_v60  ;;  %v7884_v43 = vpop.eup %7883  ;;  %v6203_v28 = vpop.permute.xlu1 %6202 }
0x7d48   :  { %v6164_v15 = vsel %vm6144_vm13, %v7884_v43, 0.0 }
0x7d49   :  { %v6180_v2 = vsub.f32 %v6156_v52, %v6176_v62 }
0x7d4b   :  { %6183 = vst.msk [vmem:[%s9166_s5 + $0x8] sm:$0xff] %vm6144_vm13, %v6180_v2  ;;  %v6207_v37 = vpop.permute.xlu1 %6206 }
0x7d5b   :  { %v6129_v12 = vpop.f32.mrb[68].mxu0 }
0x7d5c   :  { %v6143_v13 = vadd.f32 %v6139_v49, %v6129_v12  ;;  %v7345_v8 = vpop.f32.mrb[69].mxu0 }
0x7d5e   :  { %v6152_v59 = vsel %vm6151_vm14, %v6143_v13, -inf }
0x7d5f   :  { %6153 = vmax.xlane.f32.xlu0 %v6152_v59 }
0x7d63   :  { %6165 = vadd.xlane.f32.xlu0 %v6164_v15 }
0x7d79   :  { %6187 = vrot.lane.b32.xlu0 %v9082_v18, %s7946_s8 }
0x7dec   :  { %v6154_v17 = vpop.xlane.xlu0 %6153 }
0x7ded   :  { %v6157_v19 = vsub.f32 %v6143_v13, %v6154_v17 }
0x7def   :  { %v6162_v0 = vmul.f32 1.442695, %v6157_v19 }
0x7df0   :  { %v6166_v16 = vpop.xlane.xlu0 %6165 }
0x7df1   :  { %7885 = vpow2.f32 %v6162_v0 }
0x7df2   :  { %7887 = vlog2.f32 %v6166_v16 }
0x7df4   :  { %v6188_v20 = vpop.permute.xlu0 %6187 }
0x7df5   :  { %6196 = vst.msk [vmem:[%s9166_s5 + $0x8] sm:$0xff] %vm6194_vm15, %v6188_v20 }
0x7dfb   :  { %v7886_v22 = vpop.eup %7885 }
0x7dfc   :  { %v7888_v24 = vpop.eup %7887  ;;  %v6170_v23 = vsel %vm6151_vm14, %v7886_v22, 0.0 }
0x7dfd   :  { %v6174_v27 = vmul.f32 0.6931472, %v7888_v24  ;;  %6171 = vadd.xlane.f32.xlu0 %v6170_v23 }
0x7dff   :  { %v6179_v18 = vsub.f32 %v6155_v6, %v6174_v27 }
0x7e01   :  { %6182 = vst.msk [vmem:[%s9166_s5] sm:$0xff] %vm6144_vm13, %v6179_v18 }
0x7e02   :  { %6195 = vst.msk [vmem:[%s9166_s5] sm:$0xff] %vm6194_vm15, %v6186_v21 }
0x7e03   :  { %6212 = vst.msk [vmem:[%s9166_s5] sm:$0xff] %vm6211_vm0, %v6203_v28 }
0x7e04   :  { %6217 = vst.msk [vmem:[%s9166_s5] sm:$0xff] %vm6216_vm1, %v7939_v1 }
0x7e13   :  { %6204 = vrot.lane.b32.xlu0 %v6038_v31, %s7947_s20 }
0x7e8a   :  { %v6172_v29 = vpop.xlane.xlu0 %6171 }
0x7e8b   :  { %7889 = vlog2.f32 %v6172_v29 }
0x7e8e   :  { %v6205_v3 = vpop.permute.xlu0 %6204 }
0x7e8f   :  { %6213 = vst.msk [vmem:[%s9166_s5 + $0x8] sm:$0xff] %vm6211_vm0, %v6205_v3 }
0x7e90   :  { %6218 = vst.msk [vmem:[%s9166_s5 + $0x8] sm:$0xff] %vm6216_vm1, %v7939_v1 }
0x7e95   :  { %v7890_v33 = vpop.eup %7889 }
0x7e96   :  { %v6178_v34 = vmul.f32 0.6931472, %v7890_v33 }
0x7e98   :  { %v6181_v35 = vsub.f32 %v6157_v19, %v6178_v34 }
0x7e9a   :  { %6184 = vst.msk [vmem:[%s9166_s5 + $0x10] sm:$0xf] %vm6151_vm14, %v6181_v35 }
0x7e9b   :  { %6198 = vst.msk [vmem:[%s9166_s5 + $0x10] sm:$0xf] %vm6197_vm2, %v6190_v25 }
0x7e9c   :  { %6215 = vst.msk [vmem:[%s9166_s5 + $0x10] sm:$0xf] %vm6214_vm3, %v6207_v37 }
0x7e9d   :  { %6220 = vst.msk [vmem:[%s9166_s5 + $0x10] sm:$0xf] %vm6219_vm4, %v7939_v1 }
0x7e9e   :  { %6225 = vsyncpa [#allocation8], 1 }

</bundles_post_ra>
